<compile_context>
chip_gen: v7x
topology: tpu7x:2x2x1
jax: 0.10.0
libtpu: 0.0.40
codegen_flags: <defaults>
</compile_context>

<pallas_src>
import functools

import numpy as np
import jax
import jax.numpy as jnp
from jax import lax
from jax.experimental import pallas as pl
from jax.experimental.pallas import tpu as pltpu


# ----------------------------------------------------------------------------------
# helpers
# ----------------------------------------------------------------------------------

def _round_up(x, m):
    return (x + m - 1) // m * m


def _pick_tile(dim, cap, quantum):
    """Largest tile <= cap that divides dim (dim is a multiple of quantum)."""
    t = min(dim, cap)
    while dim % t:
        t -= quantum
    return t


_VMEM = functools.partial(pl.BlockSpec, memory_space=pltpu.MemorySpace.VMEM)

# Lrn2d(size=5, alpha=1e-4, beta=0.75, k=1); beta=0.75 is hard-wired via rsqrt below.
_LRN_SIZE, _LRN_ALPHA, _LRN_K = 5, 1e-4, 1.0


# ----------------------------------------------------------------------------------
# Kernel 1: tiled fused matmul (+ folded BN scale/bias, optional ReLU)
#   used for every 1x1 conv (inception reduces / one_by_one / pool-proj / conv2)
# ----------------------------------------------------------------------------------

def _mm_bn_act_kernel(x_ref, w_ref, s_ref, b_ref, o_ref, acc_ref, *, relu):
    @pl.when(pl.program_id(2) == 0)
    def _():
        acc_ref[...] = jnp.zeros_like(acc_ref)

    acc_ref[...] += jnp.dot(x_ref[...], w_ref[...], preferred_element_type=jnp.float32)

    @pl.when(pl.program_id(2) == pl.num_programs(2) - 1)
    def _():
        r = acc_ref[...] * s_ref[...] + b_ref[...]
        if relu:
            r = jnp.maximum(r, 0.0)
        o_ref[...] = r.astype(o_ref.dtype)


def fused_matmul(x, w, scale, bias, *, relu, out_dtype=jnp.bfloat16):
    """(x @ w) * scale + bias (+ReLU).  x:(M,K)  w:(K,N)  scale/bias:(N,)."""
    m, k = x.shape
    _, n = w.shape
    mp, kp, n_p = _round_up(m, 8), _round_up(k, 128), _round_up(n, 128)
    xp = jnp.pad(x.astype(jnp.bfloat16), ((0, mp - m), (0, kp - k)))
    wp = jnp.pad(w.astype(jnp.bfloat16), ((0, kp - k), (0, n_p - n)))
    sp = jnp.pad(scale.astype(jnp.float32), (0, n_p - n)).reshape(1, n_p)
    bp = jnp.pad(bias.astype(jnp.float32), (0, n_p - n)).reshape(1, n_p)
    tm = _pick_tile(mp, 256, 8)
    tn = _pick_tile(n_p, 256, 128)
    tk = _pick_tile(kp, 512, 128)
    grid = (mp // tm, n_p // tn, kp // tk)
    out = pl.pallas_call(
        functools.partial(_mm_bn_act_kernel, relu=relu),
        out_shape=jax.ShapeDtypeStruct((mp, n_p), out_dtype),
        grid=grid,
        in_specs=[
            pl.BlockSpec((tm, tk), lambda i, j, kk: (i, kk)),
            pl.BlockSpec((tk, tn), lambda i, j, kk: (kk, j)),
            pl.BlockSpec((1, tn), lambda i, j, kk: (0, j)),
            pl.BlockSpec((1, tn), lambda i, j, kk: (0, j)),
        ],
        out_specs=pl.BlockSpec((tm, tn), lambda i, j, kk: (i, j)),
        scratch_shapes=[pltpu.VMEM((tm, tn), jnp.float32)],
        compiler_params=pltpu.CompilerParams(
            dimension_semantics=("parallel", "parallel", "arbitrary")),
    )(xp, wp, sp, bp)
    return out[:m, :n]


def conv_1x1(x, p):
    n, h, w_, c = x.shape
    out = fused_matmul(x.reshape(n * h * w_, c), p["w"], p["scale"], p["bias"], relu=True)
    return out.reshape(n, h, w_, p["cout"])


# ----------------------------------------------------------------------------------
# Kernel 2: kxk conv + BN + ReLU with in-kernel window extraction (no HBM im2col)
#   stride handled by W-phase splitting in the wrapper + row indexing in-kernel
# ----------------------------------------------------------------------------------

def _conv_spatial_kernel(*refs, nph, k, stride, ho, wo, relu):
    x_refs = refs[:nph]
    w_ref, s_ref, b_ref, o_ref = refs[nph:nph + 4]
    tn = w_ref.shape[2]

    def row_body(h, carry):
        acc = jnp.zeros((wo, tn), jnp.float32)
        for i in range(k):
            row = stride * h + i
            planes = [x_refs[ph][0, row] for ph in range(nph)]     # (Wph, Cin) each
            for j in range(k):
                patch = planes[j % nph][j // nph:j // nph + wo, :]  # (wo, Cin) bf16
                acc = acc + jnp.dot(patch, w_ref[i * k + j],
                                    preferred_element_type=jnp.float32)
        r = acc * s_ref[...] + b_ref[...]
        if relu:
            r = jnp.maximum(r, 0.0)
        o_ref[0, h] = r.astype(o_ref.dtype)
        return carry

    lax.fori_loop(0, ho, row_body, None)


def conv_spatial(x, p):
    """Conv2d(k>1, bias=False) + folded BatchNorm2d + ReLU."""
    k, stride, pad, cout = p["k"], p["stride"], p["pad"], p["cout"]
    n, h, w_, cin = x.shape
    ho = (h + 2 * pad - k) // stride + 1
    wo = (w_ + 2 * pad - k) // stride + 1
    xp = jnp.pad(x, ((0, 0), (pad, pad), (pad, pad), (0, 0)))
    phases = [xp[:, :, p0::stride, :] for p0 in range(stride)] if stride > 1 else [xp]
    coutp = p["w"].shape[-1]                      # padded to a multiple of 128
    tn = 128
    grid = (n, coutp // tn)
    in_specs = [pl.BlockSpec((1,) + ph.shape[1:], lambda b, c: (b, 0, 0, 0))
                for ph in phases]
    in_specs += [
        pl.BlockSpec((k * k, cin, tn), lambda b, c: (0, 0, c)),
        pl.BlockSpec((1, tn), lambda b, c: (0, c)),
        pl.BlockSpec((1, tn), lambda b, c: (0, c)),
    ]
    out = pl.pallas_call(
        functools.partial(_conv_spatial_kernel, nph=len(phases), k=k,
                          stride=stride, ho=ho, wo=wo, relu=True),
        out_shape=jax.ShapeDtypeStruct((n, ho, wo, coutp), jnp.bfloat16),
        grid=grid,
        in_specs=in_specs,
        out_specs=pl.BlockSpec((1, ho, wo, tn), lambda b, c: (b, 0, 0, c)),
        compiler_params=pltpu.CompilerParams(
            dimension_semantics=("parallel", "parallel")),
    )(*phases, p["w"], p["scale"], p["bias"])
    return out[..., :cout] if cout != coutp else out


# ----------------------------------------------------------------------------------
# Kernel 3: pooling (max / lp2 / avg) with in-kernel windows, optional fused LRN
# ----------------------------------------------------------------------------------

def _pool_kernel(*refs, mode, k, stride, ho, wo, nph, lrn):
    x_refs = refs[:nph]
    band_ref = refs[nph] if lrn else None
    o_ref = refs[-1]

    def row_body(h, carry):
        acc = None
        for i in range(k):
            row = stride * h + i
            planes = [x_refs[ph][0, row] for ph in range(nph)]
            for j in range(k):
                v = planes[j % nph][j // nph:j // nph + wo, :]
                if mode == "max":
                    acc = v if acc is None else jnp.maximum(acc, v)
                else:
                    vf = v.astype(jnp.float32)
                    t = vf * vf if mode == "lp2" else vf
                    acc = t if acc is None else acc + t
        if mode == "max":
            r = acc.astype(jnp.float32)
        elif mode == "lp2":
            # LPPool2d(norm_type=2): sqrt of the zero-padded sum of squares.
            # TODO(synk): the repo's custom PaddedLPPool2d may rescale padded elements;
            # verify against the reference module.
            r = jnp.sqrt(acc)
        else:  # avg (count_include_pad=True)
            r = acc * (1.0 / (k * k))
        if lrn:
            sq = r * r
            wsum = jnp.dot(sq, band_ref[...], preferred_element_type=jnp.float32)
            d = _LRN_K + (_LRN_ALPHA / _LRN_SIZE) * wsum
            inv = lax.rsqrt(d)
            r = r * (inv * jnp.sqrt(inv))          # d ** -0.75 on the EUP
        o_ref[0, h] = r.astype(o_ref.dtype)
        return carry

    lax.fori_loop(0, ho, row_body, None)


def pool2d(x, k, stride, pad, mode, lrn_band=None):
    """MaxPool2d / PaddedLPPool2d(p=2) / AvgPool2d; optional fused cross-channel LRN."""
    n, h, w_, c = x.shape
    ho = (h + 2 * pad - k) // stride + 1
    wo = (w_ + 2 * pad - k) // stride + 1
    pad_val = -jnp.inf if mode == "max" else 0.0
    xp = jnp.pad(x, ((0, 0), (pad, pad), (pad, pad), (0, 0)), constant_values=pad_val)
    phases = [xp[:, :, p0::stride, :] for p0 in range(stride)] if stride > 1 else [xp]
    args = list(phases)
    in_specs = [pl.BlockSpec((1,) + ph.shape[1:], lambda b: (b, 0, 0, 0)) for ph in phases]
    if lrn_band is not None:
        args.append(lrn_band)
        in_specs.append(pl.BlockSpec(lrn_band.shape, lambda b: (0, 0)))
    return pl.pallas_call(
        functools.partial(_pool_kernel, mode=mode, k=k, stride=stride, ho=ho, wo=wo,
                          nph=len(phases), lrn=lrn_band is not None),
        out_shape=jax.ShapeDtypeStruct((n, ho, wo, c), jnp.bfloat16),
        grid=(n,),
        in_specs=in_specs,
        out_specs=pl.BlockSpec((1, ho, wo, c), lambda b: (b, 0, 0, 0)),
        compiler_params=pltpu.CompilerParams(dimension_semantics=("parallel",)),
    )(*args)


# ----------------------------------------------------------------------------------
# Kernel 4: standalone LRN (read-once, banded-matrix window sum, rsqrt-based power)
# ----------------------------------------------------------------------------------

def _lrn_kernel(x_ref, band_ref, o_ref):
    x = x_ref[...].astype(jnp.float32)
    wsum = jnp.dot(x * x, band_ref[...], preferred_element_type=jnp.float32)
    d = _LRN_K + (_LRN_ALPHA / _LRN_SIZE) * wsum
    inv = lax.rsqrt(d)
    o_ref[...] = (x * (inv * jnp.sqrt(inv))).astype(o_ref.dtype)     # x * d**-0.75


def lrn(x, band):
    n, h, w_, c = x.shape
    m = n * h * w_
    mp = _round_up(m, 8)
    xf = jnp.pad(x.reshape(m, c), ((0, mp - m), (0, 0)))
    tm = _pick_tile(mp, 512, 8)
    out = pl.pallas_call(
        _lrn_kernel,
        out_shape=jax.ShapeDtypeStruct((mp, c), jnp.bfloat16),
        grid=(mp // tm,),
        in_specs=[pl.BlockSpec((tm, c), lambda i: (i, 0)),
                  pl.BlockSpec((c, c), lambda i: (0, 0))],
        out_specs=pl.BlockSpec((tm, c), lambda i: (i, 0)),
        compiler_params=pltpu.CompilerParams(dimension_semantics=("parallel",)),
    )(xf, band)
    return out[:m].reshape(n, h, w_, c)


# ----------------------------------------------------------------------------------
# Kernel 5: descriptor head = AvgPool2d(3,(2,1)) + GlobalAvgPool2d + Linear + L2 norm
# ----------------------------------------------------------------------------------

def _head_kernel(x_ref, w_ref, b_ref, o_ref):
    x = x_ref[...].astype(jnp.float32)                       # (N, S, 736)
    feat = jnp.mean(x, axis=1)                               # global average pooling
    r = jnp.dot(feat, w_ref[...], preferred_element_type=jnp.float32) + b_ref[...]
    norm = jnp.sqrt(jnp.sum(r * r, axis=-1, keepdims=True))
    o_ref[...] = r / jnp.maximum(norm, 1e-12)                # L2Normalization


def descriptor_head(x, hp):
    n, h, w_, c = x.shape
    xf = x.reshape(n, h * w_, c)
    emb = hp["w"].shape[1]
    return pl.pallas_call(
        _head_kernel,
        out_shape=jax.ShapeDtypeStruct((n, emb), jnp.float32),
        in_specs=[_VMEM(), _VMEM(), _VMEM()],
        out_specs=_VMEM(),
    )(xf, hp["w"], hp["b"])


# ----------------------------------------------------------------------------------
# Parameter construction (deterministic, synthetic)
# ----------------------------------------------------------------------------------

def _make_conv_bn(key, cin, cout, k, stride, pad):
    kw_key, kg, kb, km, kv = jax.random.split(key, 5)
    fan_in = cin * k * k
    w = jax.random.normal(kw_key, (k, k, cin, cout), jnp.float32) / np.sqrt(fan_in)
    gamma = 1.0 + 0.1 * jax.random.normal(kg, (cout,), jnp.float32)
    beta = 0.05 * jax.random.normal(kb, (cout,), jnp.float32)
    mean = 0.05 * jax.random.normal(km, (cout,), jnp.float32)
    var = 1.0 + 0.1 * jax.random.uniform(kv, (cout,), jnp.float32)
    scale = gamma / jnp.sqrt(var + 1e-5)          # BatchNorm2d eval-mode fold (eps=1e-5)
    bias = beta - mean * scale
    if k == 1:
        return dict(kind="1x1", w=w.reshape(cin, cout).astype(jnp.bfloat16),
                    scale=scale, bias=bias, cout=cout)
    coutp = _round_up(cout, 128)                  # lane-dense output slab
    wsp = jnp.zeros((k * k, cin, coutp), jnp.float32).at[:, :, :cout].set(
        w.reshape(k * k, cin, cout))
    ssp = jnp.zeros((1, coutp), jnp.float32).at[0, :cout].set(scale)
    bsp = jnp.zeros((1, coutp), jnp.float32).at[0, :cout].set(bias)
    return dict(kind="spatial", w=wsp.astype(jnp.bfloat16), scale=ssp, bias=bsp,
                k=k, stride=stride, pad=pad, cout=cout)


def _fuse_1x1(convs):
    """Concatenate 1x1 convs that share the same input along cout (single matmul)."""
    return dict(w=jnp.concatenate([c["w"] for c in convs], axis=1),
                scale=jnp.concatenate([c["scale"] for c in convs]),
                bias=jnp.concatenate([c["bias"] for c in convs]),
                splits=[c["cout"] for c in convs])


def _lrn_band(c, size=_LRN_SIZE):
    idx = np.arange(c)
    return jnp.asarray((np.abs(idx[:, None] - idx[None, :]) <= size // 2)
                       .astype(np.float32))


# (in_ch, kernel_sizes, kernel_strides, out_channels, reduce_sizes, pool_mode, pool_stride)
_INCEPTION_CFGS = [
    (192,  (3, 5), (1, 1), (128, 32),  (96, 16, 32, 64),      "max", 1),
    (256,  (3, 5), (1, 1), (128, 64),  (96, 32, 64, 64),      "lp2", 1),
    (320,  (3, 5), (2, 2), (256, 64),  (128, 32, None, None), "max", 2),
    (640,  (3, 5), (1, 1), (192, 64),  (96, 32, 128, 256),    "lp2", 1),
    (640,  (3, 5), (2, 2), (256, 128), (160, 64, None, None), "max", 2),
    (1024, (3,),   (1,),   (384,),     (96, 96, 256),         "lp2", 1),
    (736,  (3,),   (1,),   (384,),     (96, 96, 256),         "max", 1),
]


def _make_inception(key, cfg):
    in_ch, ks, strides, outs, reds, _, _ = cfg
    nb = len(ks)
    keys = jax.random.split(key, 2 * nb + 2)
    reduces, convs = [], []
    for i in range(nb):
        reduces.append(_make_conv_bn(keys[2 * i], in_ch, reds[i], 1, 1, 0))
        convs.append(_make_conv_bn(keys[2 * i + 1], reds[i], outs[i],
                                   ks[i], strides[i], ks[i] // 2))
    pool_proj = (_make_conv_bn(keys[2 * nb], in_ch, reds[nb], 1, 1, 0)
                 if reds[nb] is not None else None)
    one_by_one = None
    if len(reds) > nb + 1 and reds[nb + 1] is not None:
        one_by_one = _make_conv_bn(keys[2 * nb + 1], in_ch, reds[nb + 1], 1, 1, 0)
    fused = _fuse_1x1(reduces + ([one_by_one] if one_by_one is not None else []))
    return dict(fused1x1=fused, convs=convs, pool_proj=pool_proj,
                has_1x1=one_by_one is not None, n_branches=nb)


def init_params(key):
    keys = jax.random.split(key, 4 + len(_INCEPTION_CFGS))
    head_wk, head_bk = jax.random.split(keys[3])
    return dict(
        conv1=_make_conv_bn(keys[0], 3, 64, 7, 2, 3),
        conv2=_make_conv_bn(keys[1], 64, 64, 1, 1, 0),
        conv3=_make_conv_bn(keys[2], 64, 192, 3, 1, 1),
        inceptions=[_make_inception(keys[4 + i], cfg)
                    for i, cfg in enumerate(_INCEPTION_CFGS)],
        lrn_band64=_lrn_band(64),
        lrn_band192=_lrn_band(192),
        head=dict(w=jax.random.normal(head_wk, (736, 128), jnp.float32) / np.sqrt(736.0),
                  b=0.01 * jax.random.normal(head_bk, (1, 128), jnp.float32)),
    )


# ----------------------------------------------------------------------------------
# Forward pass
# ----------------------------------------------------------------------------------

def _inception_forward(x, ip, cfg):
    _, _, _, _, _, pool_mode, pool_stride = cfg
    n, h, w_, c = x.shape
    f = ip["fused1x1"]
    # all 1x1 convs sharing input x (branch reduces + one_by_one) in one fused matmul
    y = fused_matmul(x.reshape(n * h * w_, c), f["w"], f["scale"], f["bias"], relu=True)
    pieces, off = [], 0
    for sz in f["splits"]:
        pieces.append(y[:, off:off + sz].reshape(n, h, w_, sz))
        off += sz
    outs = []
    for i in range(ip["n_branches"]):                       # kxk conv per branch
        outs.append(conv_spatial(pieces[i], ip["convs"][i]))
    pooled = pool2d(x, 3, pool_stride, 1, pool_mode)        # MaxPool / PaddedLPPool2d
    if ip["pool_proj"] is not None:
        pp = ip["pool_proj"]
        pn, ph_, pw_, pc = pooled.shape
        pooled = fused_matmul(pooled.reshape(pn * ph_ * pw_, pc), pp["w"], pp["scale"],
                              pp["bias"], relu=True).reshape(pn, ph_, pw_, pp["cout"])
    outs.append(pooled)
    if ip["has_1x1"]:
        outs.append(pieces[-1])
    return jnp.concatenate(outs, axis=-1)


def face_descriptor_extractor(x_nchw, params):
    # NCHW (N,3,H,W) -> NHWC bf16 internally -> L2-normalized descriptor (N, 128) f32
    x = jnp.transpose(x_nchw.astype(jnp.float32), (0, 2, 3, 1)).astype(jnp.bfloat16)
    x = conv_spatial(x, params["conv1"])                           # 7x7/2 + BN + ReLU
    x = pool2d(x, 3, 2, 1, "max", lrn_band=params["lrn_band64"])   # MaxPool 3x3/2 + LRN
    x = conv_1x1(x, params["conv2"])                               # 1x1 + BN + ReLU
    x = conv_spatial(x, params["conv3"])                           # 3x3 pad1 + BN + ReLU
    x = lrn(x, params["lrn_band192"])                              # Lrn2d(5, 1e-4, 0.75)
    x = pool2d(x, 3, 2, 1, "max")                                  # MaxPool 3x3/2
    for cfg, ip in zip(_INCEPTION_CFGS, params["inceptions"]):
        x = _inception_forward(x, ip, cfg)
    # TODO(synk): optional classifier head (class_count / NormalizedLinear) not
    # instantiated -- FaceDescriptorExtractor defaults to class_count=None.
    return descriptor_head(x, params["head"])       # avgpool + Linear(736->128) + L2 norm


# ----------------------------------------------------------------------------------

if __name__ == "__main__":
    key = jax.random.PRNGKey(0)
    pkey, xkey = jax.random.split(key)
    params = init_params(pkey)
    # Smallest canonical OpenFace input (96x96 RGB), batch=2.
    x = jax.random.normal(xkey, (2, 3, 96, 96), jnp.float32)
    desc = jax.block_until_ready(face_descriptor_extractor(x, params))
    assert desc.shape == (2, 128), desc.shape
    assert bool(jnp.all(jnp.isfinite(desc))), "non-finite descriptor"
    norms = jnp.sqrt(jnp.sum(desc * desc, axis=-1))
    assert bool(jnp.all(jnp.abs(norms - 1.0) < 1e-2)), norms
    print("KERNEL_OK")
</pallas_src>

<mosaic_0001>
module attributes {stable_mosaic.version = 11 : i64} {
  func.func @_conv_spatial_kernel(%arg0: i32, %arg1: i32, %arg2: memref<1x102x51x3xbf16, #tpu.memory_space<vmem>>, %arg3: memref<1x102x51x3xbf16, #tpu.memory_space<vmem>>, %arg4: memref<49x3x128xbf16, #tpu.memory_space<vmem>>, %arg5: memref<1x128xf32, #tpu.memory_space<vmem>>, %arg6: memref<1x128xf32, #tpu.memory_space<vmem>>, %arg7: memref<1x48x48x128xbf16, #tpu.memory_space<vmem>>) attributes {dimension_semantics = [#tpu.dimension_semantics<parallel>, #tpu.dimension_semantics<parallel>], iteration_bounds = array<i64: 2, 1>, scalar_prefetch = 0 : i64, scratch_operands = 0 : i64, tpu.core_type = #tpu.core_type<tc>, window_params = [{transform_indices = @transform_0, window_bounds = array<i64: 1, 102, 51, 3>}, {transform_indices = @transform_1, window_bounds = array<i64: 1, 102, 51, 3>}, {transform_indices = @transform_2, window_bounds = array<i64: 49, 3, 128>}, {transform_indices = @transform_3, window_bounds = array<i64: 1, 128>}, {transform_indices = @transform_4, window_bounds = array<i64: 1, 128>}, {transform_indices = @transform_5, window_bounds = array<i64: 1, 48, 48, 128>}]} {
    %c0_i32 = arith.constant 0 : i32
    %c48_i32 = arith.constant 48 : i32
    %0 = arith.addi %c0_i32, %c48_i32 : i32
    %c1_i32 = arith.constant 1 : i32
    scf.for %arg8 = %c0_i32 to %0 step %c1_i32  : i32 {
      %cst = arith.constant 0.000000e+00 : f32
      %1 = vector.broadcast %cst : f32 to vector<48x128xf32>
      %c2_i32 = arith.constant 2 : i32
      %2 = arith.muli %c2_i32, %arg8 : i32
      %c0_i32_1 = arith.constant 0 : i32
      %3 = arith.addi %2, %c0_i32_1 : i32
      %c0 = arith.constant 0 : index
      %4 = arith.index_cast %3 : i32 to index
      %c0_2 = arith.constant 0 : index
      %c0_3 = arith.constant 0 : index
      %5 = vector.load %arg2[%c0, %4, %c0_2, %c0_3] : memref<1x102x51x3xbf16, #tpu.memory_space<vmem>>, vector<1x1x51x3xbf16>
      %6 = vector.shape_cast %5 : vector<1x1x51x3xbf16> to vector<51x3xbf16>
      %c0_4 = arith.constant 0 : index
      %7 = arith.index_cast %3 : i32 to index
      %c0_5 = arith.constant 0 : index
      %c0_6 = arith.constant 0 : index
      %8 = vector.load %arg3[%c0_4, %7, %c0_5, %c0_6] : memref<1x102x51x3xbf16, #tpu.memory_space<vmem>>, vector<1x1x51x3xbf16>
      %9 = vector.shape_cast %8 : vector<1x1x51x3xbf16> to vector<51x3xbf16>
      %10 = vector.extract_strided_slice %6 {offsets = [0, 0], sizes = [48, 3], strides = [1, 1]} : vector<51x3xbf16> to vector<48x3xbf16>
      %c0_7 = arith.constant 0 : index
      %c0_8 = arith.constant 0 : index
      %c0_9 = arith.constant 0 : index
      %11 = vector.load %arg4[%c0_7, %c0_8, %c0_9] : memref<49x3x128xbf16, #tpu.memory_space<vmem>>, vector<1x3x128xbf16>
      %12 = vector.shape_cast %11 : vector<1x3x128xbf16> to vector<3x128xbf16>
      %cst_10 = arith.constant dense<0.000000e+00> : vector<48x128xf32>
      %13 = tpu.matmul %10, %12, %cst_10 {dimension_numbers = #tpu.dot_dimension_numbers<[1], [0], [0], [1], [0, 0, 1, 1], [], []>} : vector<48x3xbf16>, vector<3x128xbf16>, vector<48x128xf32> -> vector<48x128xf32>
      %14 = arith.addf %1, %13 : vector<48x128xf32>
      %15 = vector.extract_strided_slice %9 {offsets = [0, 0], sizes = [48, 3], strides = [1, 1]} : vector<51x3xbf16> to vector<48x3xbf16>
      %c1 = arith.constant 1 : index
      %c0_11 = arith.constant 0 : index
      %c0_12 = arith.constant 0 : index
      %16 = vector.load %arg4[%c1, %c0_11, %c0_12] : memref<49x3x128xbf16, #tpu.memory_space<vmem>>, vector<1x3x128xbf16>
      %17 = vector.shape_cast %16 : vector<1x3x128xbf16> to vector<3x128xbf16>
      %cst_13 = arith.constant dense<0.000000e+00> : vector<48x128xf32>
      %18 = tpu.matmul %15, %17, %cst_13 {dimension_numbers = #tpu.dot_dimension_numbers<[1], [0], [0], [1], [0, 0, 1, 1], [], []>} : vector<48x3xbf16>, vector<3x128xbf16>, vector<48x128xf32> -> vector<48x128xf32>
      %19 = arith.addf %14, %18 : vector<48x128xf32>
      %20 = vector.extract_strided_slice %6 {offsets = [1, 0], sizes = [48, 3], strides = [1, 1]} : vector<51x3xbf16> to vector<48x3xbf16>
      %c2 = arith.constant 2 : index
      %c0_14 = arith.constant 0 : index
      %c0_15 = arith.constant 0 : index
      %21 = vector.load %arg4[%c2, %c0_14, %c0_15] : memref<49x3x128xbf16, #tpu.memory_space<vmem>>, vector<1x3x128xbf16>
      %22 = vector.shape_cast %21 : vector<1x3x128xbf16> to vector<3x128xbf16>
      %cst_16 = arith.constant dense<0.000000e+00> : vector<48x128xf32>
      %23 = tpu.matmul %20, %22, %cst_16 {dimension_numbers = #tpu.dot_dimension_numbers<[1], [0], [0], [1], [0, 0, 1, 1], [], []>} : vector<48x3xbf16>, vector<3x128xbf16>, vector<48x128xf32> -> vector<48x128xf32>
      %24 = arith.addf %19, %23 : vector<48x128xf32>
      %25 = vector.extract_strided_slice %9 {offsets = [1, 0], sizes = [48, 3], strides = [1, 1]} : vector<51x3xbf16> to vector<48x3xbf16>
      %c3 = arith.constant 3 : index
      %c0_17 = arith.constant 0 : index
      %c0_18 = arith.constant 0 : index
      %26 = vector.load %arg4[%c3, %c0_17, %c0_18] : memref<49x3x128xbf16, #tpu.memory_space<vmem>>, vector<1x3x128xbf16>
      %27 = vector.shape_cast %26 : vector<1x3x128xbf16> to vector<3x128xbf16>
      %cst_19 = arith.constant dense<0.000000e+00> : vector<48x128xf32>
      %28 = tpu.matmul %25, %27, %cst_19 {dimension_numbers = #tpu.dot_dimension_numbers<[1], [0], [0], [1], [0, 0, 1, 1], [], []>} : vector<48x3xbf16>, vector<3x128xbf16>, vector<48x128xf32> -> vector<48x128xf32>
      %29 = arith.addf %24, %28 : vector<48x128xf32>
      %30 = vector.extract_strided_slice %6 {offsets = [2, 0], sizes = [48, 3], strides = [1, 1]} : vector<51x3xbf16> to vector<48x3xbf16>
      %c4 = arith.constant 4 : index
      %c0_20 = arith.constant 0 : index
      %c0_21 = arith.constant 0 : index
      %31 = vector.load %arg4[%c4, %c0_20, %c0_21] : memref<49x3x128xbf16, #tpu.memory_space<vmem>>, vector<1x3x128xbf16>
      %32 = vector.shape_cast %31 : vector<1x3x128xbf16> to vector<3x128xbf16>
      %cst_22 = arith.constant dense<0.000000e+00> : vector<48x128xf32>
      %33 = tpu.matmul %30, %32, %cst_22 {dimension_numbers = #tpu.dot_dimension_numbers<[1], [0], [0], [1], [0, 0, 1, 1], [], []>} : vector<48x3xbf16>, vector<3x128xbf16>, vector<48x128xf32> -> vector<48x128xf32>
      %34 = arith.addf %29, %33 : vector<48x128xf32>
      %35 = vector.extract_strided_slice %9 {offsets = [2, 0], sizes = [48, 3], strides = [1, 1]} : vector<51x3xbf16> to vector<48x3xbf16>
      %c5 = arith.constant 5 : index
      %c0_23 = arith.constant 0 : index
      %c0_24 = arith.constant 0 : index
      %36 = vector.load %arg4[%c5, %c0_23, %c0_24] : memref<49x3x128xbf16, #tpu.memory_space<vmem>>, vector<1x3x128xbf16>
      %37 = vector.shape_cast %36 : vector<1x3x128xbf16> to vector<3x128xbf16>
      %cst_25 = arith.constant dense<0.000000e+00> : vector<48x128xf32>
      %38 = tpu.matmul %35, %37, %cst_25 {dimension_numbers = #tpu.dot_dimension_numbers<[1], [0], [0], [1], [0, 0, 1, 1], [], []>} : vector<48x3xbf16>, vector<3x128xbf16>, vector<48x128xf32> -> vector<48x128xf32>
      %39 = arith.addf %34, %38 : vector<48x128xf32>
      %40 = vector.extract_strided_slice %6 {offsets = [3, 0], sizes = [48, 3], strides = [1, 1]} : vector<51x3xbf16> to vector<48x3xbf16>
      %c6 = arith.constant 6 : index
      %c0_26 = arith.constant 0 : index
      %c0_27 = arith.constant 0 : index
      %41 = vector.load %arg4[%c6, %c0_26, %c0_27] : memref<49x3x128xbf16, #tpu.memory_space<vmem>>, vector<1x3x128xbf16>
      %42 = vector.shape_cast %41 : vector<1x3x128xbf16> to vector<3x128xbf16>
      %cst_28 = arith.constant dense<0.000000e+00> : vector<48x128xf32>
      %43 = tpu.matmul %40, %42, %cst_28 {dimension_numbers = #tpu.dot_dimension_numbers<[1], [0], [0], [1], [0, 0, 1, 1], [], []>} : vector<48x3xbf16>, vector<3x128xbf16>, vector<48x128xf32> -> vector<48x128xf32>
      %44 = arith.addf %39, %43 : vector<48x128xf32>
      %c2_i32_29 = arith.constant 2 : i32
      %45 = arith.muli %c2_i32_29, %arg8 : i32
      %c1_i32_30 = arith.constant 1 : i32
      %46 = arith.addi %45, %c1_i32_30 : i32
      %c0_31 = arith.constant 0 : index
      %47 = arith.index_cast %46 : i32 to index
      %c0_32 = arith.constant 0 : index
      %c0_33 = arith.constant 0 : index
      %48 = vector.load %arg2[%c0_31, %47, %c0_32, %c0_33] : memref<1x102x51x3xbf16, #tpu.memory_space<vmem>>, vector<1x1x51x3xbf16>
      %49 = vector.shape_cast %48 : vector<1x1x51x3xbf16> to vector<51x3xbf16>
      %c0_34 = arith.constant 0 : index
      %50 = arith.index_cast %46 : i32 to index
      %c0_35 = arith.constant 0 : index
      %c0_36 = arith.constant 0 : index
      %51 = vector.load %arg3[%c0_34, %50, %c0_35, %c0_36] : memref<1x102x51x3xbf16, #tpu.memory_space<vmem>>, vector<1x1x51x3xbf16>
      %52 = vector.shape_cast %51 : vector<1x1x51x3xbf16> to vector<51x3xbf16>
      %53 = vector.extract_strided_slice %49 {offsets = [0, 0], sizes = [48, 3], strides = [1, 1]} : vector<51x3xbf16> to vector<48x3xbf16>
      %c7 = arith.constant 7 : index
      %c0_37 = arith.constant 0 : index
      %c0_38 = arith.constant 0 : index
      %54 = vector.load %arg4[%c7, %c0_37, %c0_38] : memref<49x3x128xbf16, #tpu.memory_space<vmem>>, vector<1x3x128xbf16>
      %55 = vector.shape_cast %54 : vector<1x3x128xbf16> to vector<3x128xbf16>
      %cst_39 = arith.constant dense<0.000000e+00> : vector<48x128xf32>
      %56 = tpu.matmul %53, %55, %cst_39 {dimension_numbers = #tpu.dot_dimension_numbers<[1], [0], [0], [1], [0, 0, 1, 1], [], []>} : vector<48x3xbf16>, vector<3x128xbf16>, vector<48x128xf32> -> vector<48x128xf32>
      %57 = arith.addf %44, %56 : vector<48x128xf32>
      %58 = vector.extract_strided_slice %52 {offsets = [0, 0], sizes = [48, 3], strides = [1, 1]} : vector<51x3xbf16> to vector<48x3xbf16>
      %c8 = arith.constant 8 : index
      %c0_40 = arith.constant 0 : index
      %c0_41 = arith.constant 0 : index
      %59 = vector.load %arg4[%c8, %c0_40, %c0_41] : memref<49x3x128xbf16, #tpu.memory_space<vmem>>, vector<1x3x128xbf16>
      %60 = vector.shape_cast %59 : vector<1x3x128xbf16> to vector<3x128xbf16>
      %cst_42 = arith.constant dense<0.000000e+00> : vector<48x128xf32>
      %61 = tpu.matmul %58, %60, %cst_42 {dimension_numbers = #tpu.dot_dimension_numbers<[1], [0], [0], [1], [0, 0, 1, 1], [], []>} : vector<48x3xbf16>, vector<3x128xbf16>, vector<48x128xf32> -> vector<48x128xf32>
      %62 = arith.addf %57, %61 : vector<48x128xf32>
      %63 = vector.extract_strided_slice %49 {offsets = [1, 0], sizes = [48, 3], strides = [1, 1]} : vector<51x3xbf16> to vector<48x3xbf16>
      %c9 = arith.constant 9 : index
      %c0_43 = arith.constant 0 : index
      %c0_44 = arith.constant 0 : index
      %64 = vector.load %arg4[%c9, %c0_43, %c0_44] : memref<49x3x128xbf16, #tpu.memory_space<vmem>>, vector<1x3x128xbf16>
      %65 = vector.shape_cast %64 : vector<1x3x128xbf16> to vector<3x128xbf16>
      %cst_45 = arith.constant dense<0.000000e+00> : vector<48x128xf32>
      %66 = tpu.matmul %63, %65, %cst_45 {dimension_numbers = #tpu.dot_dimension_numbers<[1], [0], [0], [1], [0, 0, 1, 1], [], []>} : vector<48x3xbf16>, vector<3x128xbf16>, vector<48x128xf32> -> vector<48x128xf32>
      %67 = arith.addf %62, %66 : vector<48x128xf32>
      %68 = vector.extract_strided_slice %52 {offsets = [1, 0], sizes = [48, 3], strides = [1, 1]} : vector<51x3xbf16> to vector<48x3xbf16>
      %c10 = arith.constant 10 : index
      %c0_46 = arith.constant 0 : index
      %c0_47 = arith.constant 0 : index
      %69 = vector.load %arg4[%c10, %c0_46, %c0_47] : memref<49x3x128xbf16, #tpu.memory_space<vmem>>, vector<1x3x128xbf16>
      %70 = vector.shape_cast %69 : vector<1x3x128xbf16> to vector<3x128xbf16>
      %cst_48 = arith.constant dense<0.000000e+00> : vector<48x128xf32>
      %71 = tpu.matmul %68, %70, %cst_48 {dimension_numbers = #tpu.dot_dimension_numbers<[1], [0], [0], [1], [0, 0, 1, 1], [], []>} : vector<48x3xbf16>, vector<3x128xbf16>, vector<48x128xf32> -> vector<48x128xf32>
      %72 = arith.addf %67, %71 : vector<48x128xf32>
      %73 = vector.extract_strided_slice %49 {offsets = [2, 0], sizes = [48, 3], strides = [1, 1]} : vector<51x3xbf16> to vector<48x3xbf16>
      %c11 = arith.constant 11 : index
      %c0_49 = arith.constant 0 : index
      %c0_50 = arith.constant 0 : index
      %74 = vector.load %arg4[%c11, %c0_49, %c0_50] : memref<49x3x128xbf16, #tpu.memory_space<vmem>>, vector<1x3x128xbf16>
      %75 = vector.shape_cast %74 : vector<1x3x128xbf16> to vector<3x128xbf16>
      %cst_51 = arith.constant dense<0.000000e+00> : vector<48x128xf32>
      %76 = tpu.matmul %73, %75, %cst_51 {dimension_numbers = #tpu.dot_dimension_numbers<[1], [0], [0], [1], [0, 0, 1, 1], [], []>} : vector<48x3xbf16>, vector<3x128xbf16>, vector<48x128xf32> -> vector<48x128xf32>
      %77 = arith.addf %72, %76 : vector<48x128xf32>
      %78 = vector.extract_strided_slice %52 {offsets = [2, 0], sizes = [48, 3], strides = [1, 1]} : vector<51x3xbf16> to vector<48x3xbf16>
      %c12 = arith.constant 12 : index
      %c0_52 = arith.constant 0 : index
      %c0_53 = arith.constant 0 : index
      %79 = vector.load %arg4[%c12, %c0_52, %c0_53] : memref<49x3x128xbf16, #tpu.memory_space<vmem>>, vector<1x3x128xbf16>
      %80 = vector.shape_cast %79 : vector<1x3x128xbf16> to vector<3x128xbf16>
      %cst_54 = arith.constant dense<0.000000e+00> : vector<48x128xf32>
      %81 = tpu.matmul %78, %80, %cst_54 {dimension_numbers = #tpu.dot_dimension_numbers<[1], [0], [0], [1], [0, 0, 1, 1], [], []>} : vector<48x3xbf16>, vector<3x128xbf16>, vector<48x128xf32> -> vector<48x128xf32>
      %82 = arith.addf %77, %81 : vector<48x128xf32>
      %83 = vector.extract_strided_slice %49 {offsets = [3, 0], sizes = [48, 3], strides = [1, 1]} : vector<51x3xbf16> to vector<48x3xbf16>
      %c13 = arith.constant 13 : index
      %c0_55 = arith.constant 0 : index
      %c0_56 = arith.constant 0 : index
      %84 = vector.load %arg4[%c13, %c0_55, %c0_56] : memref<49x3x128xbf16, #tpu.memory_space<vmem>>, vector<1x3x128xbf16>
      %85 = vector.shape_cast %84 : vector<1x3x128xbf16> to vector<3x128xbf16>
      %cst_57 = arith.constant dense<0.000000e+00> : vector<48x128xf32>
      %86 = tpu.matmul %83, %85, %cst_57 {dimension_numbers = #tpu.dot_dimension_numbers<[1], [0], [0], [1], [0, 0, 1, 1], [], []>} : vector<48x3xbf16>, vector<3x128xbf16>, vector<48x128xf32> -> vector<48x128xf32>
      %87 = arith.addf %82, %86 : vector<48x128xf32>
      %c2_i32_58 = arith.constant 2 : i32
      %88 = arith.muli %c2_i32_58, %arg8 : i32
      %c2_i32_59 = arith.constant 2 : i32
      %89 = arith.addi %88, %c2_i32_59 : i32
      %c0_60 = arith.constant 0 : index
      %90 = arith.index_cast %89 : i32 to index
      %c0_61 = arith.constant 0 : index
      %c0_62 = arith.constant 0 : index
      %91 = vector.load %arg2[%c0_60, %90, %c0_61, %c0_62] : memref<1x102x51x3xbf16, #tpu.memory_space<vmem>>, vector<1x1x51x3xbf16>
      %92 = vector.shape_cast %91 : vector<1x1x51x3xbf16> to vector<51x3xbf16>
      %c0_63 = arith.constant 0 : index
      %93 = arith.index_cast %89 : i32 to index
      %c0_64 = arith.constant 0 : index
      %c0_65 = arith.constant 0 : index
      %94 = vector.load %arg3[%c0_63, %93, %c0_64, %c0_65] : memref<1x102x51x3xbf16, #tpu.memory_space<vmem>>, vector<1x1x51x3xbf16>
      %95 = vector.shape_cast %94 : vector<1x1x51x3xbf16> to vector<51x3xbf16>
      %96 = vector.extract_strided_slice %92 {offsets = [0, 0], sizes = [48, 3], strides = [1, 1]} : vector<51x3xbf16> to vector<48x3xbf16>
      %c14 = arith.constant 14 : index
      %c0_66 = arith.constant 0 : index
      %c0_67 = arith.constant 0 : index
      %97 = vector.load %arg4[%c14, %c0_66, %c0_67] : memref<49x3x128xbf16, #tpu.memory_space<vmem>>, vector<1x3x128xbf16>
      %98 = vector.shape_cast %97 : vector<1x3x128xbf16> to vector<3x128xbf16>
      %cst_68 = arith.constant dense<0.000000e+00> : vector<48x128xf32>
      %99 = tpu.matmul %96, %98, %cst_68 {dimension_numbers = #tpu.dot_dimension_numbers<[1], [0], [0], [1], [0, 0, 1, 1], [], []>} : vector<48x3xbf16>, vector<3x128xbf16>, vector<48x128xf32> -> vector<48x128xf32>
      %100 = arith.addf %87, %99 : vector<48x128xf32>
      %101 = vector.extract_strided_slice %95 {offsets = [0, 0], sizes = [48, 3], strides = [1, 1]} : vector<51x3xbf16> to vector<48x3xbf16>
      %c15 = arith.constant 15 : index
      %c0_69 = arith.constant 0 : index
      %c0_70 = arith.constant 0 : index
      %102 = vector.load %arg4[%c15, %c0_69, %c0_70] : memref<49x3x128xbf16, #tpu.memory_space<vmem>>, vector<1x3x128xbf16>
      %103 = vector.shape_cast %102 : vector<1x3x128xbf16> to vector<3x128xbf16>
      %cst_71 = arith.constant dense<0.000000e+00> : vector<48x128xf32>
      %104 = tpu.matmul %101, %103, %cst_71 {dimension_numbers = #tpu.dot_dimension_numbers<[1], [0], [0], [1], [0, 0, 1, 1], [], []>} : vector<48x3xbf16>, vector<3x128xbf16>, vector<48x128xf32> -> vector<48x128xf32>
      %105 = arith.addf %100, %104 : vector<48x128xf32>
      %106 = vector.extract_strided_slice %92 {offsets = [1, 0], sizes = [48, 3], strides = [1, 1]} : vector<51x3xbf16> to vector<48x3xbf16>
      %c16 = arith.constant 16 : index
      %c0_72 = arith.constant 0 : index
      %c0_73 = arith.constant 0 : index
      %107 = vector.load %arg4[%c16, %c0_72, %c0_73] : memref<49x3x128xbf16, #tpu.memory_space<vmem>>, vector<1x3x128xbf16>
      %108 = vector.shape_cast %107 : vector<1x3x128xbf16> to vector<3x128xbf16>
      %cst_74 = arith.constant dense<0.000000e+00> : vector<48x128xf32>
      %109 = tpu.matmul %106, %108, %cst_74 {dimension_numbers = #tpu.dot_dimension_numbers<[1], [0], [0], [1], [0, 0, 1, 1], [], []>} : vector<48x3xbf16>, vector<3x128xbf16>, vector<48x128xf32> -> vector<48x128xf32>
      %110 = arith.addf %105, %109 : vector<48x128xf32>
      %111 = vector.extract_strided_slice %95 {offsets = [1, 0], sizes = [48, 3], strides = [1, 1]} : vector<51x3xbf16> to vector<48x3xbf16>
      %c17 = arith.constant 17 : index
      %c0_75 = arith.constant 0 : index
      %c0_76 = arith.constant 0 : index
      %112 = vector.load %arg4[%c17, %c0_75, %c0_76] : memref<49x3x128xbf16, #tpu.memory_space<vmem>>, vector<1x3x128xbf16>
      %113 = vector.shape_cast %112 : vector<1x3x128xbf16> to vector<3x128xbf16>
      %cst_77 = arith.constant dense<0.000000e+00> : vector<48x128xf32>
      %114 = tpu.matmul %111, %113, %cst_77 {dimension_numbers = #tpu.dot_dimension_numbers<[1], [0], [0], [1], [0, 0, 1, 1], [], []>} : vector<48x3xbf16>, vector<3x128xbf16>, vector<48x128xf32> -> vector<48x128xf32>
      %115 = arith.addf %110, %114 : vector<48x128xf32>
      %116 = vector.extract_strided_slice %92 {offsets = [2, 0], sizes = [48, 3], strides = [1, 1]} : vector<51x3xbf16> to vector<48x3xbf16>
      %c18 = arith.constant 18 : index
      %c0_78 = arith.constant 0 : index
      %c0_79 = arith.constant 0 : index
      %117 = vector.load %arg4[%c18, %c0_78, %c0_79] : memref<49x3x128xbf16, #tpu.memory_space<vmem>>, vector<1x3x128xbf16>
      %118 = vector.shape_cast %117 : vector<1x3x128xbf16> to vector<3x128xbf16>
      %cst_80 = arith.constant dense<0.000000e+00> : vector<48x128xf32>
      %119 = tpu.matmul %116, %118, %cst_80 {dimension_numbers = #tpu.dot_dimension_numbers<[1], [0], [0], [1], [0, 0, 1, 1], [], []>} : vector<48x3xbf16>, vector<3x128xbf16>, vector<48x128xf32> -> vector<48x128xf32>
      %120 = arith.addf %115, %119 : vector<48x128xf32>
      %121 = vector.extract_strided_slice %95 {offsets = [2, 0], sizes = [48, 3], strides = [1, 1]} : vector<51x3xbf16> to vector<48x3xbf16>
      %c19 = arith.constant 19 : index
      %c0_81 = arith.constant 0 : index
      %c0_82 = arith.constant 0 : index
      %122 = vector.load %arg4[%c19, %c0_81, %c0_82] : memref<49x3x128xbf16, #tpu.memory_space<vmem>>, vector<1x3x128xbf16>
      %123 = vector.shape_cast %122 : vector<1x3x128xbf16> to vector<3x128xbf16>
      %cst_83 = arith.constant dense<0.000000e+00> : vector<48x128xf32>
      %124 = tpu.matmul %121, %123, %cst_83 {dimension_numbers = #tpu.dot_dimension_numbers<[1], [0], [0], [1], [0, 0, 1, 1], [], []>} : vector<48x3xbf16>, vector<3x128xbf16>, vector<48x128xf32> -> vector<48x128xf32>
      %125 = arith.addf %120, %124 : vector<48x128xf32>
      %126 = vector.extract_strided_slice %92 {offsets = [3, 0], sizes = [48, 3], strides = [1, 1]} : vector<51x3xbf16> to vector<48x3xbf16>
      %c20 = arith.constant 20 : index
      %c0_84 = arith.constant 0 : index
      %c0_85 = arith.constant 0 : index
      %127 = vector.load %arg4[%c20, %c0_84, %c0_85] : memref<49x3x128xbf16, #tpu.memory_space<vmem>>, vector<1x3x128xbf16>
      %128 = vector.shape_cast %127 : vector<1x3x128xbf16> to vector<3x128xbf16>
      %cst_86 = arith.constant dense<0.000000e+00> : vector<48x128xf32>
      %129 = tpu.matmul %126, %128, %cst_86 {dimension_numbers = #tpu.dot_dimension_numbers<[1], [0], [0], [1], [0, 0, 1, 1], [], []>} : vector<48x3xbf16>, vector<3x128xbf16>, vector<48x128xf32> -> vector<48x128xf32>
      %130 = arith.addf %125, %129 : vector<48x128xf32>
      %c2_i32_87 = arith.constant 2 : i32
      %131 = arith.muli %c2_i32_87, %arg8 : i32
      %c3_i32 = arith.constant 3 : i32
      %132 = arith.addi %131, %c3_i32 : i32
      %c0_88 = arith.constant 0 : index
      %133 = arith.index_cast %132 : i32 to index
      %c0_89 = arith.constant 0 : index
      %c0_90 = arith.constant 0 : index
      %134 = vector.load %arg2[%c0_88, %133, %c0_89, %c0_90] : memref<1x102x51x3xbf16, #tpu.memory_space<vmem>>, vector<1x1x51x3xbf16>
      %135 = vector.shape_cast %134 : vector<1x1x51x3xbf16> to vector<51x3xbf16>
      %c0_91 = arith.constant 0 : index
      %136 = arith.index_cast %132 : i32 to index
      %c0_92 = arith.constant 0 : index
      %c0_93 = arith.constant 0 : index
      %137 = vector.load %arg3[%c0_91, %136, %c0_92, %c0_93] : memref<1x102x51x3xbf16, #tpu.memory_space<vmem>>, vector<1x1x51x3xbf16>
      %138 = vector.shape_cast %137 : vector<1x1x51x3xbf16> to vector<51x3xbf16>
      %139 = vector.extract_strided_slice %135 {offsets = [0, 0], sizes = [48, 3], strides = [1, 1]} : vector<51x3xbf16> to vector<48x3xbf16>
      %c21 = arith.constant 21 : index
      %c0_94 = arith.constant 0 : index
      %c0_95 = arith.constant 0 : index
      %140 = vector.load %arg4[%c21, %c0_94, %c0_95] : memref<49x3x128xbf16, #tpu.memory_space<vmem>>, vector<1x3x128xbf16>
      %141 = vector.shape_cast %140 : vector<1x3x128xbf16> to vector<3x128xbf16>
      %cst_96 = arith.constant dense<0.000000e+00> : vector<48x128xf32>
      %142 = tpu.matmul %139, %141, %cst_96 {dimension_numbers = #tpu.dot_dimension_numbers<[1], [0], [0], [1], [0, 0, 1, 1], [], []>} : vector<48x3xbf16>, vector<3x128xbf16>, vector<48x128xf32> -> vector<48x128xf32>
      %143 = arith.addf %130, %142 : vector<48x128xf32>
      %144 = vector.extract_strided_slice %138 {offsets = [0, 0], sizes = [48, 3], strides = [1, 1]} : vector<51x3xbf16> to vector<48x3xbf16>
      %c22 = arith.constant 22 : index
      %c0_97 = arith.constant 0 : index
      %c0_98 = arith.constant 0 : index
      %145 = vector.load %arg4[%c22, %c0_97, %c0_98] : memref<49x3x128xbf16, #tpu.memory_space<vmem>>, vector<1x3x128xbf16>
      %146 = vector.shape_cast %145 : vector<1x3x128xbf16> to vector<3x128xbf16>
      %cst_99 = arith.constant dense<0.000000e+00> : vector<48x128xf32>
      %147 = tpu.matmul %144, %146, %cst_99 {dimension_numbers = #tpu.dot_dimension_numbers<[1], [0], [0], [1], [0, 0, 1, 1], [], []>} : vector<48x3xbf16>, vector<3x128xbf16>, vector<48x128xf32> -> vector<48x128xf32>
      %148 = arith.addf %143, %147 : vector<48x128xf32>
      %149 = vector.extract_strided_slice %135 {offsets = [1, 0], sizes = [48, 3], strides = [1, 1]} : vector<51x3xbf16> to vector<48x3xbf16>
      %c23 = arith.constant 23 : index
      %c0_100 = arith.constant 0 : index
      %c0_101 = arith.constant 0 : index
      %150 = vector.load %arg4[%c23, %c0_100, %c0_101] : memref<49x3x128xbf16, #tpu.memory_space<vmem>>, vector<1x3x128xbf16>
      %151 = vector.shape_cast %150 : vector<1x3x128xbf16> to vector<3x128xbf16>
      %cst_102 = arith.constant dense<0.000000e+00> : vector<48x128xf32>
      %152 = tpu.matmul %149, %151, %cst_102 {dimension_numbers = #tpu.dot_dimension_numbers<[1], [0], [0], [1], [0, 0, 1, 1], [], []>} : vector<48x3xbf16>, vector<3x128xbf16>, vector<48x128xf32> -> vector<48x128xf32>
      %153 = arith.addf %148, %152 : vector<48x128xf32>
      %154 = vector.extract_strided_slice %138 {offsets = [1, 0], sizes = [48, 3], strides = [1, 1]} : vector<51x3xbf16> to vector<48x3xbf16>
      %c24 = arith.constant 24 : index
      %c0_103 = arith.constant 0 : index
      %c0_104 = arith.constant 0 : index
      %155 = vector.load %arg4[%c24, %c0_103, %c0_104] : memref<49x3x128xbf16, #tpu.memory_space<vmem>>, vector<1x3x128xbf16>
      %156 = vector.shape_cast %155 : vector<1x3x128xbf16> to vector<3x128xbf16>
      %cst_105 = arith.constant dense<0.000000e+00> : vector<48x128xf32>
      %157 = tpu.matmul %154, %156, %cst_105 {dimension_numbers = #tpu.dot_dimension_numbers<[1], [0], [0], [1], [0, 0, 1, 1], [], []>} : vector<48x3xbf16>, vector<3x128xbf16>, vector<48x128xf32> -> vector<48x128xf32>
      %158 = arith.addf %153, %157 : vector<48x128xf32>
      %159 = vector.extract_strided_slice %135 {offsets = [2, 0], sizes = [48, 3], strides = [1, 1]} : vector<51x3xbf16> to vector<48x3xbf16>
      %c25 = arith.constant 25 : index
      %c0_106 = arith.constant 0 : index
      %c0_107 = arith.constant 0 : index
      %160 = vector.load %arg4[%c25, %c0_106, %c0_107] : memref<49x3x128xbf16, #tpu.memory_space<vmem>>, vector<1x3x128xbf16>
      %161 = vector.shape_cast %160 : vector<1x3x128xbf16> to vector<3x128xbf16>
      %cst_108 = arith.constant dense<0.000000e+00> : vector<48x128xf32>
      %162 = tpu.matmul %159, %161, %cst_108 {dimension_numbers = #tpu.dot_dimension_numbers<[1], [0], [0], [1], [0, 0, 1, 1], [], []>} : vector<48x3xbf16>, vector<3x128xbf16>, vector<48x128xf32> -> vector<48x128xf32>
      %163 = arith.addf %158, %162 : vector<48x128xf32>
      %164 = vector.extract_strided_slice %138 {offsets = [2, 0], sizes = [48, 3], strides = [1, 1]} : vector<51x3xbf16> to vector<48x3xbf16>
      %c26 = arith.constant 26 : index
      %c0_109 = arith.constant 0 : index
      %c0_110 = arith.constant 0 : index
      %165 = vector.load %arg4[%c26, %c0_109, %c0_110] : memref<49x3x128xbf16, #tpu.memory_space<vmem>>, vector<1x3x128xbf16>
      %166 = vector.shape_cast %165 : vector<1x3x128xbf16> to vector<3x128xbf16>
      %cst_111 = arith.constant dense<0.000000e+00> : vector<48x128xf32>
      %167 = tpu.matmul %164, %166, %cst_111 {dimension_numbers = #tpu.dot_dimension_numbers<[1], [0], [0], [1], [0, 0, 1, 1], [], []>} : vector<48x3xbf16>, vector<3x128xbf16>, vector<48x128xf32> -> vector<48x128xf32>
      %168 = arith.addf %163, %167 : vector<48x128xf32>
      %169 = vector.extract_strided_slice %135 {offsets = [3, 0], sizes = [48, 3], strides = [1, 1]} : vector<51x3xbf16> to vector<48x3xbf16>
      %c27 = arith.constant 27 : index
      %c0_112 = arith.constant 0 : index
      %c0_113 = arith.constant 0 : index
      %170 = vector.load %arg4[%c27, %c0_112, %c0_113] : memref<49x3x128xbf16, #tpu.memory_space<vmem>>, vector<1x3x128xbf16>
      %171 = vector.shape_cast %170 : vector<1x3x128xbf16> to vector<3x128xbf16>
      %cst_114 = arith.constant dense<0.000000e+00> : vector<48x128xf32>
      %172 = tpu.matmul %169, %171, %cst_114 {dimension_numbers = #tpu.dot_dimension_numbers<[1], [0], [0], [1], [0, 0, 1, 1], [], []>} : vector<48x3xbf16>, vector<3x128xbf16>, vector<48x128xf32> -> vector<48x128xf32>
      %173 = arith.addf %168, %172 : vector<48x128xf32>
      %c2_i32_115 = arith.constant 2 : i32
      %174 = arith.muli %c2_i32_115, %arg8 : i32
      %c4_i32 = arith.constant 4 : i32
      %175 = arith.addi %174, %c4_i32 : i32
      %c0_116 = arith.constant 0 : index
      %176 = arith.index_cast %175 : i32 to index
      %c0_117 = arith.constant 0 : index
      %c0_118 = arith.constant 0 : index
      %177 = vector.load %arg2[%c0_116, %176, %c0_117, %c0_118] : memref<1x102x51x3xbf16, #tpu.memory_space<vmem>>, vector<1x1x51x3xbf16>
      %178 = vector.shape_cast %177 : vector<1x1x51x3xbf16> to vector<51x3xbf16>
      %c0_119 = arith.constant 0 : index
      %179 = arith.index_cast %175 : i32 to index
      %c0_120 = arith.constant 0 : index
      %c0_121 = arith.constant 0 : index
      %180 = vector.load %arg3[%c0_119, %179, %c0_120, %c0_121] : memref<1x102x51x3xbf16, #tpu.memory_space<vmem>>, vector<1x1x51x3xbf16>
      %181 = vector.shape_cast %180 : vector<1x1x51x3xbf16> to vector<51x3xbf16>
      %182 = vector.extract_strided_slice %178 {offsets = [0, 0], sizes = [48, 3], strides = [1, 1]} : vector<51x3xbf16> to vector<48x3xbf16>
      %c28 = arith.constant 28 : index
      %c0_122 = arith.constant 0 : index
      %c0_123 = arith.constant 0 : index
      %183 = vector.load %arg4[%c28, %c0_122, %c0_123] : memref<49x3x128xbf16, #tpu.memory_space<vmem>>, vector<1x3x128xbf16>
      %184 = vector.shape_cast %183 : vector<1x3x128xbf16> to vector<3x128xbf16>
      %cst_124 = arith.constant dense<0.000000e+00> : vector<48x128xf32>
      %185 = tpu.matmul %182, %184, %cst_124 {dimension_numbers = #tpu.dot_dimension_numbers<[1], [0], [0], [1], [0, 0, 1, 1], [], []>} : vector<48x3xbf16>, vector<3x128xbf16>, vector<48x128xf32> -> vector<48x128xf32>
      %186 = arith.addf %173, %185 : vector<48x128xf32>
      %187 = vector.extract_strided_slice %181 {offsets = [0, 0], sizes = [48, 3], strides = [1, 1]} : vector<51x3xbf16> to vector<48x3xbf16>
      %c29 = arith.constant 29 : index
      %c0_125 = arith.constant 0 : index
      %c0_126 = arith.constant 0 : index
      %188 = vector.load %arg4[%c29, %c0_125, %c0_126] : memref<49x3x128xbf16, #tpu.memory_space<vmem>>, vector<1x3x128xbf16>
      %189 = vector.shape_cast %188 : vector<1x3x128xbf16> to vector<3x128xbf16>
      %cst_127 = arith.constant dense<0.000000e+00> : vector<48x128xf32>
      %190 = tpu.matmul %187, %189, %cst_127 {dimension_numbers = #tpu.dot_dimension_numbers<[1], [0], [0], [1], [0, 0, 1, 1], [], []>} : vector<48x3xbf16>, vector<3x128xbf16>, vector<48x128xf32> -> vector<48x128xf32>
      %191 = arith.addf %186, %190 : vector<48x128xf32>
      %192 = vector.extract_strided_slice %178 {offsets = [1, 0], sizes = [48, 3], strides = [1, 1]} : vector<51x3xbf16> to vector<48x3xbf16>
      %c30 = arith.constant 30 : index
      %c0_128 = arith.constant 0 : index
      %c0_129 = arith.constant 0 : index
      %193 = vector.load %arg4[%c30, %c0_128, %c0_129] : memref<49x3x128xbf16, #tpu.memory_space<vmem>>, vector<1x3x128xbf16>
      %194 = vector.shape_cast %193 : vector<1x3x128xbf16> to vector<3x128xbf16>
      %cst_130 = arith.constant dense<0.000000e+00> : vector<48x128xf32>
      %195 = tpu.matmul %192, %194, %cst_130 {dimension_numbers = #tpu.dot_dimension_numbers<[1], [0], [0], [1], [0, 0, 1, 1], [], []>} : vector<48x3xbf16>, vector<3x128xbf16>, vector<48x128xf32> -> vector<48x128xf32>
      %196 = arith.addf %191, %195 : vector<48x128xf32>
      %197 = vector.extract_strided_slice %181 {offsets = [1, 0], sizes = [48, 3], strides = [1, 1]} : vector<51x3xbf16> to vector<48x3xbf16>
      %c31 = arith.constant 31 : index
      %c0_131 = arith.constant 0 : index
      %c0_132 = arith.constant 0 : index
      %198 = vector.load %arg4[%c31, %c0_131, %c0_132] : memref<49x3x128xbf16, #tpu.memory_space<vmem>>, vector<1x3x128xbf16>
      %199 = vector.shape_cast %198 : vector<1x3x128xbf16> to vector<3x128xbf16>
      %cst_133 = arith.constant dense<0.000000e+00> : vector<48x128xf32>
      %200 = tpu.matmul %197, %199, %cst_133 {dimension_numbers = #tpu.dot_dimension_numbers<[1], [0], [0], [1], [0, 0, 1, 1], [], []>} : vector<48x3xbf16>, vector<3x128xbf16>, vector<48x128xf32> -> vector<48x128xf32>
      %201 = arith.addf %196, %200 : vector<48x128xf32>
      %202 = vector.extract_strided_slice %178 {offsets = [2, 0], sizes = [48, 3], strides = [1, 1]} : vector<51x3xbf16> to vector<48x3xbf16>
      %c32 = arith.constant 32 : index
      %c0_134 = arith.constant 0 : index
      %c0_135 = arith.constant 0 : index
      %203 = vector.load %arg4[%c32, %c0_134, %c0_135] : memref<49x3x128xbf16, #tpu.memory_space<vmem>>, vector<1x3x128xbf16>
      %204 = vector.shape_cast %203 : vector<1x3x128xbf16> to vector<3x128xbf16>
      %cst_136 = arith.constant dense<0.000000e+00> : vector<48x128xf32>
      %205 = tpu.matmul %202, %204, %cst_136 {dimension_numbers = #tpu.dot_dimension_numbers<[1], [0], [0], [1], [0, 0, 1, 1], [], []>} : vector<48x3xbf16>, vector<3x128xbf16>, vector<48x128xf32> -> vector<48x128xf32>
      %206 = arith.addf %201, %205 : vector<48x128xf32>
      %207 = vector.extract_strided_slice %181 {offsets = [2, 0], sizes = [48, 3], strides = [1, 1]} : vector<51x3xbf16> to vector<48x3xbf16>
      %c33 = arith.constant 33 : index
      %c0_137 = arith.constant 0 : index
      %c0_138 = arith.constant 0 : index
      %208 = vector.load %arg4[%c33, %c0_137, %c0_138] : memref<49x3x128xbf16, #tpu.memory_space<vmem>>, vector<1x3x128xbf16>
      %209 = vector.shape_cast %208 : vector<1x3x128xbf16> to vector<3x128xbf16>
      %cst_139 = arith.constant dense<0.000000e+00> : vector<48x128xf32>
      %210 = tpu.matmul %207, %209, %cst_139 {dimension_numbers = #tpu.dot_dimension_numbers<[1], [0], [0], [1], [0, 0, 1, 1], [], []>} : vector<48x3xbf16>, vector<3x128xbf16>, vector<48x128xf32> -> vector<48x128xf32>
      %211 = arith.addf %206, %210 : vector<48x128xf32>
      %212 = vector.extract_strided_slice %178 {offsets = [3, 0], sizes = [48, 3], strides = [1, 1]} : vector<51x3xbf16> to vector<48x3xbf16>
      %c34 = arith.constant 34 : index
      %c0_140 = arith.constant 0 : index
      %c0_141 = arith.constant 0 : index
      %213 = vector.load %arg4[%c34, %c0_140, %c0_141] : memref<49x3x128xbf16, #tpu.memory_space<vmem>>, vector<1x3x128xbf16>
      %214 = vector.shape_cast %213 : vector<1x3x128xbf16> to vector<3x128xbf16>
      %cst_142 = arith.constant dense<0.000000e+00> : vector<48x128xf32>
      %215 = tpu.matmul %212, %214, %cst_142 {dimension_numbers = #tpu.dot_dimension_numbers<[1], [0], [0], [1], [0, 0, 1, 1], [], []>} : vector<48x3xbf16>, vector<3x128xbf16>, vector<48x128xf32> -> vector<48x128xf32>
      %216 = arith.addf %211, %215 : vector<48x128xf32>
      %c2_i32_143 = arith.constant 2 : i32
      %217 = arith.muli %c2_i32_143, %arg8 : i32
      %c5_i32 = arith.constant 5 : i32
      %218 = arith.addi %217, %c5_i32 : i32
      %c0_144 = arith.constant 0 : index
      %219 = arith.index_cast %218 : i32 to index
      %c0_145 = arith.constant 0 : index
      %c0_146 = arith.constant 0 : index
      %220 = vector.load %arg2[%c0_144, %219, %c0_145, %c0_146] : memref<1x102x51x3xbf16, #tpu.memory_space<vmem>>, vector<1x1x51x3xbf16>
      %221 = vector.shape_cast %220 : vector<1x1x51x3xbf16> to vector<51x3xbf16>
      %c0_147 = arith.constant 0 : index
      %222 = arith.index_cast %218 : i32 to index
      %c0_148 = arith.constant 0 : index
      %c0_149 = arith.constant 0 : index
      %223 = vector.load %arg3[%c0_147, %222, %c0_148, %c0_149] : memref<1x102x51x3xbf16, #tpu.memory_space<vmem>>, vector<1x1x51x3xbf16>
      %224 = vector.shape_cast %223 : vector<1x1x51x3xbf16> to vector<51x3xbf16>
      %225 = vector.extract_strided_slice %221 {offsets = [0, 0], sizes = [48, 3], strides = [1, 1]} : vector<51x3xbf16> to vector<48x3xbf16>
      %c35 = arith.constant 35 : index
      %c0_150 = arith.constant 0 : index
      %c0_151 = arith.constant 0 : index
      %226 = vector.load %arg4[%c35, %c0_150, %c0_151] : memref<49x3x128xbf16, #tpu.memory_space<vmem>>, vector<1x3x128xbf16>
      %227 = vector.shape_cast %226 : vector<1x3x128xbf16> to vector<3x128xbf16>
      %cst_152 = arith.constant dense<0.000000e+00> : vector<48x128xf32>
      %228 = tpu.matmul %225, %227, %cst_152 {dimension_numbers = #tpu.dot_dimension_numbers<[1], [0], [0], [1], [0, 0, 1, 1], [], []>} : vector<48x3xbf16>, vector<3x128xbf16>, vector<48x128xf32> -> vector<48x128xf32>
      %229 = arith.addf %216, %228 : vector<48x128xf32>
      %230 = vector.extract_strided_slice %224 {offsets = [0, 0], sizes = [48, 3], strides = [1, 1]} : vector<51x3xbf16> to vector<48x3xbf16>
      %c36 = arith.constant 36 : index
      %c0_153 = arith.constant 0 : index
      %c0_154 = arith.constant 0 : index
      %231 = vector.load %arg4[%c36, %c0_153, %c0_154] : memref<49x3x128xbf16, #tpu.memory_space<vmem>>, vector<1x3x128xbf16>
      %232 = vector.shape_cast %231 : vector<1x3x128xbf16> to vector<3x128xbf16>
      %cst_155 = arith.constant dense<0.000000e+00> : vector<48x128xf32>
      %233 = tpu.matmul %230, %232, %cst_155 {dimension_numbers = #tpu.dot_dimension_numbers<[1], [0], [0], [1], [0, 0, 1, 1], [], []>} : vector<48x3xbf16>, vector<3x128xbf16>, vector<48x128xf32> -> vector<48x128xf32>
      %234 = arith.addf %229, %233 : vector<48x128xf32>
      %235 = vector.extract_strided_slice %221 {offsets = [1, 0], sizes = [48, 3], strides = [1, 1]} : vector<51x3xbf16> to vector<48x3xbf16>
      %c37 = arith.constant 37 : index
      %c0_156 = arith.constant 0 : index
      %c0_157 = arith.constant 0 : index
      %236 = vector.load %arg4[%c37, %c0_156, %c0_157] : memref<49x3x128xbf16, #tpu.memory_space<vmem>>, vector<1x3x128xbf16>
      %237 = vector.shape_cast %236 : vector<1x3x128xbf16> to vector<3x128xbf16>
      %cst_158 = arith.constant dense<0.000000e+00> : vector<48x128xf32>
      %238 = tpu.matmul %235, %237, %cst_158 {dimension_numbers = #tpu.dot_dimension_numbers<[1], [0], [0], [1], [0, 0, 1, 1], [], []>} : vector<48x3xbf16>, vector<3x128xbf16>, vector<48x128xf32> -> vector<48x128xf32>
      %239 = arith.addf %234, %238 : vector<48x128xf32>
      %240 = vector.extract_strided_slice %224 {offsets = [1, 0], sizes = [48, 3], strides = [1, 1]} : vector<51x3xbf16> to vector<48x3xbf16>
      %c38 = arith.constant 38 : index
      %c0_159 = arith.constant 0 : index
      %c0_160 = arith.constant 0 : index
      %241 = vector.load %arg4[%c38, %c0_159, %c0_160] : memref<49x3x128xbf16, #tpu.memory_space<vmem>>, vector<1x3x128xbf16>
      %242 = vector.shape_cast %241 : vector<1x3x128xbf16> to vector<3x128xbf16>
      %cst_161 = arith.constant dense<0.000000e+00> : vector<48x128xf32>
      %243 = tpu.matmul %240, %242, %cst_161 {dimension_numbers = #tpu.dot_dimension_numbers<[1], [0], [0], [1], [0, 0, 1, 1], [], []>} : vector<48x3xbf16>, vector<3x128xbf16>, vector<48x128xf32> -> vector<48x128xf32>
      %244 = arith.addf %239, %243 : vector<48x128xf32>
      %245 = vector.extract_strided_slice %221 {offsets = [2, 0], sizes = [48, 3], strides = [1, 1]} : vector<51x3xbf16> to vector<48x3xbf16>
      %c39 = arith.constant 39 : index
      %c0_162 = arith.constant 0 : index
      %c0_163 = arith.constant 0 : index
      %246 = vector.load %arg4[%c39, %c0_162, %c0_163] : memref<49x3x128xbf16, #tpu.memory_space<vmem>>, vector<1x3x128xbf16>
      %247 = vector.shape_cast %246 : vector<1x3x128xbf16> to vector<3x128xbf16>
      %cst_164 = arith.constant dense<0.000000e+00> : vector<48x128xf32>
      %248 = tpu.matmul %245, %247, %cst_164 {dimension_numbers = #tpu.dot_dimension_numbers<[1], [0], [0], [1], [0, 0, 1, 1], [], []>} : vector<48x3xbf16>, vector<3x128xbf16>, vector<48x128xf32> -> vector<48x128xf32>
      %249 = arith.addf %244, %248 : vector<48x128xf32>
      %250 = vector.extract_strided_slice %224 {offsets = [2, 0], sizes = [48, 3], strides = [1, 1]} : vector<51x3xbf16> to vector<48x3xbf16>
      %c40 = arith.constant 40 : index
      %c0_165 = arith.constant 0 : index
      %c0_166 = arith.constant 0 : index
      %251 = vector.load %arg4[%c40, %c0_165, %c0_166] : memref<49x3x128xbf16, #tpu.memory_space<vmem>>, vector<1x3x128xbf16>
      %252 = vector.shape_cast %251 : vector<1x3x128xbf16> to vector<3x128xbf16>
      %cst_167 = arith.constant dense<0.000000e+00> : vector<48x128xf32>
      %253 = tpu.matmul %250, %252, %cst_167 {dimension_numbers = #tpu.dot_dimension_numbers<[1], [0], [0], [1], [0, 0, 1, 1], [], []>} : vector<48x3xbf16>, vector<3x128xbf16>, vector<48x128xf32> -> vector<48x128xf32>
      %254 = arith.addf %249, %253 : vector<48x128xf32>
      %255 = vector.extract_strided_slice %221 {offsets = [3, 0], sizes = [48, 3], strides = [1, 1]} : vector<51x3xbf16> to vector<48x3xbf16>
      %c41 = arith.constant 41 : index
      %c0_168 = arith.constant 0 : index
      %c0_169 = arith.constant 0 : index
      %256 = vector.load %arg4[%c41, %c0_168, %c0_169] : memref<49x3x128xbf16, #tpu.memory_space<vmem>>, vector<1x3x128xbf16>
      %257 = vector.shape_cast %256 : vector<1x3x128xbf16> to vector<3x128xbf16>
      %cst_170 = arith.constant dense<0.000000e+00> : vector<48x128xf32>
      %258 = tpu.matmul %255, %257, %cst_170 {dimension_numbers = #tpu.dot_dimension_numbers<[1], [0], [0], [1], [0, 0, 1, 1], [], []>} : vector<48x3xbf16>, vector<3x128xbf16>, vector<48x128xf32> -> vector<48x128xf32>
      %259 = arith.addf %254, %258 : vector<48x128xf32>
      %c2_i32_171 = arith.constant 2 : i32
      %260 = arith.muli %c2_i32_171, %arg8 : i32
      %c6_i32 = arith.constant 6 : i32
      %261 = arith.addi %260, %c6_i32 : i32
      %c0_172 = arith.constant 0 : index
      %262 = arith.index_cast %261 : i32 to index
      %c0_173 = arith.constant 0 : index
      %c0_174 = arith.constant 0 : index
      %263 = vector.load %arg2[%c0_172, %262, %c0_173, %c0_174] : memref<1x102x51x3xbf16, #tpu.memory_space<vmem>>, vector<1x1x51x3xbf16>
      %264 = vector.shape_cast %263 : vector<1x1x51x3xbf16> to vector<51x3xbf16>
      %c0_175 = arith.constant 0 : index
      %265 = arith.index_cast %261 : i32 to index
      %c0_176 = arith.constant 0 : index
      %c0_177 = arith.constant 0 : index
      %266 = vector.load %arg3[%c0_175, %265, %c0_176, %c0_177] : memref<1x102x51x3xbf16, #tpu.memory_space<vmem>>, vector<1x1x51x3xbf16>
      %267 = vector.shape_cast %266 : vector<1x1x51x3xbf16> to vector<51x3xbf16>
      %268 = vector.extract_strided_slice %264 {offsets = [0, 0], sizes = [48, 3], strides = [1, 1]} : vector<51x3xbf16> to vector<48x3xbf16>
      %c42 = arith.constant 42 : index
      %c0_178 = arith.constant 0 : index
      %c0_179 = arith.constant 0 : index
      %269 = vector.load %arg4[%c42, %c0_178, %c0_179] : memref<49x3x128xbf16, #tpu.memory_space<vmem>>, vector<1x3x128xbf16>
      %270 = vector.shape_cast %269 : vector<1x3x128xbf16> to vector<3x128xbf16>
      %cst_180 = arith.constant dense<0.000000e+00> : vector<48x128xf32>
      %271 = tpu.matmul %268, %270, %cst_180 {dimension_numbers = #tpu.dot_dimension_numbers<[1], [0], [0], [1], [0, 0, 1, 1], [], []>} : vector<48x3xbf16>, vector<3x128xbf16>, vector<48x128xf32> -> vector<48x128xf32>
      %272 = arith.addf %259, %271 : vector<48x128xf32>
      %273 = vector.extract_strided_slice %267 {offsets = [0, 0], sizes = [48, 3], strides = [1, 1]} : vector<51x3xbf16> to vector<48x3xbf16>
      %c43 = arith.constant 43 : index
      %c0_181 = arith.constant 0 : index
      %c0_182 = arith.constant 0 : index
      %274 = vector.load %arg4[%c43, %c0_181, %c0_182] : memref<49x3x128xbf16, #tpu.memory_space<vmem>>, vector<1x3x128xbf16>
      %275 = vector.shape_cast %274 : vector<1x3x128xbf16> to vector<3x128xbf16>
      %cst_183 = arith.constant dense<0.000000e+00> : vector<48x128xf32>
      %276 = tpu.matmul %273, %275, %cst_183 {dimension_numbers = #tpu.dot_dimension_numbers<[1], [0], [0], [1], [0, 0, 1, 1], [], []>} : vector<48x3xbf16>, vector<3x128xbf16>, vector<48x128xf32> -> vector<48x128xf32>
      %277 = arith.addf %272, %276 : vector<48x128xf32>
      %278 = vector.extract_strided_slice %264 {offsets = [1, 0], sizes = [48, 3], strides = [1, 1]} : vector<51x3xbf16> to vector<48x3xbf16>
      %c44 = arith.constant 44 : index
      %c0_184 = arith.constant 0 : index
      %c0_185 = arith.constant 0 : index
      %279 = vector.load %arg4[%c44, %c0_184, %c0_185] : memref<49x3x128xbf16, #tpu.memory_space<vmem>>, vector<1x3x128xbf16>
      %280 = vector.shape_cast %279 : vector<1x3x128xbf16> to vector<3x128xbf16>
      %cst_186 = arith.constant dense<0.000000e+00> : vector<48x128xf32>
      %281 = tpu.matmul %278, %280, %cst_186 {dimension_numbers = #tpu.dot_dimension_numbers<[1], [0], [0], [1], [0, 0, 1, 1], [], []>} : vector<48x3xbf16>, vector<3x128xbf16>, vector<48x128xf32> -> vector<48x128xf32>
      %282 = arith.addf %277, %281 : vector<48x128xf32>
      %283 = vector.extract_strided_slice %267 {offsets = [1, 0], sizes = [48, 3], strides = [1, 1]} : vector<51x3xbf16> to vector<48x3xbf16>
      %c45 = arith.constant 45 : index
      %c0_187 = arith.constant 0 : index
      %c0_188 = arith.constant 0 : index
      %284 = vector.load %arg4[%c45, %c0_187, %c0_188] : memref<49x3x128xbf16, #tpu.memory_space<vmem>>, vector<1x3x128xbf16>
      %285 = vector.shape_cast %284 : vector<1x3x128xbf16> to vector<3x128xbf16>
      %cst_189 = arith.constant dense<0.000000e+00> : vector<48x128xf32>
      %286 = tpu.matmul %283, %285, %cst_189 {dimension_numbers = #tpu.dot_dimension_numbers<[1], [0], [0], [1], [0, 0, 1, 1], [], []>} : vector<48x3xbf16>, vector<3x128xbf16>, vector<48x128xf32> -> vector<48x128xf32>
      %287 = arith.addf %282, %286 : vector<48x128xf32>
      %288 = vector.extract_strided_slice %264 {offsets = [2, 0], sizes = [48, 3], strides = [1, 1]} : vector<51x3xbf16> to vector<48x3xbf16>
      %c46 = arith.constant 46 : index
      %c0_190 = arith.constant 0 : index
      %c0_191 = arith.constant 0 : index
      %289 = vector.load %arg4[%c46, %c0_190, %c0_191] : memref<49x3x128xbf16, #tpu.memory_space<vmem>>, vector<1x3x128xbf16>
      %290 = vector.shape_cast %289 : vector<1x3x128xbf16> to vector<3x128xbf16>
      %cst_192 = arith.constant dense<0.000000e+00> : vector<48x128xf32>
      %291 = tpu.matmul %288, %290, %cst_192 {dimension_numbers = #tpu.dot_dimension_numbers<[1], [0], [0], [1], [0, 0, 1, 1], [], []>} : vector<48x3xbf16>, vector<3x128xbf16>, vector<48x128xf32> -> vector<48x128xf32>
      %292 = arith.addf %287, %291 : vector<48x128xf32>
      %293 = vector.extract_strided_slice %267 {offsets = [2, 0], sizes = [48, 3], strides = [1, 1]} : vector<51x3xbf16> to vector<48x3xbf16>
      %c47 = arith.constant 47 : index
      %c0_193 = arith.constant 0 : index
      %c0_194 = arith.constant 0 : index
      %294 = vector.load %arg4[%c47, %c0_193, %c0_194] : memref<49x3x128xbf16, #tpu.memory_space<vmem>>, vector<1x3x128xbf16>
      %295 = vector.shape_cast %294 : vector<1x3x128xbf16> to vector<3x128xbf16>
      %cst_195 = arith.constant dense<0.000000e+00> : vector<48x128xf32>
      %296 = tpu.matmul %293, %295, %cst_195 {dimension_numbers = #tpu.dot_dimension_numbers<[1], [0], [0], [1], [0, 0, 1, 1], [], []>} : vector<48x3xbf16>, vector<3x128xbf16>, vector<48x128xf32> -> vector<48x128xf32>
      %297 = arith.addf %292, %296 : vector<48x128xf32>
      %298 = vector.extract_strided_slice %264 {offsets = [3, 0], sizes = [48, 3], strides = [1, 1]} : vector<51x3xbf16> to vector<48x3xbf16>
      %c48 = arith.constant 48 : index
      %c0_196 = arith.constant 0 : index
      %c0_197 = arith.constant 0 : index
      %299 = vector.load %arg4[%c48, %c0_196, %c0_197] : memref<49x3x128xbf16, #tpu.memory_space<vmem>>, vector<1x3x128xbf16>
      %300 = vector.shape_cast %299 : vector<1x3x128xbf16> to vector<3x128xbf16>
      %cst_198 = arith.constant dense<0.000000e+00> : vector<48x128xf32>
      %301 = tpu.matmul %298, %300, %cst_198 {dimension_numbers = #tpu.dot_dimension_numbers<[1], [0], [0], [1], [0, 0, 1, 1], [], []>} : vector<48x3xbf16>, vector<3x128xbf16>, vector<48x128xf32> -> vector<48x128xf32>
      %302 = arith.addf %297, %301 : vector<48x128xf32>
      %c0_199 = arith.constant 0 : index
      %c0_200 = arith.constant 0 : index
      %303 = vector.load %arg5[%c0_199, %c0_200] : memref<1x128xf32, #tpu.memory_space<vmem>>, vector<1x128xf32>
      %304 = vector.broadcast %303 : vector<1x128xf32> to vector<48x128xf32>
      %305 = arith.mulf %302, %304 : vector<48x128xf32>
      %c0_201 = arith.constant 0 : index
      %c0_202 = arith.constant 0 : index
      %306 = vector.load %arg6[%c0_201, %c0_202] : memref<1x128xf32, #tpu.memory_space<vmem>>, vector<1x128xf32>
      %307 = vector.broadcast %306 : vector<1x128xf32> to vector<48x128xf32>
      %308 = arith.addf %305, %307 : vector<48x128xf32>
      %cst_203 = arith.constant 0.000000e+00 : f32
      %309 = vector.broadcast %cst_203 : f32 to vector<48x128xf32>
      %310 = arith.maximumf %308, %309 : vector<48x128xf32>
      %311 = arith.truncf %310 : vector<48x128xf32> to vector<48x128xbf16>
      %c0_204 = arith.constant 0 : index
      %312 = arith.index_cast %arg8 : i32 to index
      %c0_205 = arith.constant 0 : index
      %c0_206 = arith.constant 0 : index
      %313 = vector.load %arg7[%c0_204, %312, %c0_205, %c0_206] : memref<1x48x48x128xbf16, #tpu.memory_space<vmem>>, vector<1x1x48x128xbf16>
      %314 = vector.shape_cast %313 : vector<1x1x48x128xbf16> to vector<48x128xbf16>
      %315 = vector.shape_cast %311 : vector<48x128xbf16> to vector<1x1x48x128xbf16>
      tpu.vector_store %arg7[%c0_204, %312, %c0_205, %c0_206], %315 {strides = array<i32>} : memref<1x48x48x128xbf16, #tpu.memory_space<vmem>>, vector<1x1x48x128xbf16>,
    }
    %c48_i32_0 = arith.constant 48 : i32
    return
  }
  func.func @transform_0(%arg0: i32, %arg1: i32) -> (i32, i32, i32, i32) {
    %c0_i32 = arith.constant 0 : i32
    %c0_i32_0 = arith.constant 0 : i32
    %c0_i32_1 = arith.constant 0 : i32
    %c0_i32_2 = arith.constant 0 : i32
    return %arg0, %c0_i32, %c0_i32_0, %c0_i32_1 : i32, i32, i32, i32
  }
  func.func @transform_1(%arg0: i32, %arg1: i32) -> (i32, i32, i32, i32) {
    %c0_i32 = arith.constant 0 : i32
    %c0_i32_0 = arith.constant 0 : i32
    %c0_i32_1 = arith.constant 0 : i32
    %c0_i32_2 = arith.constant 0 : i32
    return %arg0, %c0_i32, %c0_i32_0, %c0_i32_1 : i32, i32, i32, i32
  }
  func.func @transform_2(%arg0: i32, %arg1: i32) -> (i32, i32, i32) {
    %c0_i32 = arith.constant 0 : i32
    %c0_i32_0 = arith.constant 0 : i32
    %c0_i32_1 = arith.constant 0 : i32
    return %c0_i32, %c0_i32_0, %arg1 : i32, i32, i32
  }
  func.func @transform_3(%arg0: i32, %arg1: i32) -> (i32, i32) {
    %c0_i32 = arith.constant 0 : i32
    %c0_i32_0 = arith.constant 0 : i32
    return %c0_i32, %arg1 : i32, i32
  }
  func.func @transform_4(%arg0: i32, %arg1: i32) -> (i32, i32) {
    %c0_i32 = arith.constant 0 : i32
    %c0_i32_0 = arith.constant 0 : i32
    return %c0_i32, %arg1 : i32, i32
  }
  func.func @transform_5(%arg0: i32, %arg1: i32) -> (i32, i32, i32, i32) {
    %c0_i32 = arith.constant 0 : i32
    %c0_i32_0 = arith.constant 0 : i32
    %c0_i32_1 = arith.constant 0 : i32
    return %arg0, %c0_i32, %c0_i32_0, %arg1 : i32, i32, i32, i32
  }
}

</mosaic_0001>

<bundles_post_ra>
// kernel: tpu_custom_call.1
= control target key start
LH: loop header
LB: loop body
LE: loop exit
PB: predicated region body
PF: predicated region fallthrough
CT: control target
= control target key end

     0   :  { %10 = vsyncpa [#allocation3], 0  ;;  %s8936_s0 = inlined_call_operand.vmem [shape: bf16[2,102,51,3], index: 0, kind: input, shape index: {}]   ;;  %s8937_s1 = inlined_call_operand.vmem [shape: bf16[2,102,51,3], index: 1, kind: input, shape index: {}]   ;;  %s8938_s2 = inlined_call_operand.vmem [shape: bf16[49,3,128], index: 2, kind: input, shape index: {}]   ;;  %s8939_s3 = inlined_call_operand.vmem [shape: f32[1,128], index: 3, kind: input, shape index: {}]   ;;  %s8940_s4 = inlined_call_operand.vmem [shape: f32[1,128], index: 4, kind: input, shape index: {}]   ;;  %s8941_s5 = inlined_call_operand.hbm [shape: bf16[2,48,48,128], index: 5, kind: output, shape index: {}]  }
   0x1   :  { %12 = vsyncpa [#allocation3 + $0x1], 0  ;;  %s7421_s18 = smov 0   ;;  %s7423_s19 = smov 0  }
   0x2   :  { %s7425_s20 = smov 0   ;;  %s7427_s21 = smov 0  }
   0x3   :  { %s7429_s22 = smov 0   ;;  %s7431_s23 = smov 0  }
   0x4 LB: > { %s5298_s24 = sadd.s32 4294967295, %s7379_s23   ;;  %s5299_s25 = sadd.s32 4294967294, %s7379_s23   ;;  %s7379_s23 = sphi %s7431_s23, %s18_s23   ;;  %s7375_s22 = sphi %s7429_s22, %s8948_s22   ;;  %s7371_s21 = sphi %s7427_s21, %s8947_s21   ;;  %s7367_s20 = sphi %s7425_s20, %s8946_s20   ;;  %s7363_s19 = sphi %s7423_s19, %s8945_s19   ;;  %s7359_s18 = sphi %s7421_s18, %s8944_s18  }
   0x5   : > { %s30_s26 = sadd.s32 1, %s7375_s22  ;;  %s169_s27 = sadd.s32 1, %s7367_s20 }
   0x6   : > { %p32_p0 = scmp.ge.s32.totalorder %s30_s26, 2  ;;  %p179_p1 = scmp.ne.s32.totalorder %s7367_s20, %s7363_s19 }
   0x7   : > { %p180_p2 = scmp.eq.s32.totalorder %s5298_s24, 1  ;;  %p185_p3 = scmp.ne.s32.totalorder %s7363_s19, %s7359_s18 }
   0x8   : > { %s8950_s26 = smov (%p32_p0, %s30_s26), 0  ;;  %p186_p5 = scmp.eq.s32.totalorder %s5299_s25, 1 }
   0x9   : > { %p7461_p4 = por %p180_p2, %p179_p1  ;;  %s164_s29 = ssub.s32 %s7375_s22, %s8950_s26 }
   0xa   : > { %p5305_p6 = scmp.ge.s32.totalorder %s7379_s23, 1  ;;  %p167_p7 = scmp.eq.s32.totalorder %s164_s29, 0 }
   0xb   : > { %p7468_p8 = por %p186_p5, %p185_p3  ;;  %p239_p9 = scmp.lt.s32.totalorder %s7379_s23, 3 }
   0xc   : > { %s7474_s6 = scalar_select %p167_p7, %s7367_s20, %s169_s27  }
   0xd   : > { %p240_p10 = pnand %p5305_p6, %p239_p9 }
   0xe   : > { %s279_s7 = sand.u32 (!%p240_p10), 1, %s7363_s19   ;;  %p282_p11 = scmp.lt.s32.totalorder (!%p240_p10), %s7371_s21, 1 }
   0xf   : > { %243 = sbr.rel (%p240_p10) target bundleno = 858 (0x35a), region = 40  ;;  %s7494_s24 = smov (!%p240_p10), 0  }
  0x10   : > { %s7480_s8 = smul.u32 (!%p240_p10), 1152, %s279_s7 }
  0x12   : > { %s281_s17 = scalar_lea.vmem (!%p240_p10), [#allocation2], %s7480_s8 }
  0x16   : > { %s283_s9 = scalar_select %p282_p11, %s7371_s21, 1 }
  0x18   : > { %s7164_s10 = smul.u32 2856, %s283_s9 }
  0x1a   : > { %s7486_s13 = scalar_lea.vmem %s8936_s0, %s7164_s10  ;;  %s7491_s16 = scalar_lea.vmem %s8937_s1, %s7164_s10 }
  0x1b LB: >> { %v5312_v0 = vld [vmem:[%s8938_s2 + $0x2] sm:$0x3]  ;;  %vm357_vm0 = vcmask 1040384   ;;  %vm358_vm1 = vcmask 1041408   ;;  %v7385_v1 = vmov 0.0   ;;  %v7386_v2 = vmov 65535   ;;  %s7383_s24 = sphi %s7494_s24, %s308_s24  }
  0x1c   : >> { %5905 = vmatprep.subr.bf16.mxu1 %v7385_v1  ;;  %v359_v3 = vsel %vm357_vm0, 4294967295, %v7386_v2  ;;  %6241 = vmatprep.subr.bf16.mxu0 %v7385_v1  ;;  %vm7387_vm2 = vmmov 0   ;;  %s5683_s29 = smul.u32 56, %s7383_s24  ;;  %v329_v5 = vld [vmem:[%s8938_s2] sm:$0x3]  ;;  %vm347_vm3 = vcmask 23552  }
  0x1d   : >> { %v7504_v4 = vsel %vm358_vm1, %v359_v3, 0  ;;  %5907 = vmatprep.mubr.msk.bf16.mxu1 %vm7387_vm2, %v7385_v1  ;;  %v5492_v6 = vld [vmem:[%s8938_s2 + $0x30] sm:$0x3]  ;;  %6243 = vmatprep.mubr.msk.bf16.mxu0 %vm7387_vm2, %v7385_v1  ;;  %v5497_v16 = vld [vmem:[%s8938_s2 + $0x32] sm:$0x3]  ;;  %vm718_vm5 = vcmask 1046528  }
  0x1e   : >> { %v362_v7 = vand.u32 %v5312_v0, %v7504_v4  ;;  %v7519_v8 = vand.u32 %v5492_v6, %v7504_v4  ;;  %s7522_s14 = scalar_lea.vmem %s7491_s16, %s5683_s29  ;;  %v446_v10 = vand.u32 %v7504_v4, %v329_v5  ;;  %s7540_s15 = scalar_lea.vmem %s7486_s13, %s5683_s29  ;;  %vm510_vm4 = vsmask.f32 7424  ;;  %v5501_v28 = vld [vmem:[%s8938_s2 + $0x34] sm:$0x3]  ;;  %v5325_v32 = vld [vmem:[%s8938_s2 + $0x4] sm:$0x3] }
  0x1f   : >> { %v7525_v9 = vld [vmem:[%s7522_s14] sm:$0xff]   ;;  %v7532_v11 = vld [vmem:[%s7522_s14 + $0x54] sm:$0xff]   ;;  %v7554_v19 = vld [vmem:[%s7522_s14 + $0x8] sm:$0xff]   ;;  %v2765_v21 = vand.u32 %v5497_v16, %v7504_v4  ;;  %v2849_v30 = vand.u32 %v5501_v28, %v7504_v4  ;;  %v546_v34 = vand.u32 %v5325_v32, %v7504_v4  ;;  %vm887_vm6 = vsmask.f32 6400  ;;  %s5691_s9 = smul.u32 24, %s7383_s24 }
  0x20   : >> { %5906 = vmatpush3.bf16.msra.mxu1 %v362_v7  ;;  %6242 = vmatpush3.bf16.msra.mxu0 %v7519_v8  ;;  %v7535_v12 = vld [vmem:[%s7522_s14 + $0x5c] sm:$0xff]   ;;  %v2646_v13 = vshrl.u32 %v7532_v11, 16  ;;  %v2648_v14 = vshll.u32 %v7532_v11, 16  ;;  %v7563_v23 = vld [vmem:[%s7540_s15 + $0x54] sm:$0xff]   ;;  %v7588_v31 = vld [vmem:[%s7540_s15 + $0x64] sm:$0xff]   ;;  %v803_v39 = vrot.slane %v7525_v9, 1 }
  0x21   : >> { %5919 = vmatprep.subr.bf16.mxu1 %v7385_v1  ;;  %6255 = vmatprep.subr.bf16.mxu0 %v7385_v1  ;;  %v2652_v15 = vshll.u32 %v7535_v12, 16  ;;  %v7568_v24 = vld [vmem:[%s7540_s15 + $0x5c] sm:$0xff]   ;;  %v7574_v25 = vld [vmem:[%s7522_s14 + $0x10] sm:$0xff]   ;;  %v2748_v26 = vrot.slane %v7563_v23, 1  ;;  %v2751_v35 = vrot.slane %v7588_v31, 1  ;;  %v7611_v38 = vld [vmem:[%s7540_s15 + $0x8] sm:$0xff]   ;;  %s8870_s10 = scalar_lea.vmem %s281_s17, %s5691_s9 [#allocation2] }
  0x22   : >> { %v2650_v17 = vrot.slane %v2648_v14, 1  ;;  %v2749_v27 = vrot.slane %v7568_v24, 1  ;;  %v7595_v33 = vld [vmem:[%s7540_s15] sm:$0xff]   ;;  %v7605_v36 = vld [vmem:[%s7540_s15 + $0x6c] ss:$0 sps:$4 sm:$0x33]  }
  0x23   : >> { %5908 = vmatmul.mubr.msk.bf16.vlgmr.msra.gmra.mrb[0].mxu1 %vm347_vm3, %v7525_v9  ;;  %v7551_v18 = vrot.slane %v2652_v15, 1  ;;  %v7616_v40 = vld [vmem:[%s7540_s15 + $0x10] sm:$0xff]   ;;  %v511_v41 = vshrl.u32 %v7595_v33, 16  ;;  %v521_v42 = vshrl.u32 %v7611_v38, 16  ;;  %v804_v43 = vrot.slane %v7554_v19, 1  ;;  %s308_s24 = sadd.s32 1, %s7383_s24  }
  0x24   : >> { %5920 = vmatpush3.bf16.msra.mxu1 %v446_v10  ;;  %5911 = vmatprep.mubr.msk.bf16.mxu1 %vm7387_vm2, %v7385_v1  ;;  %v2651_v20 = vor.u32 %v2650_v17, %v2646_v13  ;;  %v2750_v29 = vsel %vm718_vm5, %v2748_v26, %v2749_v27  ;;  %v2752_v37 = vsel %vm718_vm5, %v2749_v27, %v2751_v35  ;;  %v2753_v44 = vrot.slane %v7605_v36, 1  ;;  %v7631_v49 = vld [vmem:[%s7540_s15 + $0x18] ss:$0 sps:$4 sm:$0x33]   ;;  %v5505_v0 = vld [vmem:[%s8938_s2 + $0x36] sm:$0x3] }
  0x25   : >> { %5933 = vmatprep.subr.bf16.mxu1 %v7385_v1  ;;  %v513_v45 = vshll.u32 %v7595_v33, 16  ;;  %v517_v46 = vshll.u32 %v7611_v38, 16  ;;  %v806_v47 = vrot.slane %v7574_v25, 1  ;;  %v891_v48 = vrot.slane %v521_v42, 1  ;;  %v5330_v15 = vld [vmem:[%s8938_s2 + $0x6] sm:$0x3] }
  0x26   : >> { %v2655_v22 = vsel %vm510_vm4, %v2651_v20, %v7551_v18  ;;  %v7634_v50 = vsel %vm718_vm5, %v803_v39, %v804_v43  ;;  %v888_v52 = vrot.slane %v511_v41, 1  ;;  %v528_v53 = vshrl.u32 %v7616_v40, 16  ;;  %p305_p12 = scmp.ge.s32.totalorder %s308_s24, 48  }
  0x27   : >> { %6244 = vmatmul.mubr.msk.bf16.vlgmr.msra.gmra.mrb[0].mxu0 %vm347_vm3, %v2655_v22  ;;  %v7639_v51 = vsel %vm718_vm5, %v804_v43, %v806_v47  ;;  %v889_v54 = vrot.slane %v513_v45, 2  ;;  %v892_v55 = vrot.slane %v517_v46, 2  ;;  %v524_v56 = vshll.u32 %v7616_v40, 16  ;;  %s7165_s11 = smul.u32 (%p305_p12), 18432, %s7371_s21  ;;  %s8890_s24 = scalar_lea.sflag (%p305_p12), [#allocation3], %s279_s7 }
  0x28   : >> { %6256 = vmatpush3.bf16.msra.mxu0 %v2765_v21  ;;  %6257 = vmatprep.mubr.msk.bf16.mxu0 %vm7387_vm2, %v7385_v1  ;;  %v2754_v57 = vsel %vm718_vm5, %v2751_v35, %v2753_v44  ;;  %v895_v60 = vrot.slane %v528_v53, 1  ;;  %v532_v61 = vshll.u32 %v7631_v49, 16  ;;  %v899_v3 = vshrl.u32 %v7631_v49, 16  ;;  %v7246_v21 = vld [vmem:[%s7522_s14 + $0x64] sm:$0xff]   ;;  %s7388_s21 = smov (%p305_p12), [#allocation2]  }
  0x29   : >> { %6269 = vmatprep.subr.bf16.mxu0 %v7385_v1  ;;  %v890_v58 = vor.u32 %v889_v54, %v888_v52  ;;  %v893_v59 = vor.u32 %v892_v55, %v891_v48  ;;  %v896_v62 = vrot.slane %v524_v56, 2  ;;  %v2832_v6 = vrot.slane %v7532_v11, 1  ;;  %s8884_s25 = scalar_lea.hbm (%p305_p12), %s8941_s5, %s7165_s11  ;;  %s7301_s8 = sshll.u32 (%p305_p12), %s7388_s21, 4  ;;  %s7302_s8 = int_to_ptr.vmem [resolvable:$false] %s7301_s8 }
  0x2a   : >> { %v902_v5 = vrot.slane %v532_v61, 2  ;;  %v2833_v7 = vrot.slane %v7535_v12, 1  ;;  %v515_v10 = vrot.slane %v513_v45, 1  ;;  %v901_v14 = vrot.slane %v899_v3, 1  ;;  %s7303_s16 = scalar_lea.vmem (%p305_p12), %s7302_s8, 36864 }
  0x2b   : >> { %5912 = vmatmul.mubr.msk.bf16.gmra.mrb[4].mxu1 %vm347_vm3, %v7554_v19  ;;  %v7650_v63 = vsel %vm887_vm6, %v890_v58, %v893_v59  ;;  %v897_v2 = vor.u32 %v896_v62, %v895_v60  ;;  %v2943_v11 = vand.u32 %v5505_v0, %v7504_v4  ;;  %v519_v20 = vrot.slane %v517_v46, 1 }
  0x2c   : >> { %5915 = vmatprep.mubr.msk.bf16.mxu1 %vm7387_vm2, %v7385_v1  ;;  %v903_v16 = vor.u32 %v902_v5, %v901_v14  ;;  %v2834_v17 = vsel %vm718_vm5, %v2832_v6, %v2833_v7  ;;  %v516_v12 = vor.u32 %v515_v10, %v511_v41  ;;  %v618_v26 = vshll.u32 %v7525_v9, 16 }
  0x2d   : >> { %v7662_v13 = vsel %vm887_vm6, %v893_v59, %v897_v2  ;;  %v651_v28 = vand.u32 %v5330_v15, %v7504_v4  ;;  %v526_v32 = vrot.slane %v524_v56, 1  ;;  %v2543_v41 = vshll.u32 %v7563_v23, 16 }
  0x2e   : >> { %v7675_v22 = vsel %vm887_vm6, %v897_v2, %v903_v16  ;;  %v520_v27 = vsel %vm510_vm4, %v516_v12, %v519_v20  ;;  %v2547_v43 = vshll.u32 %v7568_v24, 16  ;;  %v2551_v44 = vshrl.u32 %v7568_v24, 16  ;;  %v5527_v2 = vld [vmem:[%s8938_s2 + $0x38] sm:$0x3] }
  0x2f   : >> { %v530_v46 = vor.u32 %v528_v53, %v526_v32  ;;  %v2917_v48 = vrot.slane %v2543_v41, 2  ;;  %v534_v54 = vrot.slane %v532_v61, 1  ;;  %v620_v58 = vrot.slane %v618_v26, 1 }
  0x30   : >> { %v2919_v55 = vrot.slane %v2551_v44, 1  ;;  %v2920_v56 = vrot.slane %v2547_v43, 2  ;;  %v622_v59 = vshll.u32 %v7554_v19, 16  ;;  %v2554_v62 = vshll.u32 %v7588_v31, 16 }
  0x31   : >> { %v535_v60 = vsel %vm510_vm4, %v530_v46, %v534_v54  ;;  %v2558_v0 = vshrl.u32 %v7588_v31, 16  ;;  %v3055_v6 = vand.u32 %v5527_v2, %v7504_v4  ;;  %v629_v12 = vshll.u32 %v7574_v25, 16  ;;  %v7774_v54 = vld [vmem:[%s7540_s15 + $0x70] sm:$0xff]  }
  0x32   : >> { %v2921_v61 = vor.u32 %v2920_v56, %v2919_v55  ;;  %v624_v3 = vrot.slane %v622_v59, 1  ;;  %v2924_v14 = vrot.slane %v2554_v62, 2  ;;  %v719_v56 = vrot.slane %v7595_v33, 1 }
  0x33   : >> { %5916 = vmatmul.mubr.msk.bf16.gmra.mrb[8].mxu1 %vm347_vm3, %v7574_v25  ;;  %6258 = vmatmul.mubr.msk.bf16.vlgmr.msra.gmra.mrb[0].mxu0 %vm347_vm3, %v2750_v29  ;;  %v2835_v29 = vrot.slane %v7246_v21, 1  ;;  %v2923_v10 = vrot.slane %v2558_v0, 1  ;;  %v2927_v21 = vshrl.u32 %v7605_v36, 16  ;;  %v724_v2 = vrot.slane %v7631_v49, 1  ;;  %v5343_v49 = vld [vmem:[%s8938_s2 + $0xc] sm:$0x3] }
  0x34   : >> { %5921 = vmatprep.mubr.msk.bf16.mxu1 %vm7387_vm2, %v7385_v1  ;;  %6270 = vmatpush3.bf16.msra.mxu0 %v2849_v30  ;;  %v7247_v30 = vld [vmem:[%s7522_s14 + $0x6c] ss:$0 sps:$4 sm:$0x33]  }
  0x35   : >> { %6261 = vmatprep.mubr.msk.bf16.mxu0 %vm7387_vm2, %v7385_v1  ;;  %6283 = vmatprep.subr.bf16.mxu0 %v7385_v1  ;;  %v2836_v35 = vsel %vm718_vm5, %v2833_v7, %v2835_v29  ;;  %v2837_v39 = vrot.slane %v7247_v30, 1  ;;  %v5335_v7 = vld [vmem:[%s8938_s2 + $0x8] sm:$0x3]  ;;  %v7752_v30 = vld [vmem:[%s7522_s14 + $0x18] ss:$0 sps:$4 sm:$0x33]  }
  0x36   : >> { %v736_v16 = vand.u32 %v5335_v7, %v7504_v4  ;;  %v7838_v7 = vld [vmem:[%s7522_s14 + $0x78] sm:$0xff]  }
  0x37   : >> { %v2838_v52 = vsel %vm718_vm5, %v2835_v29, %v2837_v39  ;;  %v637_v39 = vshll.u32 %v7752_v30, 16 }
  0x3b   : >> { %5922 = vmatmul.mubr.msk.bf16.vlgmr.msra.gmra.mrb[0].mxu1 %vm347_vm3, %v7595_v33  ;;  %6262 = vmatmul.mubr.msk.bf16.gmra.mrb[4].mxu0 %vm347_vm3, %v2752_v37  ;;  %v523_v37 = vor.u32 %v521_v42, %v519_v20  ;;  %v2562_v20 = vshll.u32 %v7605_v36, 16  ;;  %v7793_v33 = vld [vmem:[%s7540_s15 + $0x78] sm:$0xff]  }
  0x3c   : >> { %5934 = vmatpush3.bf16.msra.mxu1 %v546_v34  ;;  %5925 = vmatprep.mubr.msk.bf16.mxu1 %vm7387_vm2, %v7385_v1  ;;  %v2541_v34 = vshrl.u32 %v7563_v23, 16 }
  0x3d   : >> { %5947 = vmatprep.subr.bf16.mxu1 %v7385_v1  ;;  %6265 = vmatprep.mubr.msk.bf16.mxu0 %vm7387_vm2, %v7385_v1  ;;  %v527_v45 = vsel %vm510_vm4, %v523_v37, %v526_v32  ;;  %v2930_v29 = vrot.slane %v2562_v20, 2  ;;  %v633_v37 = vshrl.u32 %v7574_v25, 16 }
  0x3e   : >> { %v2916_v42 = vrot.slane %v2541_v34, 1 }
  0x40   : >> { %v2918_v53 = vor.u32 %v2917_v48, %v2916_v42  ;;  %v639_v42 = vrot.slane %v637_v39, 1 }
  0x42   : >> { %v2922_v5 = vsel %vm887_vm6, %v2918_v53, %v2921_v61  ;;  %v720_v53 = vrot.slane %v7611_v38, 1 }
  0x43   : >> { %5926 = vmatmul.mubr.msk.bf16.gmra.mrb[4].mxu1 %vm347_vm3, %v7611_v38  ;;  %6266 = vmatmul.mubr.msk.bf16.gmra.mrb[8].mxu0 %vm347_vm3, %v2754_v57  ;;  %v616_v57 = vshrl.u32 %v7525_v9, 16  ;;  %v722_v38 = vrot.slane %v7616_v40, 1 }
  0x44   : >> { %5929 = vmatprep.mubr.msk.bf16.mxu1 %vm7387_vm2, %v7385_v1  ;;  %6271 = vmatprep.mubr.msk.bf16.mxu0 %vm7387_vm2, %v7385_v1 }
  0x45   : >> { %v621_v9 = vor.u32 %v620_v58, %v616_v57  ;;  %v5339_v57 = vld [vmem:[%s8938_s2 + $0xa] sm:$0x3]  ;;  %v721_v58 = vsel %vm718_vm5, %v719_v56, %v720_v53 }
  0x46   : >> { %v820_v59 = vand.u32 %v5339_v57, %v7504_v4 }
  0x47   : >> { %v625_v15 = vsel %vm510_vm4, %v621_v9, %v624_v3  ;;  %v5541_v9 = vld [vmem:[%s8938_s2 + $0x3c] sm:$0x3] }
  0x4b   : >> { %5930 = vmatmul.mubr.msk.bf16.gmra.mrb[8].mxu1 %vm347_vm3, %v7616_v40  ;;  %6272 = vmatmul.mubr.msk.bf16.vlgmr.msra.gmra.mrb[0].mxu0 %vm347_vm3, %v2834_v17  ;;  %v626_v17 = vshrl.u32 %v7554_v19, 16  ;;  %v725_v40 = vsel %vm718_vm5, %v722_v38, %v724_v2  ;;  %v7938_v2 = vld [vmem:[%s7540_s15 + $0x1c] sm:$0xff]  }
  0x4c   : >> { %5935 = vmatprep.mubr.msk.bf16.mxu1 %vm7387_vm2, %v7385_v1  ;;  %6284 = vmatpush3.bf16.msra.mxu0 %v2943_v11  ;;  %v2925_v11 = vor.u32 %v2924_v14, %v2923_v10  ;;  %v3219_v10 = vshll.u32 %v7774_v54, 16  ;;  %v808_v14 = vrot.slane %v7752_v30, 1 }
  0x4d   : >> { %6275 = vmatprep.mubr.msk.bf16.mxu0 %vm7387_vm2, %v7385_v1  ;;  %6297 = vmatprep.subr.bf16.mxu0 %v7385_v1  ;;  %v628_v26 = vor.u32 %v626_v17, %v624_v3  ;;  %v7821_v3 = vld [vmem:[%s7522_s14 + $0x70] sm:$0xff]   ;;  %v3223_v17 = vshll.u32 %v7793_v33, 16 }
  0x4e   : >> { %v2926_v19 = vsel %vm887_vm6, %v2921_v61, %v2925_v11  ;;  %v7806_v61 = vld [vmem:[%s7540_s15 + $0x80] sm:$0xff]  }
  0x53   : >> { %5936 = vmatmul.mubr.msk.bf16.vlgmr.msra.gmra.mrb[0].mxu1 %vm347_vm3, %v520_v27  ;;  %6276 = vmatmul.mubr.msk.bf16.gmra.mrb[4].mxu0 %vm347_vm3, %v2836_v35  ;;  %v631_v27 = vrot.slane %v629_v12, 1  ;;  %v3225_v12 = vrot.slane %v3223_v17, 1 }
  0x54   : >> { %5948 = vmatpush3.bf16.msra.mxu1 %v651_v28  ;;  %5939 = vmatprep.mubr.msk.bf16.mxu1 %vm7387_vm2, %v7385_v1  ;;  %v2929_v28 = vrot.slane %v2927_v21, 1  ;;  %v5546_v21 = vld [vmem:[%s8938_s2 + $0x3e] sm:$0x3] }
  0x55   : >> { %5961 = vmatprep.subr.bf16.mxu1 %v7385_v1  ;;  %6279 = vmatprep.mubr.msk.bf16.mxu0 %vm7387_vm2, %v7385_v1  ;;  %v632_v32 = vsel %vm510_vm4, %v628_v26, %v631_v27  ;;  %v635_v46 = vor.u32 %v633_v37, %v631_v27  ;;  %v3227_v26 = vshrl.u32 %v7793_v33, 16  ;;  %v5365_v27 = vld [vmem:[%s8938_s2 + $0xe] sm:$0x3]  ;;  %v3234_v37 = vshrl.u32 %v7806_v61, 16 }
  0x56   : >> { %v2931_v35 = vor.u32 %v2930_v29, %v2929_v28  ;;  %v1027_v28 = vand.u32 %v5365_v27, %v7504_v4  ;;  %v5555_v27 = vld [vmem:[%s8938_s2 + $0x42] sm:$0x3] }
  0x57   : >> { %v640_v48 = vsel %vm510_vm4, %v635_v46, %v639_v42  ;;  %v3229_v29 = vor.u32 %v3227_v26, %v3225_v12  ;;  %v3324_v46 = vshll.u32 %v7821_v3, 16 }
  0x5b   : >> { %5940 = vmatmul.mubr.msk.bf16.gmra.mrb[4].mxu1 %vm347_vm3, %v527_v45  ;;  %6280 = vmatmul.mubr.msk.bf16.gmra.mrb[8].mxu0 %vm347_vm3, %v2838_v52  ;;  %v2932_v45 = vsel %vm887_vm6, %v2925_v11, %v2931_v35  ;;  %v5534_v52 = vld [vmem:[%s8938_s2 + $0x3a] sm:$0x3] }
  0x5c   : >> { %5943 = vmatprep.mubr.msk.bf16.mxu1 %vm7387_vm2, %v7385_v1  ;;  %6285 = vmatprep.mubr.msk.bf16.mxu0 %vm7387_vm2, %v7385_v1  ;;  %v3147_v55 = vand.u32 %v5534_v52, %v7504_v4  ;;  %v3326_v52 = vrot.slane %v3324_v46, 1 }
  0x63   : >> { %5944 = vmatmul.mubr.msk.bf16.gmra.mrb[8].mxu1 %vm347_vm3, %v535_v60  ;;  %6286 = vmatmul.mubr.msk.bf16.vlgmr.msra.gmra.mrb[0].mxu0 %vm347_vm3, %v2922_v5  ;;  %v723_v60 = vsel %vm718_vm5, %v720_v53, %v722_v38  ;;  %v3252_v5 = vand.u32 %v5541_v9, %v7504_v4 }
  0x64   : >> { %5949 = vmatprep.mubr.msk.bf16.mxu1 %vm7387_vm2, %v7385_v1  ;;  %6298 = vmatpush3.bf16.msra.mxu0 %v3055_v6  ;;  %v915_v6 = vand.u32 %v5343_v49, %v7504_v4 }
  0x65   : >> { %6289 = vmatprep.mubr.msk.bf16.mxu0 %vm7387_vm2, %v7385_v1  ;;  %6311 = vmatprep.subr.bf16.mxu0 %v7385_v1 }
  0x6b   : >> { %5950 = vmatmul.mubr.msk.bf16.vlgmr.msra.gmra.mrb[0].mxu1 %vm347_vm3, %v625_v15  ;;  %6290 = vmatmul.mubr.msk.bf16.gmra.mrb[4].mxu0 %vm347_vm3, %v2926_v19  ;;  %v3217_v15 = vshrl.u32 %v7774_v54, 16  ;;  %v3230_v19 = vshll.u32 %v7806_v61, 16 }
  0x6c   : >> { %5962 = vmatpush3.bf16.msra.mxu1 %v736_v16  ;;  %5953 = vmatprep.mubr.msk.bf16.mxu1 %vm7387_vm2, %v7385_v1  ;;  %v3221_v16 = vrot.slane %v3219_v10, 1 }
  0x6d   : >> { %5975 = vmatprep.subr.bf16.mxu1 %v7385_v1  ;;  %6293 = vmatprep.mubr.msk.bf16.mxu0 %vm7387_vm2, %v7385_v1  ;;  %v3232_v30 = vrot.slane %v3230_v19, 1 }
  0x6e   : >> { %v3222_v11 = vor.u32 %v3221_v16, %v3217_v15  ;;  %v7957_v16 = vld [vmem:[%s7540_s15 + $0x24] sm:$0xff]  }
  0x6f   : >> { %v3233_v35 = vsel %vm510_vm4, %v3229_v29, %v3232_v30  ;;  %v3525_v29 = vand.u32 %v5555_v27, %v7504_v4 }
  0x70   : >> { %v3226_v25 = vsel %vm510_vm4, %v3222_v11, %v3225_v12 }
  0x73   : >> { %5954 = vmatmul.mubr.msk.bf16.gmra.mrb[4].mxu1 %vm347_vm3, %v632_v32  ;;  %6294 = vmatmul.mubr.msk.bf16.gmra.mrb[8].mxu0 %vm347_vm3, %v2932_v45  ;;  %v7893_v32 = vld [vmem:[%s7540_s15 + $0x88] ss:$0 sps:$4 sm:$0x33]  }
  0x74   : >> { %5957 = vmatprep.mubr.msk.bf16.mxu1 %vm7387_vm2, %v7385_v1  ;;  %6299 = vmatprep.mubr.msk.bf16.mxu0 %vm7387_vm2, %v7385_v1  ;;  %v3238_v39 = vshll.u32 %v7893_v32, 16 }
  0x76   : >> { %v3240_v45 = vrot.slane %v3238_v39, 1 }
  0x7b   : >> { %5958 = vmatmul.mubr.msk.bf16.gmra.mrb[8].mxu1 %vm347_vm3, %v640_v48  ;;  %6300 = vmatmul.mubr.msk.bf16.vlgmr.msra.gmra.mrb[0].mxu0 %vm347_vm3, %v7774_v54  ;;  %v3322_v48 = vshrl.u32 %v7821_v3, 16 }
  0x7c   : >> { %5963 = vmatprep.mubr.msk.bf16.mxu1 %vm7387_vm2, %v7385_v1  ;;  %6312 = vmatpush3.bf16.msra.mxu0 %v3147_v55  ;;  %v3328_v55 = vshll.u32 %v7838_v7, 16 }
  0x7d   : >> { %6303 = vmatprep.mubr.msk.bf16.mxu0 %vm7387_vm2, %v7385_v1  ;;  %6325 = vmatprep.subr.bf16.mxu0 %v7385_v1  ;;  %v3327_v56 = vor.u32 %v3326_v52, %v3322_v48  ;;  %v3429_v48 = vrot.slane %v7893_v32, 1  ;;  %v1191_v52 = vshll.u32 %v7938_v2, 16 }
  0x7e   : >> { %v3330_v53 = vrot.slane %v3328_v55, 1 }
  0x80   : >> { %v3331_v57 = vsel %vm510_vm4, %v3327_v56, %v3330_v53  ;;  %v8016_v56 = vld [vmem:[%s7522_s14 + $0x2c] sm:$0xff]  }
  0x83   : >> { %5964 = vmatmul.mubr.msk.bf16.vlgmr.msra.gmra.mrb[0].mxu1 %vm347_vm3, %v721_v58  ;;  %6304 = vmatmul.mubr.msk.bf16.gmra.mrb[4].mxu0 %vm347_vm3, %v7793_v33 }
  0x84   : >> { %5976 = vmatpush3.bf16.msra.mxu1 %v820_v59  ;;  %5967 = vmatprep.mubr.msk.bf16.mxu1 %vm7387_vm2, %v7385_v1  ;;  %v3332_v59 = vshrl.u32 %v7838_v7, 16 }
  0x85   : >> { %5989 = vmatprep.subr.bf16.mxu1 %v7385_v1  ;;  %6307 = vmatprep.mubr.msk.bf16.mxu0 %vm7387_vm2, %v7385_v1 }
  0x8b   : >> { %5968 = vmatmul.mubr.msk.bf16.gmra.mrb[4].mxu1 %vm347_vm3, %v723_v60  ;;  %6308 = vmatmul.mubr.msk.bf16.gmra.mrb[8].mxu0 %vm347_vm3, %v7806_v61  ;;  %v5372_v60 = vld [vmem:[%s8938_s2 + $0x10] sm:$0x3] }
  0x8c   : >> { %5971 = vmatprep.mubr.msk.bf16.mxu1 %vm7387_vm2, %v7385_v1  ;;  %6313 = vmatprep.mubr.msk.bf16.mxu0 %vm7387_vm2, %v7385_v1 }
  0x93   : >> { %5972 = vmatmul.mubr.msk.bf16.gmra.mrb[8].mxu1 %vm347_vm3, %v725_v40  ;;  %6314 = vmatmul.mubr.msk.bf16.vlgmr.msra.gmra.mrb[0].mxu0 %vm347_vm3, %v7821_v3  ;;  %v3334_v40 = vor.u32 %v3332_v59, %v3330_v53  ;;  %v1189_v53 = vshrl.u32 %v7938_v2, 16  ;;  %v3509_v59 = vrot.slane %v7838_v7, 1 }
  0x94   : >> { %5977 = vmatprep.mubr.msk.bf16.mxu1 %vm7387_vm2, %v7385_v1  ;;  %6326 = vmatpush3.bf16.msra.mxu0 %v3252_v5  ;;  %v7944_v5 = vld [vmem:[%s7522_s14 + $0x88] ss:$0 sps:$4 sm:$0x33]  }
  0x95   : >> { %6317 = vmatprep.mubr.msk.bf16.mxu0 %vm7387_vm2, %v7385_v1  ;;  %6339 = vmatprep.subr.bf16.mxu0 %v7385_v1 }
  0x9b   : >> { %5978 = vmatmul.mubr.msk.bf16.vlgmr.msra.gmra.mrb[0].mxu1 %vm347_vm3, %v7634_v50  ;;  %6318 = vmatmul.mubr.msk.bf16.gmra.mrb[4].mxu0 %vm347_vm3, %v7838_v7  ;;  %v7851_v50 = vld [vmem:[%s7522_s14 + $0x80] sm:$0xff]  }
  0x9c   : >> { %5990 = vmatpush3.bf16.msra.mxu1 %v915_v6  ;;  %5981 = vmatprep.mubr.msk.bf16.mxu1 %vm7387_vm2, %v7385_v1  ;;  %v3335_v38 = vshll.u32 %v7851_v50, 16  ;;  %v3339_v6 = vshrl.u32 %v7851_v50, 16 }
  0x9d   : >> { %6003 = vmatprep.subr.bf16.mxu1 %v7385_v1  ;;  %6321 = vmatprep.mubr.msk.bf16.mxu0 %vm7387_vm2, %v7385_v1 }
  0x9e   : >> { %v3337_v9 = vrot.slane %v3335_v38, 1  ;;  %v5559_v38 = vld [vmem:[%s8938_s2 + $0x44] sm:$0x3] }
  0xa0   : >> { %v3338_v49 = vsel %vm510_vm4, %v3334_v40, %v3337_v9 }
  0xa3   : >> { %5982 = vmatmul.mubr.msk.bf16.gmra.mrb[4].mxu1 %vm347_vm3, %v7639_v51  ;;  %6322 = vmatmul.mubr.msk.bf16.gmra.mrb[8].mxu0 %vm347_vm3, %v7851_v50  ;;  %v809_v51 = vsel %vm718_vm5, %v806_v47, %v808_v14  ;;  %v3357_v47 = vand.u32 %v5546_v21, %v7504_v4  ;;  %v3343_v14 = vshll.u32 %v7944_v5, 16  ;;  %v7968_v21 = vld [vmem:[%s7540_s15 + $0x2c] sm:$0xff]  }
  0xa4   : >> { %5985 = vmatprep.mubr.msk.bf16.mxu1 %vm7387_vm2, %v7385_v1  ;;  %6327 = vmatprep.mubr.msk.bf16.mxu0 %vm7387_vm2, %v7385_v1  ;;  %v1206_v27 = vshrl.u32 %v7968_v21, 16 }
  0xa5   : >> { %v3345_v11 = vrot.slane %v3343_v14, 1  ;;  %v1199_v14 = vshrl.u32 %v7957_v16, 16 }
  0xab   : >> { %5986 = vmatmul.mubr.msk.bf16.gmra.mrb[8].mxu1 %vm347_vm3, %v809_v51  ;;  %6328 = vmatmul.mubr.msk.bf16.vlgmr.msra.gmra.mrb[0].mxu0 %vm347_vm3, %v3226_v25  ;;  %v3341_v51 = vor.u32 %v3339_v6, %v3337_v9  ;;  %v3424_v25 = vrot.slane %v7774_v54, 1  ;;  %v3619_v9 = vand.u32 %v5559_v38, %v7504_v4  ;;  %v3511_v6 = vrot.slane %v7851_v50, 1  ;;  %v5581_v54 = vld [vmem:[%s8938_s2 + $0x46] sm:$0x3] }
  0xac   : >> { %5991 = vmatprep.mubr.msk.bf16.mxu1 %vm7387_vm2, %v7385_v1  ;;  %6340 = vmatpush3.bf16.msra.mxu0 %v3357_v47  ;;  %v3425_v47 = vrot.slane %v7793_v33, 1 }
  0xad   : >> { %6331 = vmatprep.mubr.msk.bf16.mxu0 %vm7387_vm2, %v7385_v1  ;;  %6353 = vmatprep.subr.bf16.mxu0 %v7385_v1  ;;  %v3346_v12 = vsel %vm510_vm4, %v3341_v51, %v3345_v11  ;;  %v1202_v51 = vshll.u32 %v7968_v21, 16  ;;  %v3512_v11 = vsel %vm718_vm5, %v3509_v59, %v3511_v6 }
  0xaf   : >> { %v1204_v50 = vrot.slane %v1202_v51, 1 }
  0xb3   : >> { %5992 = vmatmul.mubr.msk.bf16.vlgmr.msra.gmra.mrb[0].mxu1 %vm347_vm3, %v7650_v63  ;;  %6332 = vmatmul.mubr.msk.bf16.gmra.mrb[4].mxu0 %vm347_vm3, %v3233_v35  ;;  %v3236_v63 = vor.u32 %v3234_v37, %v3232_v30  ;;  %v5379_v30 = vld [vmem:[%s8938_s2 + $0x12] sm:$0x3]  ;;  %v7988_v35 = vld [vmem:[%s7522_s14 + $0x1c] sm:$0xff]  }
  0xb4   : >> { %6004 = vmatpush3.bf16.msra.mxu1 %v1027_v28  ;;  %5995 = vmatprep.mubr.msk.bf16.mxu1 %vm7387_vm2, %v7385_v1  ;;  %v3426_v28 = vsel %vm718_vm5, %v3424_v25, %v3425_v47  ;;  %v8060_v25 = vld [vmem:[%s7540_s15 + $0x34] ss:$0 sps:$4 sm:$0x33]  }
  0xb5   : >> { %6017 = vmatprep.subr.bf16.mxu1 %v7385_v1  ;;  %6335 = vmatprep.mubr.msk.bf16.mxu0 %vm7387_vm2, %v7385_v1  ;;  %v3241_v42 = vsel %vm510_vm4, %v3236_v63, %v3240_v45  ;;  %v1224_v63 = vand.u32 %v5379_v30, %v7504_v4  ;;  %v3427_v45 = vrot.slane %v7806_v61, 1  ;;  %v3595_v30 = vrot.slane %v3227_v26, 1 }
  0xb6   : >> { %v3593_v26 = vrot.slane %v3219_v10, 2 }
  0xb7   : >> { %v3428_v46 = vsel %vm718_vm5, %v3425_v47, %v3427_v45  ;;  %v3430_v55 = vsel %vm718_vm5, %v3427_v45, %v3429_v48  ;;  %v3513_v47 = vrot.slane %v7944_v5, 1  ;;  %v1208_v45 = vor.u32 %v1206_v27, %v1204_v50 }
  0xb8   : >> { %v1296_v5 = vshll.u32 %v7988_v35, 16  ;;  %v3592_v48 = vrot.slane %v3217_v15, 1 }
  0xbb   : >> { %5996 = vmatmul.mubr.msk.bf16.gmra.mrb[4].mxu1 %vm347_vm3, %v7662_v13  ;;  %6336 = vmatmul.mubr.msk.bf16.gmra.mrb[8].mxu0 %vm347_vm3, %v3241_v42  ;;  %v5551_v13 = vld [vmem:[%s8938_s2 + $0x40] sm:$0x3]  ;;  %v8003_v42 = vld [vmem:[%s7522_s14 + $0x24] sm:$0xff]  }
  0xbc   : >> { %5999 = vmatprep.mubr.msk.bf16.mxu1 %vm7387_vm2, %v7385_v1  ;;  %6341 = vmatprep.mubr.msk.bf16.mxu0 %vm7387_vm2, %v7385_v1  ;;  %v3441_v58 = vand.u32 %v5551_v13, %v7504_v4  ;;  %v1193_v13 = vrot.slane %v1191_v52, 1 }
  0xc3   : >> { %6000 = vmatmul.mubr.msk.bf16.gmra.mrb[8].mxu1 %vm347_vm3, %v7675_v22  ;;  %6342 = vmatmul.mubr.msk.bf16.vlgmr.msra.gmra.mrb[0].mxu0 %vm347_vm3, %v3331_v57  ;;  %v1119_v22 = vand.u32 %v5372_v60, %v7504_v4  ;;  %v1195_v57 = vshll.u32 %v7957_v16, 16  ;;  %v1194_v60 = vor.u32 %v1193_v13, %v1189_v53  ;;  %v1294_v13 = vshrl.u32 %v7988_v35, 16 }
  0xc4   : >> { %6005 = vmatprep.mubr.msk.bf16.mxu1 %vm7387_vm2, %v7385_v1  ;;  %6354 = vmatpush3.bf16.msra.mxu0 %v3441_v58  ;;  %v3508_v58 = vrot.slane %v7821_v3, 1  ;;  %v5384_v3 = vld [vmem:[%s8938_s2 + $0x14] sm:$0x3] }
  0xc5   : >> { %6345 = vmatprep.mubr.msk.bf16.mxu0 %vm7387_vm2, %v7385_v1  ;;  %6367 = vmatprep.subr.bf16.mxu0 %v7385_v1 }
  0xc6   : >> { %v3510_v40 = vsel %vm718_vm5, %v3508_v58, %v3509_v59  ;;  %v1298_v58 = vrot.slane %v1296_v5, 1  ;;  %v1300_v59 = vshll.u32 %v8003_v42, 16  ;;  %v1311_v5 = vshrl.u32 %v8016_v56, 16 }
  0xc8   : >> { %v1299_v33 = vor.u32 %v1298_v58, %v1294_v13  ;;  %v1302_v10 = vrot.slane %v1300_v59, 1  ;;  %v8146_v13 = vld [vmem:[%s7540_s15 + $0x8c] sm:$0xff]   ;;  %v1396_v59 = vrot.slane %v7938_v2, 1 }
  0xcb   : >> { %6006 = vmatmul.mubr.msk.bf16.vlgmr.msra.gmra.mrb[0].mxu1 %vm347_vm3, %v7938_v2  ;;  %6346 = vmatmul.mubr.msk.bf16.gmra.mrb[4].mxu0 %vm347_vm3, %v3338_v49  ;;  %v1329_v49 = vand.u32 %v5384_v3, %v7504_v4  ;;  %v5389_v3 = vld [vmem:[%s8938_s2 + $0x16] sm:$0x3]  ;;  %v5600_v2 = vld [vmem:[%s8938_s2 + $0x4c] sm:$0x3] }
  0xcc   : >> { %6018 = vmatpush3.bf16.msra.mxu1 %v1119_v22  ;;  %6009 = vmatprep.mubr.msk.bf16.mxu1 %vm7387_vm2, %v7385_v1  ;;  %v1197_v22 = vrot.slane %v1195_v57, 1  ;;  %v1413_v61 = vand.u32 %v5389_v3, %v7504_v4  ;;  %v5595_v3 = vld [vmem:[%s8938_s2 + $0x4a] sm:$0x3] }
  0xcd   : >> { %6031 = vmatprep.subr.bf16.mxu1 %v7385_v1  ;;  %6349 = vmatprep.mubr.msk.bf16.mxu0 %vm7387_vm2, %v7385_v1 }
  0xce   : >> { %v1198_v7 = vsel %vm510_vm4, %v1194_v60, %v1197_v22  ;;  %v3594_v60 = vor.u32 %v3593_v26, %v3592_v48 }
  0xd3   : >> { %6010 = vmatmul.mubr.msk.bf16.gmra.mrb[4].mxu1 %vm347_vm3, %v7957_v16  ;;  %6350 = vmatmul.mubr.msk.bf16.gmra.mrb[8].mxu0 %vm347_vm3, %v3346_v12  ;;  %v1201_v12 = vor.u32 %v1199_v14, %v1197_v22  ;;  %v3600_v22 = vrot.slane %v3230_v19, 2  ;;  %v1304_v19 = vshrl.u32 %v8003_v42, 16 }
  0xd4   : >> { %6013 = vmatprep.mubr.msk.bf16.mxu1 %vm7387_vm2, %v7385_v1  ;;  %6355 = vmatprep.mubr.msk.bf16.mxu0 %vm7387_vm2, %v7385_v1 }
  0xdb   : >> { %6014 = vmatmul.mubr.msk.bf16.gmra.mrb[8].mxu1 %vm347_vm3, %v7968_v21  ;;  %6356 = vmatmul.mubr.msk.bf16.vlgmr.msra.gmra.mrb[0].mxu0 %vm347_vm3, %v3426_v28  ;;  %v1205_v28 = vsel %vm510_vm4, %v1201_v12, %v1204_v50  ;;  %v1306_v12 = vor.u32 %v1304_v19, %v1302_v10  ;;  %v1481_v19 = vrot.slane %v8003_v42, 1 }
  0xdc   : >> { %6019 = vmatprep.mubr.msk.bf16.mxu1 %vm7387_vm2, %v7385_v1  ;;  %6368 = vmatpush3.bf16.msra.mxu0 %v3525_v29  ;;  %v1210_v29 = vshll.u32 %v8060_v25, 16 }
  0xdd   : >> { %6359 = vmatprep.mubr.msk.bf16.mxu0 %vm7387_vm2, %v7385_v1  ;;  %6381 = vmatprep.subr.bf16.mxu0 %v7385_v1 }
  0xe3   : >> { %6020 = vmatmul.mubr.msk.bf16.vlgmr.msra.gmra.mrb[0].mxu1 %vm347_vm3, %v7988_v35  ;;  %6360 = vmatmul.mubr.msk.bf16.gmra.mrb[4].mxu0 %vm347_vm3, %v3428_v46  ;;  %v1212_v46 = vrot.slane %v1210_v29, 1 }
  0xe4   : >> { %6032 = vmatpush3.bf16.msra.mxu1 %v1224_v63  ;;  %6023 = vmatprep.mubr.msk.bf16.mxu1 %vm7387_vm2, %v7385_v1  ;;  %v3514_v63 = vsel %vm718_vm5, %v3511_v6, %v3513_v47  ;;  %v3603_v6 = vshrl.u32 %v7893_v32, 16 }
  0xe5   : >> { %6045 = vmatprep.subr.bf16.mxu1 %v7385_v1  ;;  %6363 = vmatprep.mubr.msk.bf16.mxu0 %vm7387_vm2, %v7385_v1  ;;  %v1213_v38 = vsel %vm510_vm4, %v1208_v45, %v1212_v46 }
  0xe6   : >> { %v3605_v47 = vrot.slane %v3603_v6, 1 }
  0xeb   : >> { %6024 = vmatmul.mubr.msk.bf16.gmra.mrb[4].mxu1 %vm347_vm3, %v8003_v42  ;;  %6364 = vmatmul.mubr.msk.bf16.gmra.mrb[8].mxu0 %vm347_vm3, %v3430_v55  ;;  %v3596_v55 = vrot.slane %v3223_v17, 2  ;;  %v3599_v17 = vrot.slane %v3234_v37, 1  ;;  %v1307_v37 = vshll.u32 %v8016_v56, 16  ;;  %v1483_v42 = vrot.slane %v8016_v56, 1 }
  0xec   : >> { %6027 = vmatprep.mubr.msk.bf16.mxu1 %vm7387_vm2, %v7385_v1  ;;  %6369 = vmatprep.mubr.msk.bf16.mxu0 %vm7387_vm2, %v7385_v1 }
  0xed   : >> { %v3597_v15 = vor.u32 %v3596_v55, %v3595_v30  ;;  %v1309_v50 = vrot.slane %v1307_v37, 1  ;;  %v8124_v30 = vld [vmem:[%s7522_s14 + $0x34] ss:$0 sps:$4 sm:$0x33]   ;;  %v5588_v55 = vld [vmem:[%s8938_s2 + $0x48] sm:$0x3] }
  0xee   : >> { %v1315_v46 = vshll.u32 %v8124_v30, 16  ;;  %v3823_v58 = vand.u32 %v5588_v55, %v7504_v4  ;;  %v5397_v37 = vld [vmem:[%s8938_s2 + $0x1a] sm:$0x3] }
  0xf0   : >> { %v1317_v48 = vrot.slane %v1315_v46, 1  ;;  %v1564_v46 = vrot.slane %v1189_v53, 1 }
  0xf3   : >> { %6028 = vmatmul.mubr.msk.bf16.gmra.mrb[8].mxu1 %vm347_vm3, %v8016_v56  ;;  %6370 = vmatmul.mubr.msk.bf16.vlgmr.msra.gmra.mrb[0].mxu0 %vm347_vm3, %v3510_v40  ;;  %v3598_v40 = vsel %vm887_vm6, %v3594_v60, %v3597_v15  ;;  %v5393_v60 = vld [vmem:[%s8938_s2 + $0x18] sm:$0x3]  ;;  %v1485_v56 = vrot.slane %v8124_v30, 1  ;;  %v1568_v30 = vrot.slane %v1195_v57, 2  ;;  %v4033_v57 = vand.u32 %v5600_v2, %v7504_v4 }
  0xf4   : >> { %6033 = vmatprep.mubr.msk.bf16.mxu1 %vm7387_vm2, %v7385_v1  ;;  %6382 = vmatpush3.bf16.msra.mxu0 %v3619_v9  ;;  %v3731_v9 = vand.u32 %v5581_v54, %v7504_v4  ;;  %v1497_v54 = vand.u32 %v5393_v60, %v7504_v4  ;;  %v8269_v60 = vld [vmem:[%s7540_s15 + $0xa4] ss:$0 sps:$4 sm:$0x33]   ;;  %v8326_v2 = vld [vmem:[%s7540_s15 + $0x38] sm:$0xff]  }
  0xf5   : >> { %6373 = vmatprep.mubr.msk.bf16.mxu0 %vm7387_vm2, %v7385_v1  ;;  %6395 = vmatprep.subr.bf16.mxu0 %v7385_v1 }
  0xfb   : >> { %6034 = vmatmul.mubr.msk.bf16.vlgmr.msra.gmra.mrb[0].mxu1 %vm347_vm3, %v1198_v7  ;;  %6374 = vmatmul.mubr.msk.bf16.gmra.mrb[4].mxu0 %vm347_vm3, %v3512_v11  ;;  %v1303_v7 = vsel %vm510_vm4, %v1299_v33, %v1302_v10  ;;  %v8165_v33 = vld [vmem:[%s7540_s15 + $0x94] sm:$0xff]   ;;  %v1399_v10 = vrot.slane %v7968_v21, 1 }
  0xfc   : >> { %6046 = vmatpush3.bf16.msra.mxu1 %v1329_v49  ;;  %6037 = vmatprep.mubr.msk.bf16.mxu1 %vm7387_vm2, %v7385_v1  ;;  %v3601_v49 = vor.u32 %v3600_v22, %v3599_v17  ;;  %v8178_v22 = vld [vmem:[%s7540_s15 + $0x9c] sm:$0xff]   ;;  %v3903_v55 = vshrl.u32 %v8165_v33, 16 }
  0xfd   : >> { %6059 = vmatprep.subr.bf16.mxu1 %v7385_v1  ;;  %6377 = vmatprep.mubr.msk.bf16.mxu0 %vm7387_vm2, %v7385_v1 }
  0xfe   : >> { %v3602_v11 = vsel %vm887_vm6, %v3597_v15, %v3601_v49 }
 0x103   : >> { %6038 = vmatmul.mubr.msk.bf16.gmra.mrb[4].mxu1 %vm347_vm3, %v1205_v28  ;;  %6378 = vmatmul.mubr.msk.bf16.gmra.mrb[8].mxu0 %vm347_vm3, %v3514_v63  ;;  %v3606_v28 = vrot.slane %v3238_v39, 2  ;;  %v1310_v63 = vsel %vm510_vm4, %v1306_v12, %v1309_v50  ;;  %v1313_v39 = vor.u32 %v1311_v5, %v1309_v50  ;;  %v1484_v12 = vsel %vm718_vm5, %v1481_v19, %v1483_v42 }
 0x104   : >> { %6041 = vmatprep.mubr.msk.bf16.mxu1 %vm7387_vm2, %v7385_v1  ;;  %6383 = vmatprep.mubr.msk.bf16.mxu0 %vm7387_vm2, %v7385_v1  ;;  %v3895_v50 = vshll.u32 %v8146_v13, 16  ;;  %v1567_v5 = vrot.slane %v1199_v14, 1 }
 0x105   : >> { %v3607_v45 = vor.u32 %v3606_v28, %v3605_v47  ;;  %v1318_v26 = vsel %vm510_vm4, %v1313_v39, %v1317_v48  ;;  %v8226_v47 = vld [vmem:[%s7522_s14 + $0x9c] sm:$0xff]   ;;  %v3893_v28 = vshrl.u32 %v8146_v13, 16  ;;  %v1486_v39 = vsel %vm718_vm5, %v1483_v42, %v1485_v56 }
 0x107   : >> { %v3608_v32 = vsel %vm887_vm6, %v3601_v49, %v3607_v45  ;;  %v3928_v49 = vand.u32 %v5595_v3, %v7504_v4  ;;  %v3899_v45 = vshll.u32 %v8165_v33, 16 }
 0x109   : >> { %v3901_v48 = vrot.slane %v3899_v45, 1 }
 0x10b   : >> { %6042 = vmatmul.mubr.msk.bf16.gmra.mrb[8].mxu1 %vm347_vm3, %v1213_v38  ;;  %6384 = vmatmul.mubr.msk.bf16.vlgmr.msra.gmra.mrb[0].mxu0 %vm347_vm3, %v3598_v40  ;;  %v1397_v38 = vrot.slane %v7957_v16, 1  ;;  %v1401_v40 = vrot.slane %v8060_v25, 1 }
 0x10c   : >> { %6047 = vmatprep.mubr.msk.bf16.mxu1 %vm7387_vm2, %v7385_v1  ;;  %6396 = vmatpush3.bf16.msra.mxu0 %v3731_v9 }
 0x10d   : >> { %6387 = vmatprep.mubr.msk.bf16.mxu0 %vm7387_vm2, %v7385_v1  ;;  %6409 = vmatprep.subr.bf16.mxu0 %v7385_v1  ;;  %v1398_v15 = vsel %vm718_vm5, %v1396_v59, %v1397_v38  ;;  %v1400_v17 = vsel %vm718_vm5, %v1397_v38, %v1399_v10  ;;  %v1402_v9 = vsel %vm718_vm5, %v1399_v10, %v1401_v40  ;;  %v1571_v10 = vrot.slane %v1206_v27, 1 }
 0x10e   : >> { %v3910_v40 = vshrl.u32 %v8178_v22, 16  ;;  %v1575_v27 = vshrl.u32 %v8060_v25, 16 }
 0x113   : >> { %6048 = vmatmul.mubr.msk.bf16.vlgmr.msra.gmra.mrb[0].mxu1 %vm347_vm3, %v1303_v7  ;;  %6388 = vmatmul.mubr.msk.bf16.gmra.mrb[4].mxu0 %vm347_vm3, %v3602_v11  ;;  %v8193_v7 = vld [vmem:[%s7522_s14 + $0x8c] sm:$0xff]   ;;  %v1591_v11 = vand.u32 %v5397_v37, %v7504_v4  ;;  %v1578_v37 = vrot.slane %v1210_v29, 2 }
 0x114   : >> { %6060 = vmatpush3.bf16.msra.mxu1 %v1413_v61  ;;  %6051 = vmatprep.mubr.msk.bf16.mxu1 %vm7387_vm2, %v7385_v1  ;;  %v1480_v61 = vrot.slane %v7988_v35, 1  ;;  %v8212_v35 = vld [vmem:[%s7522_s14 + $0x94] sm:$0xff]  }
 0x115   : >> { %6073 = vmatprep.subr.bf16.mxu1 %v7385_v1  ;;  %6391 = vmatprep.mubr.msk.bf16.mxu0 %vm7387_vm2, %v7385_v1 }
 0x116   : >> { %v1482_v6 = vsel %vm718_vm5, %v1480_v61, %v1481_v19  ;;  %v1577_v19 = vrot.slane %v1575_v27, 1  ;;  %v4101_v27 = vrot.slane %v8165_v33, 1 }
 0x118   : >> { %v1579_v42 = vor.u32 %v1578_v37, %v1577_v19  ;;  %v5433_v19 = vld [vmem:[%s8938_s2 + $0x20] sm:$0x3]  ;;  %v8376_v37 = vld [vmem:[%s7522_s14 + $0x38] sm:$0xff]  }
 0x11b   : >> { %6052 = vmatmul.mubr.msk.bf16.gmra.mrb[4].mxu1 %vm347_vm3, %v1310_v63  ;;  %6392 = vmatmul.mubr.msk.bf16.gmra.mrb[8].mxu0 %vm347_vm3, %v3608_v32  ;;  %v3897_v63 = vrot.slane %v3895_v50, 1  ;;  %v1565_v32 = vrot.slane %v1191_v52, 2  ;;  %v1569_v52 = vor.u32 %v1568_v30, %v1567_v5 }
 0x11c   : >> { %6055 = vmatprep.mubr.msk.bf16.mxu1 %vm7387_vm2, %v7385_v1  ;;  %6397 = vmatprep.mubr.msk.bf16.mxu0 %vm7387_vm2, %v7385_v1 }
 0x11d   : >> { %v3898_v14 = vor.u32 %v3897_v63, %v3893_v28  ;;  %v1566_v16 = vor.u32 %v1565_v32, %v1564_v46  ;;  %v4004_v63 = vshll.u32 %v8212_v35, 16  ;;  %v5605_v46 = vld [vmem:[%s8938_s2 + $0x4e] sm:$0x3] }
 0x11e   : >> { %v4117_v30 = vand.u32 %v5605_v46, %v7504_v4 }
 0x11f   : >> { %v3902_v53 = vsel %vm510_vm4, %v3898_v14, %v3901_v48  ;;  %v1570_v59 = vsel %vm887_vm6, %v1566_v16, %v1569_v52  ;;  %v4006_v5 = vrot.slane %v4004_v63, 1  ;;  %v4011_v14 = vshll.u32 %v8226_v47, 16 }
 0x120   : >> { %v1867_v63 = vshll.u32 %v8326_v2, 16 }
 0x122   : >> { %v1869_v46 = vrot.slane %v1867_v63, 1 }
 0x123   : >> { %6056 = vmatmul.mubr.msk.bf16.gmra.mrb[8].mxu1 %vm347_vm3, %v1318_v26  ;;  %6398 = vmatmul.mubr.msk.bf16.vlgmr.msra.gmra.mrb[0].mxu0 %vm347_vm3, %v8146_v13  ;;  %v5419_v26 = vld [vmem:[%s8938_s2 + $0x1c] sm:$0x3] }
 0x124   : >> { %6061 = vmatprep.mubr.msk.bf16.mxu1 %vm7387_vm2, %v7385_v1  ;;  %6410 = vmatpush3.bf16.msra.mxu0 %v3823_v58  ;;  %v3906_v58 = vshll.u32 %v8178_v22, 16  ;;  %v1703_v38 = vand.u32 %v5419_v26, %v7504_v4 }
 0x125   : >> { %6401 = vmatprep.mubr.msk.bf16.mxu0 %vm7387_vm2, %v7385_v1  ;;  %6423 = vmatprep.subr.bf16.mxu0 %v7385_v1 }
 0x12b   : >> { %6062 = vmatmul.mubr.msk.bf16.vlgmr.msra.gmra.mrb[0].mxu1 %vm347_vm3, %v1398_v15  ;;  %6402 = vmatmul.mubr.msk.bf16.gmra.mrb[4].mxu0 %vm347_vm3, %v8165_v33  ;;  %v3905_v15 = vor.u32 %v3903_v55, %v3901_v48  ;;  %v5426_v48 = vld [vmem:[%s8938_s2 + $0x1e] sm:$0x3] }
 0x12c   : >> { %6074 = vmatpush3.bf16.msra.mxu1 %v1497_v54  ;;  %6065 = vmatprep.mubr.msk.bf16.mxu1 %vm7387_vm2, %v7385_v1  ;;  %v3908_v54 = vrot.slane %v3906_v58, 1  ;;  %v1795_v16 = vand.u32 %v5426_v48, %v7504_v4 }
 0x12d   : >> { %6087 = vmatprep.subr.bf16.mxu1 %v7385_v1  ;;  %6405 = vmatprep.mubr.msk.bf16.mxu0 %vm7387_vm2, %v7385_v1 }
 0x12e   : >> { %v3909_v3 = vsel %vm510_vm4, %v3905_v15, %v3908_v54  ;;  %v3912_v21 = vor.u32 %v3910_v40, %v3908_v54  ;;  %v8345_v15 = vld [vmem:[%s7540_s15 + $0x40] sm:$0xff]  }
 0x133   : >> { %6066 = vmatmul.mubr.msk.bf16.gmra.mrb[4].mxu1 %vm347_vm3, %v1400_v17  ;;  %6406 = vmatmul.mubr.msk.bf16.gmra.mrb[8].mxu0 %vm347_vm3, %v8178_v22  ;;  %v1572_v17 = vrot.slane %v1202_v51, 2 }
 0x134   : >> { %6069 = vmatprep.mubr.msk.bf16.mxu1 %vm7387_vm2, %v7385_v1  ;;  %6411 = vmatprep.mubr.msk.bf16.mxu0 %vm7387_vm2, %v7385_v1 }
 0x13b   : >> { %6070 = vmatmul.mubr.msk.bf16.gmra.mrb[8].mxu1 %vm347_vm3, %v1402_v9  ;;  %6412 = vmatmul.mubr.msk.bf16.vlgmr.msra.gmra.mrb[0].mxu0 %vm347_vm3, %v8193_v7  ;;  %v3914_v9 = vshll.u32 %v8269_v60, 16 }
 0x13c   : >> { %6075 = vmatprep.mubr.msk.bf16.mxu1 %vm7387_vm2, %v7385_v1  ;;  %6424 = vmatpush3.bf16.msra.mxu0 %v3928_v49  ;;  %v1573_v49 = vor.u32 %v1572_v17, %v1571_v10 }
 0x13d   : >> { %6415 = vmatprep.mubr.msk.bf16.mxu0 %vm7387_vm2, %v7385_v1  ;;  %6437 = vmatprep.subr.bf16.mxu0 %v7385_v1  ;;  %v3916_v51 = vrot.slane %v3914_v9, 1 }
 0x13e   : >> { %v1574_v61 = vsel %vm887_vm6, %v1569_v52, %v1573_v49  ;;  %v1580_v25 = vsel %vm887_vm6, %v1573_v49, %v1579_v42  ;;  %v4100_v49 = vrot.slane %v8146_v13, 1  ;;  %v5635_v13 = vld [vmem:[%s8938_s2 + $0x54] sm:$0x3] }
 0x143   : >> { %6076 = vmatmul.mubr.msk.bf16.vlgmr.msra.gmra.mrb[0].mxu1 %vm347_vm3, %v1482_v6  ;;  %6416 = vmatmul.mubr.msk.bf16.gmra.mrb[4].mxu0 %vm347_vm3, %v8212_v35  ;;  %v4000_v6 = vshll.u32 %v8193_v7, 16 }
 0x144   : >> { %6088 = vmatpush3.bf16.msra.mxu1 %v1591_v11  ;;  %6079 = vmatprep.mubr.msk.bf16.mxu1 %vm7387_vm2, %v7385_v1  ;;  %v3917_v11 = vsel %vm510_vm4, %v3912_v21, %v3916_v51  ;;  %v5609_v21 = vld [vmem:[%s8938_s2 + $0x50] sm:$0x3]  ;;  %v4102_v51 = vsel %vm718_vm5, %v4100_v49, %v4101_v27 }
 0x145   : >> { %6101 = vmatprep.subr.bf16.mxu1 %v7385_v1  ;;  %6419 = vmatprep.mubr.msk.bf16.mxu0 %vm7387_vm2, %v7385_v1  ;;  %v4002_v56 = vrot.slane %v4000_v6, 1  ;;  %v1900_v6 = vand.u32 %v5433_v19, %v7504_v4  ;;  %v8448_v49 = vld [vmem:[%s7540_s15 + $0x50] ss:$0 sps:$4 sm:$0x33]   ;;  %v4271_v19 = vrot.slane %v3903_v55, 1  ;;  %v4269_v55 = vrot.slane %v3895_v50, 2 }
 0x14b   : >> { %6080 = vmatmul.mubr.msk.bf16.gmra.mrb[4].mxu1 %vm347_vm3, %v1484_v12  ;;  %6420 = vmatmul.mubr.msk.bf16.gmra.mrb[8].mxu0 %vm347_vm3, %v8226_v47  ;;  %v3998_v12 = vshrl.u32 %v8193_v7, 16 }
 0x14c   : >> { %6083 = vmatprep.mubr.msk.bf16.mxu1 %vm7387_vm2, %v7385_v1  ;;  %6425 = vmatprep.mubr.msk.bf16.mxu0 %vm7387_vm2, %v7385_v1 }
 0x14d   : >> { %v4003_v29 = vor.u32 %v4002_v56, %v3998_v12  ;;  %v8391_v12 = vld [vmem:[%s7522_s14 + $0x40] sm:$0xff]   ;;  %v4105_v56 = vrot.slane %v8269_v60, 1 }
 0x14f   : >> { %v4007_v32 = vsel %vm510_vm4, %v4003_v29, %v4006_v5  ;;  %v8404_v29 = vld [vmem:[%s7522_s14 + $0x48] sm:$0xff]  }
 0x153   : >> { %6084 = vmatmul.mubr.msk.bf16.gmra.mrb[8].mxu1 %vm347_vm3, %v1486_v39  ;;  %6426 = vmatmul.mubr.msk.bf16.vlgmr.msra.gmra.mrb[0].mxu0 %vm347_vm3, %v3902_v53  ;;  %v4008_v39 = vshrl.u32 %v8212_v35, 16  ;;  %v4013_v53 = vrot.slane %v4011_v14, 1  ;;  %v5613_v14 = vld [vmem:[%s8938_s2 + $0x52] sm:$0x3] }
 0x154   : >> { %6089 = vmatprep.mubr.msk.bf16.mxu1 %vm7387_vm2, %v7385_v1  ;;  %6438 = vmatpush3.bf16.msra.mxu0 %v4033_v57  ;;  %v8332_v57 = vld [vmem:[%s7522_s14 + $0xa4] ss:$0 sps:$4 sm:$0x33]  }
 0x155   : >> { %6429 = vmatprep.mubr.msk.bf16.mxu0 %vm7387_vm2, %v7385_v1  ;;  %6451 = vmatprep.subr.bf16.mxu0 %v7385_v1  ;;  %v4010_v52 = vor.u32 %v4008_v39, %v4006_v5  ;;  %v1865_v5 = vshrl.u32 %v8326_v2, 16  ;;  %v4185_v39 = vrot.slane %v8212_v35, 1 }
 0x157   : >> { %v4014_v26 = vsel %vm510_vm4, %v4010_v52, %v4013_v53  ;;  %v1870_v48 = vor.u32 %v1869_v46, %v1865_v5  ;;  %v1970_v46 = vshrl.u32 %v8376_v37, 16 }
 0x15b   : >> { %6090 = vmatmul.mubr.msk.bf16.vlgmr.msra.gmra.mrb[0].mxu1 %vm347_vm3, %v1570_v59  ;;  %6430 = vmatmul.mubr.msk.bf16.gmra.mrb[4].mxu0 %vm347_vm3, %v3909_v3  ;;  %v4015_v59 = vshrl.u32 %v8226_v47, 16  ;;  %v8356_v3 = vld [vmem:[%s7540_s15 + $0x48] sm:$0xff]  }
 0x15c   : >> { %6102 = vmatpush3.bf16.msra.mxu1 %v1703_v38  ;;  %6093 = vmatprep.mubr.msk.bf16.mxu1 %vm7387_vm2, %v7385_v1  ;;  %v4019_v38 = vshll.u32 %v8332_v57, 16 }
 0x15d   : >> { %6115 = vmatprep.subr.bf16.mxu1 %v7385_v1  ;;  %6433 = vmatprep.mubr.msk.bf16.mxu0 %vm7387_vm2, %v7385_v1  ;;  %v4017_v54 = vor.u32 %v4015_v59, %v4013_v53  ;;  %v4295_v53 = vand.u32 %v5613_v14, %v7504_v4  ;;  %v4187_v59 = vrot.slane %v8226_v47, 1 }
 0x15e   : >> { %v4021_v10 = vrot.slane %v4019_v38, 1  ;;  %v1875_v38 = vshrl.u32 %v8345_v15, 16 }
 0x160   : >> { %v4022_v17 = vsel %vm510_vm4, %v4017_v54, %v4021_v10  ;;  %v1878_v54 = vshll.u32 %v8356_v3, 16  ;;  %v4188_v10 = vsel %vm718_vm5, %v4185_v39, %v4187_v59 }
 0x162   : >> { %v1880_v47 = vrot.slane %v1878_v54, 1 }
 0x163   : >> { %6094 = vmatmul.mubr.msk.bf16.gmra.mrb[4].mxu1 %vm347_vm3, %v1574_v61  ;;  %6434 = vmatmul.mubr.msk.bf16.gmra.mrb[8].mxu0 %vm347_vm3, %v3917_v11  ;;  %v4201_v61 = vand.u32 %v5609_v21, %v7504_v4  ;;  %v4103_v11 = vrot.slane %v8178_v22, 1  ;;  %v1882_v21 = vshrl.u32 %v8356_v3, 16 }
 0x164   : >> { %6097 = vmatprep.mubr.msk.bf16.mxu1 %vm7387_vm2, %v7385_v1  ;;  %6439 = vmatprep.mubr.msk.bf16.mxu0 %vm7387_vm2, %v7385_v1 }
 0x165   : >> { %v4104_v42 = vsel %vm718_vm5, %v4101_v27, %v4103_v11  ;;  %v4189_v27 = vrot.slane %v8332_v57, 1  ;;  %v1972_v57 = vshll.u32 %v8376_v37, 16 }
 0x16b   : >> { %6098 = vmatmul.mubr.msk.bf16.gmra.mrb[8].mxu1 %vm347_vm3, %v1580_v25  ;;  %6440 = vmatmul.mubr.msk.bf16.vlgmr.msra.gmra.mrb[0].mxu0 %vm347_vm3, %v4007_v32  ;;  %v4106_v25 = vsel %vm718_vm5, %v4103_v11, %v4105_v56  ;;  %v1871_v32 = vshll.u32 %v8345_v15, 16  ;;  %v1884_v11 = vor.u32 %v1882_v21, %v1880_v47  ;;  %v4268_v56 = vrot.slane %v3893_v28, 1 }
 0x16c   : >> { %6103 = vmatprep.mubr.msk.bf16.mxu1 %vm7387_vm2, %v7385_v1  ;;  %6452 = vmatpush3.bf16.msra.mxu0 %v4117_v30  ;;  %v4184_v30 = vrot.slane %v8193_v7, 1  ;;  %v5438_v7 = vld [vmem:[%s8938_s2 + $0x22] sm:$0x3] }
 0x16d   : >> { %6443 = vmatprep.mubr.msk.bf16.mxu0 %vm7387_vm2, %v7385_v1  ;;  %6465 = vmatprep.subr.bf16.mxu0 %v7385_v1 }
 0x16e   : >> { %v4186_v52 = vsel %vm718_vm5, %v4184_v30, %v4185_v39  ;;  %v1974_v30 = vrot.slane %v1972_v57, 1  ;;  %v1976_v39 = vshll.u32 %v8391_v12, 16  ;;  %v1987_v57 = vshrl.u32 %v8404_v29, 16 }
 0x170   : >> { %v1975_v33 = vor.u32 %v1974_v30, %v1970_v46  ;;  %v1978_v50 = vrot.slane %v1976_v39, 1  ;;  %v8534_v46 = vld [vmem:[%s7540_s15 + $0xa8] sm:$0xff]   ;;  %v2072_v39 = vrot.slane %v8326_v2, 1 }
 0x173   : >> { %6104 = vmatmul.mubr.msk.bf16.vlgmr.msra.gmra.mrb[0].mxu1 %vm347_vm3, %v8326_v2  ;;  %6444 = vmatmul.mubr.msk.bf16.gmra.mrb[4].mxu0 %vm347_vm3, %v4014_v26  ;;  %v2005_v26 = vand.u32 %v5438_v7, %v7504_v4  ;;  %v5443_v7 = vld [vmem:[%s8938_s2 + $0x24] sm:$0x3]  ;;  %v5654_v2 = vld [vmem:[%s8938_s2 + $0x5a] sm:$0x3] }
 0x174   : >> { %6116 = vmatpush3.bf16.msra.mxu1 %v1795_v16  ;;  %6107 = vmatprep.mubr.msk.bf16.mxu1 %vm7387_vm2, %v7385_v1  ;;  %v1873_v16 = vrot.slane %v1871_v32, 1  ;;  %v2089_v22 = vand.u32 %v5443_v7, %v7504_v4  ;;  %v5649_v7 = vld [vmem:[%s8938_s2 + $0x58] sm:$0x3] }
 0x175   : >> { %6129 = vmatprep.subr.bf16.mxu1 %v7385_v1  ;;  %6447 = vmatprep.mubr.msk.bf16.mxu0 %vm7387_vm2, %v7385_v1 }
 0x176   : >> { %v1874_v35 = vsel %vm510_vm4, %v1870_v48, %v1873_v16  ;;  %v4270_v48 = vor.u32 %v4269_v55, %v4268_v56 }
 0x17b   : >> { %6108 = vmatmul.mubr.msk.bf16.gmra.mrb[4].mxu1 %vm347_vm3, %v8345_v15  ;;  %6448 = vmatmul.mubr.msk.bf16.gmra.mrb[8].mxu0 %vm347_vm3, %v4022_v17  ;;  %v1877_v17 = vor.u32 %v1875_v38, %v1873_v16  ;;  %v4276_v16 = vrot.slane %v3906_v58, 2  ;;  %v1980_v58 = vshrl.u32 %v8391_v12, 16 }
 0x17c   : >> { %6111 = vmatprep.mubr.msk.bf16.mxu1 %vm7387_vm2, %v7385_v1  ;;  %6453 = vmatprep.mubr.msk.bf16.mxu0 %vm7387_vm2, %v7385_v1 }
 0x183   : >> { %6112 = vmatmul.mubr.msk.bf16.gmra.mrb[8].mxu1 %vm347_vm3, %v8356_v3  ;;  %6454 = vmatmul.mubr.msk.bf16.vlgmr.msra.gmra.mrb[0].mxu0 %vm347_vm3, %v4102_v51  ;;  %v1881_v51 = vsel %vm510_vm4, %v1877_v17, %v1880_v47  ;;  %v1982_v17 = vor.u32 %v1980_v58, %v1978_v50  ;;  %v2157_v58 = vrot.slane %v8391_v12, 1 }
 0x184   : >> { %6117 = vmatprep.mubr.msk.bf16.mxu1 %vm7387_vm2, %v7385_v1  ;;  %6466 = vmatpush3.bf16.msra.mxu0 %v4201_v61  ;;  %v1886_v61 = vshll.u32 %v8448_v49, 16 }
 0x185   : >> { %6457 = vmatprep.mubr.msk.bf16.mxu0 %vm7387_vm2, %v7385_v1  ;;  %6479 = vmatprep.subr.bf16.mxu0 %v7385_v1 }
 0x18b   : >> { %6118 = vmatmul.mubr.msk.bf16.vlgmr.msra.gmra.mrb[0].mxu1 %vm347_vm3, %v8376_v37  ;;  %6458 = vmatmul.mubr.msk.bf16.gmra.mrb[4].mxu0 %vm347_vm3, %v4104_v42  ;;  %v1888_v42 = vrot.slane %v1886_v61, 1 }
 0x18c   : >> { %6130 = vmatpush3.bf16.msra.mxu1 %v1900_v6  ;;  %6121 = vmatprep.mubr.msk.bf16.mxu1 %vm7387_vm2, %v7385_v1  ;;  %v4190_v6 = vsel %vm718_vm5, %v4187_v59, %v4189_v27  ;;  %v4279_v59 = vshrl.u32 %v8269_v60, 16 }
 0x18d   : >> { %6143 = vmatprep.subr.bf16.mxu1 %v7385_v1  ;;  %6461 = vmatprep.mubr.msk.bf16.mxu0 %vm7387_vm2, %v7385_v1  ;;  %v1889_v14 = vsel %vm510_vm4, %v1884_v11, %v1888_v42 }
 0x18e   : >> { %v4281_v27 = vrot.slane %v4279_v59, 1 }
 0x193   : >> { %6122 = vmatmul.mubr.msk.bf16.gmra.mrb[4].mxu1 %vm347_vm3, %v8391_v12  ;;  %6462 = vmatmul.mubr.msk.bf16.gmra.mrb[8].mxu0 %vm347_vm3, %v4106_v25  ;;  %v4272_v25 = vrot.slane %v3899_v45, 2  ;;  %v4275_v45 = vrot.slane %v3910_v40, 1  ;;  %v1983_v40 = vshll.u32 %v8404_v29, 16  ;;  %v2159_v12 = vrot.slane %v8404_v29, 1 }
 0x194   : >> { %6125 = vmatprep.mubr.msk.bf16.mxu1 %vm7387_vm2, %v7385_v1  ;;  %6467 = vmatprep.mubr.msk.bf16.mxu0 %vm7387_vm2, %v7385_v1 }
 0x195   : >> { %v4273_v28 = vor.u32 %v4272_v25, %v4271_v19  ;;  %v1985_v47 = vrot.slane %v1983_v40, 1  ;;  %v8512_v19 = vld [vmem:[%s7522_s14 + $0x50] ss:$0 sps:$4 sm:$0x33]   ;;  %v5642_v25 = vld [vmem:[%s8938_s2 + $0x56] sm:$0x3] }
 0x196   : >> { %v1991_v42 = vshll.u32 %v8512_v19, 16  ;;  %v4499_v30 = vand.u32 %v5642_v25, %v7504_v4  ;;  %v5451_v40 = vld [vmem:[%s8938_s2 + $0x28] sm:$0x3] }
 0x198   : >> { %v1993_v56 = vrot.slane %v1991_v42, 1  ;;  %v2240_v42 = vrot.slane %v1865_v5, 1 }
 0x19b   : >> { %6126 = vmatmul.mubr.msk.bf16.gmra.mrb[8].mxu1 %vm347_vm3, %v8404_v29  ;;  %6468 = vmatmul.mubr.msk.bf16.vlgmr.msra.gmra.mrb[0].mxu0 %vm347_vm3, %v4186_v52  ;;  %v4274_v52 = vsel %vm887_vm6, %v4270_v48, %v4273_v28  ;;  %v5447_v48 = vld [vmem:[%s8938_s2 + $0x26] sm:$0x3]  ;;  %v2161_v29 = vrot.slane %v8512_v19, 1  ;;  %v2244_v19 = vrot.slane %v1871_v32, 2  ;;  %v4709_v32 = vand.u32 %v5654_v2, %v7504_v4 }
 0x19c   : >> { %6131 = vmatprep.mubr.msk.bf16.mxu1 %vm7387_vm2, %v7385_v1  ;;  %6480 = vmatpush3.bf16.msra.mxu0 %v4295_v53  ;;  %v4407_v53 = vand.u32 %v5635_v13, %v7504_v4  ;;  %v2173_v13 = vand.u32 %v5447_v48, %v7504_v4  ;;  %v8657_v48 = vld [vmem:[%s7540_s15 + $0xc0] ss:$0 sps:$4 sm:$0x33]  }
 0x19d   : >> { %6471 = vmatprep.mubr.msk.bf16.mxu0 %vm7387_vm2, %v7385_v1  ;;  %6493 = vmatprep.subr.bf16.mxu0 %v7385_v1 }
 0x1a3   : >> { %6132 = vmatmul.mubr.msk.bf16.vlgmr.msra.gmra.mrb[0].mxu1 %vm347_vm3, %v1874_v35  ;;  %6472 = vmatmul.mubr.msk.bf16.gmra.mrb[4].mxu0 %vm347_vm3, %v4188_v10  ;;  %v1979_v35 = vsel %vm510_vm4, %v1975_v33, %v1978_v50  ;;  %v8553_v33 = vld [vmem:[%s7540_s15 + $0xb0] sm:$0xff]   ;;  %v2075_v50 = vrot.slane %v8356_v3, 1 }
 0x1a4   : >> { %6144 = vmatpush3.bf16.msra.mxu1 %v2005_v26  ;;  %6135 = vmatprep.mubr.msk.bf16.mxu1 %vm7387_vm2, %v7385_v1  ;;  %v4277_v26 = vor.u32 %v4276_v16, %v4275_v45  ;;  %v8566_v16 = vld [vmem:[%s7540_s15 + $0xb8] sm:$0xff]   ;;  %v4579_v25 = vshrl.u32 %v8553_v33, 16 }
 0x1a5   : >> { %6157 = vmatprep.subr.bf16.mxu1 %v7385_v1  ;;  %6475 = vmatprep.mubr.msk.bf16.mxu0 %vm7387_vm2, %v7385_v1 }
 0x1a6   : >> { %v4278_v10 = vsel %vm887_vm6, %v4273_v28, %v4277_v26 }
 0x1ab   : >> { %6136 = vmatmul.mubr.msk.bf16.gmra.mrb[4].mxu1 %vm347_vm3, %v1881_v51  ;;  %6476 = vmatmul.mubr.msk.bf16.gmra.mrb[8].mxu0 %vm347_vm3, %v4190_v6  ;;  %v4282_v51 = vrot.slane %v3914_v9, 2  ;;  %v1986_v6 = vsel %vm510_vm4, %v1982_v17, %v1985_v47  ;;  %v1989_v9 = vor.u32 %v1987_v57, %v1985_v47  ;;  %v2160_v17 = vsel %vm718_vm5, %v2157_v58, %v2159_v12 }
 0x1ac   : >> { %6139 = vmatprep.mubr.msk.bf16.mxu1 %vm7387_vm2, %v7385_v1  ;;  %6481 = vmatprep.mubr.msk.bf16.mxu0 %vm7387_vm2, %v7385_v1  ;;  %v4571_v47 = vshll.u32 %v8534_v46, 16  ;;  %v2243_v57 = vrot.slane %v1875_v38, 1 }
 0x1ad   : >> { %v4283_v11 = vor.u32 %v4282_v51, %v4281_v27  ;;  %v1994_v55 = vsel %vm510_vm4, %v1989_v9, %v1993_v56  ;;  %v8614_v27 = vld [vmem:[%s7522_s14 + $0xb8] sm:$0xff]   ;;  %v4569_v51 = vshrl.u32 %v8534_v46, 16  ;;  %v2162_v9 = vsel %vm718_vm5, %v2159_v12, %v2161_v29 }
 0x1af   : >> { %v4284_v60 = vsel %vm887_vm6, %v4277_v26, %v4283_v11  ;;  %v4604_v26 = vand.u32 %v5649_v7, %v7504_v4  ;;  %v4575_v11 = vshll.u32 %v8553_v33, 16 }
 0x1b1   : >> { %v4577_v56 = vrot.slane %v4575_v11, 1 }
 0x1b3   : >> { %6140 = vmatmul.mubr.msk.bf16.gmra.mrb[8].mxu1 %vm347_vm3, %v1889_v14  ;;  %6482 = vmatmul.mubr.msk.bf16.vlgmr.msra.gmra.mrb[0].mxu0 %vm347_vm3, %v4274_v52  ;;  %v2073_v14 = vrot.slane %v8345_v15, 1  ;;  %v2077_v52 = vrot.slane %v8448_v49, 1 }
 0x1b4   : >> { %6145 = vmatprep.mubr.msk.bf16.mxu1 %vm7387_vm2, %v7385_v1  ;;  %6494 = vmatpush3.bf16.msra.mxu0 %v4407_v53 }
 0x1b5   : >> { %6485 = vmatprep.mubr.msk.bf16.mxu0 %vm7387_vm2, %v7385_v1  ;;  %6507 = vmatprep.subr.bf16.mxu0 %v7385_v1  ;;  %v2074_v28 = vsel %vm718_vm5, %v2072_v39, %v2073_v14  ;;  %v2076_v45 = vsel %vm718_vm5, %v2073_v14, %v2075_v50  ;;  %v2078_v53 = vsel %vm718_vm5, %v2075_v50, %v2077_v52  ;;  %v2247_v50 = vrot.slane %v1882_v21, 1 }
 0x1b6   : >> { %v4586_v52 = vshrl.u32 %v8566_v16, 16  ;;  %v2251_v21 = vshrl.u32 %v8448_v49, 16 }
 0x1bb   : >> { %6146 = vmatmul.mubr.msk.bf16.vlgmr.msra.gmra.mrb[0].mxu1 %vm347_vm3, %v1979_v35  ;;  %6486 = vmatmul.mubr.msk.bf16.gmra.mrb[4].mxu0 %vm347_vm3, %v4278_v10  ;;  %v8581_v35 = vld [vmem:[%s7522_s14 + $0xa8] sm:$0xff]   ;;  %v2267_v10 = vand.u32 %v5451_v40, %v7504_v4  ;;  %v2254_v40 = vrot.slane %v1886_v61, 2 }
 0x1bc   : >> { %6158 = vmatpush3.bf16.msra.mxu1 %v2089_v22  ;;  %6149 = vmatprep.mubr.msk.bf16.mxu1 %vm7387_vm2, %v7385_v1  ;;  %v2156_v22 = vrot.slane %v8376_v37, 1  ;;  %v8600_v37 = vld [vmem:[%s7522_s14 + $0xb0] sm:$0xff]  }
 0x1bd   : >> { %6171 = vmatprep.subr.bf16.mxu1 %v7385_v1  ;;  %6489 = vmatprep.mubr.msk.bf16.mxu0 %vm7387_vm2, %v7385_v1 }
 0x1be   : >> { %v2158_v59 = vsel %vm718_vm5, %v2156_v22, %v2157_v58  ;;  %v2253_v58 = vrot.slane %v2251_v21, 1  ;;  %v5663_v21 = vld [vmem:[%s8938_s2 + $0x5e] sm:$0x3] }
 0x1c0   : >> { %v2255_v12 = vor.u32 %v2254_v40, %v2253_v58  ;;  %v5487_v58 = vld [vmem:[%s8938_s2 + $0x2e] sm:$0x3] }
 0x1c1   : >> { %v2576_v40 = vand.u32 %v5487_v58, %v7504_v4 }
 0x1c3   : >> { %6150 = vmatmul.mubr.msk.bf16.gmra.mrb[4].mxu1 %vm347_vm3, %v1986_v6  ;;  %6490 = vmatmul.mubr.msk.bf16.gmra.mrb[8].mxu0 %vm347_vm3, %v4284_v60  ;;  %v4573_v6 = vrot.slane %v4571_v47, 1  ;;  %v2241_v60 = vrot.slane %v1867_v63, 2  ;;  %v2245_v63 = vor.u32 %v2244_v19, %v2243_v57 }
 0x1c4   : >> { %6153 = vmatprep.mubr.msk.bf16.mxu1 %vm7387_vm2, %v7385_v1  ;;  %6495 = vmatprep.mubr.msk.bf16.mxu0 %vm7387_vm2, %v7385_v1 }
 0x1c5   : >> { %v4574_v38 = vor.u32 %v4573_v6, %v4569_v51  ;;  %v2242_v15 = vor.u32 %v2241_v60, %v2240_v42  ;;  %v4680_v6 = vshll.u32 %v8600_v37, 16  ;;  %v5659_v42 = vld [vmem:[%s8938_s2 + $0x5c] sm:$0x3] }
 0x1c6   : >> { %v4793_v19 = vand.u32 %v5659_v42, %v7504_v4  ;;  %v5667_v42 = vld [vmem:[%s8938_s2 + $0x60] sm:$0x3] }
 0x1c7   : >> { %v4578_v5 = vsel %vm510_vm4, %v4574_v38, %v4577_v56  ;;  %v2246_v39 = vsel %vm887_vm6, %v2242_v15, %v2245_v63  ;;  %v4682_v57 = vrot.slane %v4680_v6, 1  ;;  %v4687_v38 = vshll.u32 %v8614_v27, 16 }
 0x1cb   : >> { %6154 = vmatmul.mubr.msk.bf16.gmra.mrb[8].mxu1 %vm347_vm3, %v1994_v55  ;;  %6496 = vmatmul.mubr.msk.bf16.vlgmr.msra.gmra.mrb[0].mxu0 %vm347_vm3, %v8534_v46  ;;  %v5473_v55 = vld [vmem:[%s8938_s2 + $0x2a] sm:$0x3] }
 0x1cc   : >> { %6159 = vmatprep.mubr.msk.bf16.mxu1 %vm7387_vm2, %v7385_v1  ;;  %6508 = vmatpush3.bf16.msra.mxu0 %v4499_v30  ;;  %v4582_v30 = vshll.u32 %v8566_v16, 16  ;;  %v2379_v14 = vand.u32 %v5473_v55, %v7504_v4 }
 0x1cd   : >> { %6499 = vmatprep.mubr.msk.bf16.mxu0 %vm7387_vm2, %v7385_v1  ;;  %6521 = vmatprep.subr.bf16.mxu0 %v7385_v1 }
 0x1d3   : >> { %6160 = vmatmul.mubr.msk.bf16.vlgmr.msra.gmra.mrb[0].mxu1 %vm347_vm3, %v2074_v28  ;;  %6500 = vmatmul.mubr.msk.bf16.gmra.mrb[4].mxu0 %vm347_vm3, %v8553_v33  ;;  %v4581_v28 = vor.u32 %v4579_v25, %v4577_v56  ;;  %v5480_v56 = vld [vmem:[%s8938_s2 + $0x2c] sm:$0x3] }
 0x1d4   : >> { %6172 = vmatpush3.bf16.msra.mxu1 %v2173_v13  ;;  %6163 = vmatprep.mubr.msk.bf16.mxu1 %vm7387_vm2, %v7385_v1  ;;  %v4584_v13 = vrot.slane %v4582_v30, 1  ;;  %v2471_v2 = vand.u32 %v5480_v56, %v7504_v4  ;;  %v4944_v56 = vrot.slane %v4569_v51, 1 }
 0x1d5   : >> { %6185 = vmatprep.subr.bf16.mxu1 %v7385_v1  ;;  %6503 = vmatprep.mubr.msk.bf16.mxu0 %vm7387_vm2, %v7385_v1 }
 0x1d6   : >> { %v4585_v7 = vsel %vm510_vm4, %v4581_v28, %v4584_v13  ;;  %v4588_v3 = vor.u32 %v4586_v52, %v4584_v13 }
 0x1db   : >> { %6164 = vmatmul.mubr.msk.bf16.gmra.mrb[4].mxu1 %vm347_vm3, %v2076_v45  ;;  %6504 = vmatmul.mubr.msk.bf16.gmra.mrb[8].mxu0 %vm347_vm3, %v8566_v16  ;;  %v2248_v45 = vrot.slane %v1878_v54, 2 }
 0x1dc   : >> { %6167 = vmatprep.mubr.msk.bf16.mxu1 %vm7387_vm2, %v7385_v1  ;;  %6509 = vmatprep.mubr.msk.bf16.mxu0 %vm7387_vm2, %v7385_v1 }
 0x1e3   : >> { %6168 = vmatmul.mubr.msk.bf16.gmra.mrb[8].mxu1 %vm347_vm3, %v2078_v53  ;;  %6510 = vmatmul.mubr.msk.bf16.vlgmr.msra.gmra.mrb[0].mxu0 %vm347_vm3, %v8581_v35  ;;  %v4590_v53 = vshll.u32 %v8657_v48, 16 }
 0x1e4   : >> { %6173 = vmatprep.mubr.msk.bf16.mxu1 %vm7387_vm2, %v7385_v1  ;;  %6522 = vmatpush3.bf16.msra.mxu0 %v4604_v26  ;;  %v2249_v26 = vor.u32 %v2248_v45, %v2247_v50  ;;  %v7291_v50 = vld [vmem:[%s7540_s15 + $0x5c] sm:$0xff]  }
 0x1e5   : >> { %6513 = vmatprep.mubr.msk.bf16.mxu0 %vm7387_vm2, %v7385_v1  ;;  %6535 = vmatprep.subr.bf16.mxu0 %v7385_v1  ;;  %v4592_v54 = vrot.slane %v4590_v53, 1 }
 0x1e6   : >> { %v2250_v22 = vsel %vm887_vm6, %v2245_v63, %v2249_v26  ;;  %v2256_v49 = vsel %vm887_vm6, %v2249_v26, %v2255_v12  ;;  %v4689_v63 = vrot.slane %v4687_v38, 1  ;;  %v4777_v26 = vrot.slane %v8553_v33, 1 }
 0x1e7   : >> { %v4863_v38 = vrot.slane %v8614_v27, 1  ;;  %v4952_v33 = vrot.slane %v4582_v30, 2  ;;  %v4955_v30 = vshrl.u32 %v8657_v48, 16 }
 0x1eb   : >> { %6174 = vmatmul.mubr.msk.bf16.vlgmr.msra.gmra.mrb[0].mxu1 %vm347_vm3, %v2158_v59  ;;  %6514 = vmatmul.mubr.msk.bf16.gmra.mrb[4].mxu0 %vm347_vm3, %v8600_v37  ;;  %v4676_v59 = vshll.u32 %v8581_v35, 16 }
 0x1ec   : >> { %6186 = vmatpush3.bf16.msra.mxu1 %v2267_v10  ;;  %6177 = vmatprep.mubr.msk.bf16.mxu1 %vm7387_vm2, %v7385_v1  ;;  %v4593_v10 = vsel %vm510_vm4, %v4588_v3, %v4592_v54  ;;  %v7292_v3 = vld [vmem:[%s7540_s15 + $0x64] sm:$0xff]  }
 0x1ed   : >> { %6199 = vmatprep.subr.bf16.mxu1 %v7385_v1  ;;  %6517 = vmatprep.mubr.msk.bf16.mxu0 %vm7387_vm2, %v7385_v1  ;;  %v4678_v29 = vrot.slane %v4676_v59, 1  ;;  %v4779_v59 = vrot.slane %v8566_v16, 1 }
 0x1ef   : >> { %v4780_v12 = vsel %vm718_vm5, %v4777_v26, %v4779_v59 }
 0x1f3   : >> { %6178 = vmatmul.mubr.msk.bf16.gmra.mrb[4].mxu1 %vm347_vm3, %v2160_v17  ;;  %6518 = vmatmul.mubr.msk.bf16.gmra.mrb[8].mxu0 %vm347_vm3, %v8614_v27  ;;  %v4674_v17 = vshrl.u32 %v8581_v35, 16 }
 0x1f4   : >> { %6181 = vmatprep.mubr.msk.bf16.mxu1 %vm7387_vm2, %v7385_v1  ;;  %6523 = vmatprep.mubr.msk.bf16.mxu0 %vm7387_vm2, %v7385_v1 }
 0x1f5   : >> { %v4679_v61 = vor.u32 %v4678_v29, %v4674_v17  ;;  %v4781_v17 = vrot.slane %v8657_v48, 1  ;;  %v7294_v29 = vld [vmem:[%s7522_s14 + $0x5c] sm:$0xff]  }
 0x1f7   : >> { %v4683_v60 = vsel %vm510_vm4, %v4679_v61, %v4682_v57  ;;  %v4782_v6 = vsel %vm718_vm5, %v4779_v59, %v4781_v17  ;;  %v4861_v61 = vrot.slane %v8600_v37, 1 }
 0x1fb   : >> { %6182 = vmatmul.mubr.msk.bf16.gmra.mrb[8].mxu1 %vm347_vm3, %v2162_v9  ;;  %6524 = vmatmul.mubr.msk.bf16.vlgmr.msra.gmra.mrb[0].mxu0 %vm347_vm3, %v4578_v5  ;;  %v4684_v9 = vshrl.u32 %v8600_v37, 16  ;;  %v8717_v5 = vld [vmem:[%s7522_s14 + $0xc0] ss:$0 sps:$4 sm:$0x33]  }
 0x1fc   : >> { %6187 = vmatprep.mubr.msk.bf16.mxu1 %vm7387_vm2, %v7385_v1  ;;  %6536 = vmatpush3.bf16.msra.mxu0 %v4709_v32  ;;  %v7290_v32 = vld [vmem:[%s7540_s15 + $0x54] sm:$0xff]   ;;  %s5116_s15 = sshll.u32 (%p305_p12), %s281_s17, 4  ;;  %s8886_s15 = int_to_ptr.vmem [resolvable:$true] %s5116_s15 }
 0x1fd   : >> { %6527 = vmatprep.mubr.msk.bf16.mxu0 %vm7387_vm2, %v7385_v1  ;;  %6549 = vmatprep.subr.bf16.mxu0 %v7385_v1  ;;  %v4686_v15 = vor.u32 %v4684_v9, %v4682_v57  ;;  %v2545_v57 = vrot.slane %v2543_v41, 1  ;;  %v4971_v9 = vand.u32 %v5667_v42, %v7504_v4  ;;  %v2549_v41 = vrot.slane %v2547_v43, 1  ;;  %s7297_s13 = scalar_lea.vmem (%p305_p12), %s8886_s15, 18432  ;;  %p7304_p2 = scmp.lt.s32.totalorder (%p305_p12), %s8886_s15, %s7302_s8 }
 0x1fe   : >> { %v4865_v43 = vrot.slane %v8717_v5, 1  ;;  %p7298_p13 = scmp.ne.s32.totalorder (%p305_p12), %s8886_s15, %s7297_s13  ;;  %p7305_p3 = scmp.lt.s32.totalorder (%p305_p12), %s7303_s16, %s7297_s13 }
 0x1ff   : >> { %v4690_v55 = vsel %vm510_vm4, %v4686_v15, %v4689_v63  ;;  %v2553_v23 = vor.u32 %v2551_v44, %v2549_v41  ;;  %v2656_v15 = vshrl.u32 %v7294_v29, 16 }
 0x200   : >> { %v4866_v24 = vsel %vm718_vm5, %v4863_v38, %v4865_v43  ;;  %p7299_p0 = pnand (%p305_p12), %p7298_p13, %p7461_p4  ;;  %p7306_p5 = por (%p305_p12), %p7305_p3, %p7304_p2 }
 0x202   : > { %p7300_p1 = pneg (%p305_p12), %p7299_p0 }
 0x203   : >> { %6188 = vmatmul.mubr.msk.bf16.vlgmr.msra.gmra.mrb[0].mxu1 %vm347_vm3, %v2246_v39  ;;  %6528 = vmatmul.mubr.msk.bf16.gmra.mrb[4].mxu0 %vm347_vm3, %v4585_v7  ;;  %v4691_v39 = vshrl.u32 %v8614_v27, 16  ;;  %v4776_v7 = vrot.slane %v8534_v46, 1  ;;  %v4951_v46 = vrot.slane %v4586_v52, 1 }
 0x204   : >> { %6200 = vmatpush3.bf16.msra.mxu1 %v2379_v14  ;;  %6191 = vmatprep.mubr.msk.bf16.mxu1 %vm7387_vm2, %v7385_v1  ;;  %v4695_v14 = vshll.u32 %v8717_v5, 16  ;;  %p7307_p6 = pnand (%p305_p12), %p7306_p5, %p7300_p1 }
 0x205   : >> { %6213 = vmatprep.subr.bf16.mxu1 %v7385_v1  ;;  %6531 = vmatprep.mubr.msk.bf16.mxu0 %vm7387_vm2, %v7385_v1  ;;  %v4693_v28 = vor.u32 %v4691_v39, %v4689_v63  ;;  %v4778_v54 = vsel %vm718_vm5, %v4776_v7, %v4777_v26  ;;  %v4953_v63 = vor.u32 %v4952_v33, %v4951_v46 }
 0x206   : >> { %v4697_v13 = vrot.slane %v4695_v14, 1  ;;  %v4957_v14 = vrot.slane %v4955_v30, 1 }
 0x208   : >> { %v4698_v45 = vsel %vm510_vm4, %v4693_v28, %v4697_v13  ;;  %v4958_v28 = vrot.slane %v4590_v53, 2 }
 0x20b   : >> { %6192 = vmatmul.mubr.msk.bf16.gmra.mrb[4].mxu1 %vm347_vm3, %v2250_v22  ;;  %6532 = vmatmul.mubr.msk.bf16.gmra.mrb[8].mxu0 %vm347_vm3, %v4593_v10  ;;  %v4877_v22 = vand.u32 %v5663_v21, %v7504_v4  ;;  %v7293_v10 = vld [vmem:[%s7522_s14 + $0x54] sm:$0xff]   ;;  %v4864_v4 = vsel %vm718_vm5, %v4861_v61, %v4863_v38 }
 0x20c   : >> { %6195 = vmatprep.mubr.msk.bf16.mxu1 %vm7387_vm2, %v7385_v1  ;;  %6537 = vmatprep.mubr.msk.bf16.mxu0 %vm7387_vm2, %v7385_v1 }
 0x213   : >> { %6196 = vmatmul.mubr.msk.bf16.gmra.mrb[8].mxu1 %vm347_vm3, %v2256_v49  ;;  %6538 = vmatmul.mubr.msk.bf16.vlgmr.msra.gmra.mrb[0].mxu0 %vm347_vm3, %v4683_v60  ;;  %v4860_v49 = vrot.slane %v8581_v35, 1  ;;  %v7295_v60 = vld [vmem:[%s7522_s14 + $0x64] sm:$0xff]   ;;  %v2546_v35 = vor.u32 %v2545_v57, %v2541_v34  ;;  %v2556_v34 = vrot.slane %v2554_v62, 1  ;;  %v2564_v62 = vrot.slane %v2562_v20, 1 }
 0x214   : >> { %6201 = vmatprep.mubr.msk.bf16.mxu1 %vm7387_vm2, %v7385_v1  ;;  %6550 = vmatpush3.bf16.msra.mxu0 %v4793_v19  ;;  %v2659_v20 = vshll.u32 %v7295_v60, 16  ;;  %v2663_v52 = vshrl.u32 %v7295_v60, 16 }
 0x215   : >> { %6541 = vmatprep.mubr.msk.bf16.mxu0 %vm7387_vm2, %v7385_v1  ;;  %6563 = vmatprep.subr.bf16.mxu0 %v7385_v1  ;;  %v4862_v19 = vsel %vm718_vm5, %v4860_v49, %v4861_v61  ;;  %v2550_v37 = vsel %vm510_vm4, %v2546_v35, %v2549_v41  ;;  %v2557_v27 = vsel %vm510_vm4, %v2553_v23, %v2556_v34 }
 0x216   : >> { %v2560_v44 = vor.u32 %v2558_v0, %v2556_v34 }
 0x218   : >> { %v2565_v31 = vsel %vm510_vm4, %v2560_v44, %v2564_v62 }
 0x21b   : >> { %6202 = vmatmul.mubr.msk.bf16.vlgmr.msra.gmra.mrb[0].mxu1 %vm347_vm3, %v7290_v32  ;;  %6542 = vmatmul.mubr.msk.bf16.gmra.mrb[4].mxu0 %vm347_vm3, %v4690_v55  ;;  %v7296_v32 = vld [vmem:[%s7522_s14 + $0x6c] ss:$0 sps:$4 sm:$0x33]  }
 0x21c   : >> { %6214 = vmatpush3.bf16.msra.mxu1 %v2471_v2  ;;  %6205 = vmatprep.mubr.msk.bf16.mxu1 %vm7387_vm2, %v7385_v1  ;;  %v4945_v2 = vrot.slane %v4571_v47, 2  ;;  %v2658_v47 = vor.u32 %v2656_v15, %v7551_v18  ;;  %v2667_v16 = vshll.u32 %v7296_v32, 16 }
 0x21d   : >> { %6227 = vmatprep.subr.bf16.mxu1 %v7385_v1  ;;  %6545 = vmatprep.mubr.msk.bf16.mxu0 %vm7387_vm2, %v7385_v1 }
 0x21e   : >> { %v4946_v36 = vor.u32 %v4945_v2, %v4944_v56  ;;  %v2669_v39 = vrot.slane %v2667_v16, 1 }
 0x223   : >> { %6206 = vmatmul.mubr.msk.bf16.gmra.mrb[4].mxu1 %vm347_vm3, %v7291_v50  ;;  %6546 = vmatmul.mubr.msk.bf16.gmra.mrb[8].mxu0 %vm347_vm3, %v4698_v45  ;;  %v4959_v50 = vor.u32 %v4958_v28, %v4957_v14 }
 0x224   : >> { %6209 = vmatprep.mubr.msk.bf16.mxu1 %vm7387_vm2, %v7385_v1  ;;  %6551 = vmatprep.mubr.msk.bf16.mxu0 %vm7387_vm2, %v7385_v1 }
 0x225   : >> { %v4960_v45 = vsel %vm887_vm6, %v4953_v63, %v4959_v50 }
 0x22b   : >> { %6210 = vmatmul.mubr.msk.bf16.gmra.mrb[8].mxu1 %vm347_vm3, %v7292_v3  ;;  %6552 = vmatmul.mubr.msk.bf16.vlgmr.msra.gmra.mrb[0].mxu0 %vm347_vm3, %v4778_v54  ;;  %v5671_v3 = vld [vmem:[%s8939_s3] ss:$0 sm:$0xff] }
 0x22c   : >> { %6215 = vmatprep.mubr.msk.bf16.mxu1 %vm7387_vm2, %v7385_v1  ;;  %6564 = vmatpush3.bf16.msra.mxu0 %v4877_v22 }
 0x22d   : >> { %6555 = vmatprep.mubr.msk.bf16.mxu0 %vm7387_vm2, %v7385_v1  ;;  %6577 = vmatprep.subr.bf16.mxu0 %v7385_v1 }
 0x233   : >> { %6216 = vmatmul.mubr.msk.bf16.vlgmr.msra.gmra.mrb[0].mxu1 %vm347_vm3, %v7293_v10  ;;  %6556 = vmatmul.mubr.msk.bf16.gmra.mrb[4].mxu0 %vm347_vm3, %v4780_v12 }
 0x234   : >> { %6228 = vmatpush3.bf16.msra.mxu1 %v2576_v40  ;;  %6219 = vmatprep.mubr.msk.bf16.mxu1 %vm7387_vm2, %v7385_v1 }
 0x235   : >> { %6591 = vmatprep.subr.bf16.mxu1 %v7385_v1  ;;  %6559 = vmatprep.mubr.msk.bf16.mxu0 %vm7387_vm2, %v7385_v1 }
 0x23b   : >> { %6220 = vmatmul.mubr.msk.bf16.gmra.mrb[4].mxu1 %vm347_vm3, %v7294_v29  ;;  %6560 = vmatmul.mubr.msk.bf16.gmra.mrb[8].mxu0 %vm347_vm3, %v4782_v6 }
 0x23c   : >> { %6223 = vmatprep.mubr.msk.bf16.mxu1 %vm7387_vm2, %v7385_v1  ;;  %6565 = vmatprep.mubr.msk.bf16.mxu0 %vm7387_vm2, %v7385_v1 }
 0x243   : >> { %6224 = vmatmul.mubr.msk.bf16.gmra.mrb[8].mxu1 %vm347_vm3, %v7295_v60  ;;  %6566 = vmatmul.mubr.msk.bf16.vlgmr.msra.gmra.mrb[0].mxu0 %vm347_vm3, %v4862_v19 }
 0x244   : >> { %6229 = vmatprep.mubr.msk.bf16.mxu1 %vm7387_vm2, %v7385_v1  ;;  %6578 = vmatpush3.bf16.msra.mxu0 %v4971_v9 }
 0x245   : >> { %6569 = vmatprep.mubr.msk.bf16.mxu0 %vm7387_vm2, %v7385_v1 }
 0x24b   : >> { %6230 = vmatmul.mubr.msk.bf16.vlgmr.msra.gmra.mrb[0].mxu1 %vm347_vm3, %v2550_v37  ;;  %6570 = vmatmul.mubr.msk.bf16.gmra.mrb[4].mxu0 %vm347_vm3, %v4864_v4 }
 0x24c   : >> { %6592 = vmatpush3.bf16.msra.mxu1 %v7519_v8  ;;  %6233 = vmatprep.mubr.msk.bf16.mxu1 %vm7387_vm2, %v7385_v1  ;;  %v4947_v8 = vrot.slane %v4579_v25, 1  ;;  %v4948_v25 = vrot.slane %v4575_v11, 2  ;;  %v2661_v11 = vrot.slane %v2659_v20, 1 }
 0x24d   : >> { %6573 = vmatprep.mubr.msk.bf16.mxu0 %vm7387_vm2, %v7385_v1 }
 0x24e   : >> { %v4949_v0 = vor.u32 %v4948_v25, %v4947_v8  ;;  %v2662_v5 = vsel %vm510_vm4, %v2658_v47, %v2661_v11  ;;  %v2665_v55 = vor.u32 %v2663_v52, %v2661_v11 }
 0x250   : >> { %v4950_v51 = vsel %vm887_vm6, %v4946_v36, %v4949_v0  ;;  %v4954_v18 = vsel %vm887_vm6, %v4949_v0, %v4953_v63  ;;  %v2670_v13 = vsel %vm510_vm4, %v2665_v55, %v2669_v39 }
 0x253   : >> { %6234 = vmatmul.mubr.msk.bf16.gmra.mrb[4].mxu1 %vm347_vm3, %v2557_v27  ;;  %6574 = vmatmul.mubr.msk.bf16.gmra.mrb[8].mxu0 %vm347_vm3, %v4866_v24 }
 0x254   : >> { %6237 = vmatprep.mubr.msk.bf16.mxu1 %vm7387_vm2, %v7385_v1  ;;  %6579 = vmatprep.mubr.msk.bf16.mxu0 %vm7387_vm2, %v7385_v1 }
 0x25b   : >> { %6238 = vmatmul.mubr.msk.bf16.gmra.mrb[8].mxu1 %vm347_vm3, %v2565_v31  ;;  %6580 = vmatmul.mubr.msk.bf16.vlgmr.msra.gmra.mrb[0].mxu0 %vm347_vm3, %v4950_v51 }
 0x25c   : >> { %6247 = vmatprep.mubr.msk.bf16.mxu1 %vm7387_vm2, %v7385_v1  ;;  %6583 = vmatprep.mubr.msk.bf16.mxu0 %vm7387_vm2, %v7385_v1 }
 0x263   : >> { %6248 = vmatmul.mubr.msk.bf16.vlgmr.msra.gmra.mrb[4].mxu1 %vm347_vm3, %v2662_v5  ;;  %6584 = vmatmul.mubr.msk.bf16.gmra.mrb[4].mxu0 %vm347_vm3, %v4954_v18 }
 0x264   : >> { %6251 = vmatprep.mubr.msk.bf16.mxu1 %vm7387_vm2, %v7385_v1  ;;  %6587 = vmatprep.mubr.msk.bf16.mxu0 %vm7387_vm2, %v7385_v1  ;;  %v5672_v1 = vld [vmem:[%s8940_s4] ss:$0 sm:$0xff] }
 0x26b   : >> { %6252 = vmatmul.mubr.msk.bf16.gmra.mrb[8].mxu1 %vm347_vm3, %v2670_v13  ;;  %6588 = vmatmul.mubr.msk.bf16.gmra.mrb[8].mxu0 %vm347_vm3, %v4960_v45 }
 0x31e   : >> { %v2612_v7 = vpop.f32.mrb[0].mxu1 }
 0x31f   : >> { %v6231_v26 = vpop.f32.mrb[1].mxu1 }
 0x320   : >> { %v2615_v21 = vpop.f32.mrb[2].mxu1 }
 0x321   : >> { %v6232_v48 = vpop.f32.mrb[3].mxu1 }
 0x32e   : >> { %v5007_v53 = vpop.f32.mrb[0].mxu0 }
 0x32f   : >> { %v6593_v54 = vadd.f32 %v5007_v53, %v2612_v7  ;;  %v6581_v22 = vpop.f32.mrb[1].mxu0 }
 0x330   : >> { %v5010_v58 = vpop.f32.mrb[2].mxu0 }
 0x331   : >> { %v5043_v40 = vmul.f32 %v6593_v54, %v5671_v3  ;;  %v6594_v59 = vadd.f32 %v5010_v58, %v2615_v21  ;;  %v6582_v10 = vpop.f32.mrb[3].mxu0 }
 0x333   : >> { %v5056_v17 = vadd.f32 %v5672_v1, %v5043_v40  ;;  %v5044_v29 = vmul.f32 %v6594_v59, %v5671_v3 }
 0x335   : >> { %v5057_v61 = vadd.f32 %v5672_v1, %v5044_v29  ;;  %v5062_v60 = vmax.f32 %v5056_v17, 0.0 }
 0x336   : >> { %v2725_v12 = vpop.f32.mrb[4].mxu1  ;;  %v5015_v42 = vpop.f32.mrb[4].mxu0 }
 0x337   : >> { %v6249_v6 = vpop.f32.mrb[5].mxu1  ;;  %v5063_v19 = vmax.f32 %v5057_v61, 0.0  ;;  %v6595_v9 = vadd.f32 %v5015_v42, %v2725_v12  ;;  %v6585_v35 = vpop.f32.mrb[5].mxu0 }
 0x338   : >> { %v2728_v49 = vpop.f32.mrb[6].mxu1  ;;  %v5018_v41 = vpop.f32.mrb[6].mxu0 }
 0x339   : >> { %v6250_v57 = vpop.f32.mrb[7].mxu1  ;;  %v5695_v37 = vpack.c.bf16 %v5063_v19, %v5062_v60  ;;  %v5045_v38 = vmul.f32 %v6595_v9, %v5671_v3  ;;  %v6596_v4 = vadd.f32 %v5018_v41, %v2728_v49  ;;  %v6586_v23 = vpop.f32.mrb[7].mxu0 }
 0x33b   : >> { %5696 = vst [vmem:[%s8870_s10] sm:$0xff] %v5695_v37   ;;  %v5058_v43 = vadd.f32 %v5672_v1, %v5045_v38  ;;  %v5046_v27 = vmul.f32 %v6596_v4, %v5671_v3 }
 0x33d   : >> { %v5059_v44 = vadd.f32 %v5672_v1, %v5046_v27  ;;  %v5064_v2 = vmax.f32 %v5058_v43, 0.0 }
 0x33e   : >> { %v2733_v34 = vpop.f32.mrb[8].mxu1  ;;  %v5023_v56 = vpop.f32.mrb[8].mxu0 }
 0x33f   : >> { %v6253_v8 = vpop.f32.mrb[9].mxu1  ;;  %v5065_v25 = vmax.f32 %v5059_v44, 0.0  ;;  %v6597_v15 = vadd.f32 %v5023_v56, %v2733_v34  ;;  %v6589_v31 = vpop.f32.mrb[9].mxu0 }
 0x340   : >> { %v2736_v24 = vpop.f32.mrb[10].mxu1  ;;  %v5026_v36 = vpop.f32.mrb[10].mxu0 }
 0x341   : >> { %v6254_v62 = vpop.f32.mrb[11].mxu1  ;;  %v5700_v0 = vpack.c.bf16 %v5065_v25, %v5064_v2  ;;  %v5047_v20 = vmul.f32 %v6597_v15, %v5671_v3  ;;  %v6598_v46 = vadd.f32 %v5026_v36, %v2736_v24  ;;  %v6590_v33 = vpop.f32.mrb[11].mxu0 }
 0x343   : >> { %5707 = vst [vmem:[%s8870_s10 + $0x8] sm:$0xff] %v5700_v0   ;;  %v5060_v47 = vadd.f32 %v5672_v1, %v5047_v20  ;;  %v5048_v51 = vmul.f32 %v6598_v46, %v5671_v3 }
 0x345   : >> { %v5061_v11 = vadd.f32 %v5672_v1, %v5048_v51  ;;  %v5066_v63 = vmax.f32 %v5060_v47, 0.0  ;;  %307 = sbr.rel (!%p305_p12) target bundleno = 27 (0x1b), region = 157 }
 0x347   : >> { %v5067_v5 = vmax.f32 %v5061_v11, 0.0 }
 0x349   : >> { %v5705_v52 = vpack.c.bf16 %v5067_v5, %v5066_v63 }
 0x34b   : >> { %5708 = vst [vmem:[%s8870_s10 + $0x10] sm:$0xff] %v5705_v52  }
 0x34c   : > { %7310 = shalt.err (!%p7307_p6)
}
 0x34d   : > { %s7311_s7 = scalar_lea.hbm %s8884_s25, 18432  ;;  %s7315_s29 = scalar_lea.hbm %s8941_s5, 36864 }
 0x34e   : > { %p7312_p7 = scmp.ne.s32.totalorder %s8884_s25, %s7311_s7  ;;  %p7316_p11 = scmp.lt.u32.totalorder %s8884_s25, %s8941_s5 }
 0x34f   : > { %p7317_p12 = scmp.lt.u32.totalorder %s7315_s29, %s7311_s7  ;;  %p7319_p0 = scmp.lt.u32.totalorder %s7311_s7, %s8884_s25 }
 0x350   : > { %p7313_p9 = pnand %p7312_p7, %p7461_p4 }
 0x351   : > { %p7318_p13 = por %p7317_p12, %p7316_p11 }
 0x352   : > { %p7314_p10 = pneg %p7313_p9 }
 0x353   : > { %p7320_p1 = por %p7319_p0, %p7318_p13 }
 0x355   : > { %p7321_p2 = pnand %p7320_p1, %p7314_p10 }
 0x357   : > { %7324 = shalt.err (!%p7321_p2)
}
 0x358   : > { %s7389_s11 = smov 64   ;;  %s7390_s12 = smov 4  }
 0x359   : > { %7166 = dma.vmem_to_hbm [thread:$0]  (%p7461_p4), %s8886_s15, 18432, %s8884_s25, %s8890_s24, %s7389_s11, %s7389_s11, %s7390_s12  }
 0x35a PF: > { %p7172_p3 = scmp.ge.s32.totalorder %s7379_s23, 2  ;;  %s5131_s14 = sand.u32 1, %s7359_s18  }
 0x35b   : > { %s5132_s13 = scalar_lea.sflag [#allocation3], %s5131_s14 }
 0x35c   : > { %p7169_p5 = pnand %p7172_p3, %p7468_p8 }
 0x35e   : > { %7354 = dma.done.wait (!%p7169_p5), %s5132_s13, 18432  }
 0x35f   : > { %7356 = vsyncadd (!%p7169_p5), %s5132_s13, 4294948864  ;;  %s18_s23 = sadd.s32 1, %s7379_s23   ;;  %s8944_s18 = smov %s7363_s19 }
 0x360   : > { %p15_p6 = scmp.ge.s32.totalorder %s18_s23, 4   ;;  %s8945_s19 = smov %s7367_s20 }
 0x361   : > { %s8946_s20 = smov %s7474_s6  ;;  %s8947_s21 = smov %s7375_s22 }
 0x362   : > { %s8948_s22 = smov %s8950_s26  ;;  %17 = sbr.rel (!%p15_p6) target bundleno = 4 (0x4), region = 168 }
 0x369   :  { %5137 = vsyncpa [#allocation3], 1 }
 0x36a   :  { %5139 = vsyncpa [#allocation3 + $0x1], 1 }

</bundles_post_ra>
